<compile_context>
chip_gen: v7x
topology: tpu7x:2x2x1
jax: 0.10.0
libtpu: 0.0.40
codegen_flags: <defaults>
</compile_context>

<pallas_src>
import functools

import jax
import jax.numpy as jnp
from jax.experimental import pallas as pl
from jax.experimental.pallas import tpu as pltpu

ACT_BITS = 8      # QuantAct_Daq activation bit-width (symmetric, per-tensor)
WEIGHT_BITS = 8   # QuantBnConv2d weight bit-width (symmetric, per-out-channel)
BN_EPS = 1e-5
LANE = 128        # TPU lane width; channels are padded to a multiple of this


def _round_up(x, m):
    return ((x + m - 1) // m) * m


def _vmem_limit_bytes():
    # Generation-aware VMEM budget: ~3/4 of physical, capped at 96 MiB
    # (v5e/v6e: 96 MiB of 128 MiB physical; v7x: 48 MiB of 64 MiB physical).
    cap = 128 * 1024 * 1024
    try:
        cap = int(pltpu.get_tpu_info().vmem_capacity_bytes)
    except Exception:
        pass
    return int(min(cap * 3 // 4, 96 * 1024 * 1024))


def _conv_row_tile(h, w, target_rows=512, cap_rows=4096):
    # Smallest divisor TH of h such that the MXU M dim (TH*w) is >= target
    # (fills the 256-wide v6e/v7x MXU), capped so the per-tap piece + f32
    # accumulator stay small in VMEM.
    divs = [d for d in range(1, h + 1) if h % d == 0]
    ok = [d for d in divs if target_rows <= d * w <= cap_rows]
    if ok:
        return min(ok)
    fit = [d for d in divs if d * w <= cap_rows]
    return max(fit) if fit else 1


def _ew_row_tile(h, w, cp, budget_bytes=4 * 1024 * 1024):
    # Largest divisor of h whose (TH, w, cp) f32 block fits the byte budget
    # (the elementwise pass is HBM-bound; fat lane-dense blocks hit roofline).
    th = 1
    for d in range(1, h + 1):
        if h % d == 0 and d * w * cp * 4 <= budget_bytes:
            th = d
    return th


# ---------------------------------------------------------------------------
# Kernel 1: QuantBnConv2d 3x3 / stride 1 / pad 1 with
#   * input fake-quant (QuantAct_Daq) fused on the way in (integer levels),
#   * BN + weight/act dequant scales folded into the epilogue,
#   * optional fused ReLU (act1) or residual add (x + identity),
#   * per-image |max| accumulated across row blocks (feeds the next QuantAct
#     scale without an extra HBM pass over the conv output).
#
# grid = (N, H // TH). For each row block a small quantized (TH+2, W+2, Cp)
# halo window is built in VMEM scratch, then the conv is 9 accumulated
# per-tap MXU dots (TH*W, Cp) @ (Cp, Cp) with bf16 operands / f32 accumulate.
# The batch axis is "parallel" (megacore); the row axis is "arbitrary" because
# the pmax output block is an accumulator across it.
# ---------------------------------------------------------------------------
def _convbn_kernel(scale_ref, x_ref, w_ref, ws_ref, b_ref, *rest,
                   TH, KH, KW, apply_relu, has_identity, n_levels):
    if has_identity:
        id_ref, y_ref, pmax_ref, win_ref = rest
    else:
        id_ref = None
        y_ref, pmax_ref, win_ref = rest

    hb = pl.program_id(1)
    HB = pl.num_programs(1)
    W = x_ref.shape[2]
    Cp = x_ref.shape[3]
    Cout = w_ref.shape[1]

    s = scale_ref[0]
    inv_s = 1.0 / s            # hoisted reciprocal: one scalar divide total

    def fq_levels(v):
        # Symmetric fake-quant to integer levels (dequant folded into epilogue).
        return jnp.clip(jnp.round(v * inv_s), -n_levels - 1.0, n_levels)

    h0 = pl.multiple_of(hb * TH, TH)

    # --- Build the quantized (TH+2, W+2, Cp) halo window for this row block.
    # The 1-px border (cols 0 / W+1, top row) only needs zeroing once per image;
    # the bottom halo row is re-zeroed at the last block because the previous
    # step left real data there.  Interior rows are rewritten every step.
    @pl.when(hb == 0)
    def _():
        win_ref[...] = jnp.zeros_like(win_ref)

    @pl.when(hb == HB - 1)
    def _():
        win_ref[pl.ds(TH + 1, 1), :, :] = jnp.zeros((1, W + 2, Cp), win_ref.dtype)

    win_ref[pl.ds(1, TH), pl.ds(1, W), :] = fq_levels(x_ref[0, pl.ds(h0, TH), :, :])

    @pl.when(hb > 0)
    def _():
        win_ref[pl.ds(0, 1), pl.ds(1, W), :] = fq_levels(
            x_ref[0, pl.ds(h0 - 1, 1), :, :])

    @pl.when(hb < HB - 1)
    def _():
        win_ref[pl.ds(TH + 1, 1), pl.ds(1, W), :] = fq_levels(
            x_ref[0, pl.ds(h0 + TH, 1), :, :])

    # --- Per-tap accumulated matmuls: 9 x (TH*W, Cp) @ (Cp, Cout), bf16 on MXU.
    # Integer levels |.| <= 128 are exact in bf16, so the MXU math is exact
    # quantized arithmetic with f32 accumulation.
    acc = None
    for t_kh in range(KH):
        for t_kw in range(KW):
            p = win_ref[pl.ds(t_kh, TH), pl.ds(t_kw, W), :]
            p = p.reshape(TH * W, Cp).astype(jnp.bfloat16)
            wk = w_ref[pl.ds((t_kh * KW + t_kw) * Cp, Cp), :]
            d = jnp.dot(p, wk, preferred_element_type=jnp.float32)
            acc = d if acc is None else acc + d

    # Dequantize (per-tensor act scale x per-out-channel weight scale) + folded
    # BN bias, then the fused nonlinearity / residual.
    y = acc * (s * ws_ref[...]) + b_ref[...]
    if apply_relu:
        y = jnp.maximum(y, 0.0)
    y = y.reshape(1, TH, W, Cout)
    if has_identity:
        y = y + id_ref[...]

    # Running per-image |max| for the NEXT QuantAct's per-tensor scale; the
    # (n,0,0,0) output block stays resident in VMEM across the hb axis and is
    # written back to HBM once per image.
    @pl.when(hb == 0)
    def _():
        pmax_ref[...] = jnp.zeros_like(pmax_ref)
    pmax_ref[...] = jnp.maximum(pmax_ref[...], jnp.max(jnp.abs(y)))

    y_ref[...] = y.astype(y_ref.dtype)                         # lane-dense store


def convbn2d(x, act_scale, w_levels, w_scale_row, bias_row, *,
             identity=None, apply_relu=False, kh=3, kw=3):
    """x: (N,H,W,Cp) NHWC, Cp % 128 == 0.  w_levels: (kh*kw*Cp, Cp) bf16 integer
    levels.  w_scale_row / bias_row: (1, Cp) f32."""
    N, H, W, Cp = x.shape
    KHKWC, Cout = w_levels.shape
    assert KHKWC == kh * kw * Cp and Cout == Cp
    TH = _conv_row_tile(H, W)
    HB = H // TH
    n_levels = float(2 ** (ACT_BITS - 1) - 1)

    kern = functools.partial(
        _convbn_kernel, TH=TH, KH=kh, KW=kw,
        apply_relu=apply_relu, has_identity=identity is not None,
        n_levels=n_levels)

    in_specs = [
        pl.BlockSpec(memory_space=pltpu.MemorySpace.SMEM),          # act scale (1,)
        # TODO(synk): for very large H*W*Cp, stream (TH+2)-row halo windows with
        #             a manual DMA (pl.ANY + make_async_copy) instead of keeping
        #             the image resident per n; and single-buffer the constant
        #             weight/bias operands once pl.Buffered(1) is exercised.
        pl.BlockSpec((1, H, W, Cp), lambda n, hb: (n, 0, 0, 0)),    # image, resident per n
        pl.BlockSpec((KHKWC, Cout), lambda n, hb: (0, 0)),          # im2col weight levels
        pl.BlockSpec((1, Cout), lambda n, hb: (0, 0)),              # per-channel w scales
        pl.BlockSpec((1, Cout), lambda n, hb: (0, 0)),              # folded-BN bias
    ]
    args = [jnp.reshape(act_scale, (1,)).astype(jnp.float32),
            x, w_levels, w_scale_row, bias_row]
    if identity is not None:
        in_specs.append(pl.BlockSpec((1, TH, W, Cout), lambda n, hb: (n, hb, 0, 0)))
        args.append(identity)

    out_shape = (jax.ShapeDtypeStruct((N, H, W, Cout), jnp.float32),
                 jax.ShapeDtypeStruct((N, 1, 1, 1), jnp.float32))
    out_specs = (pl.BlockSpec((1, TH, W, Cout), lambda n, hb: (n, hb, 0, 0)),
                 pl.BlockSpec((1, 1, 1, 1), lambda n, hb: (n, 0, 0, 0)))

    return pl.pallas_call(
        kern,
        grid=(N, HB),
        in_specs=in_specs,
        out_specs=out_specs,
        out_shape=out_shape,
        scratch_shapes=[pltpu.VMEM((TH + 2, W + 2, Cp), jnp.float32)],
        compiler_params=pltpu.CompilerParams(
            # hb is "arbitrary": the pmax output block accumulates across it.
            dimension_semantics=("parallel", "arbitrary"),
            vmem_limit_bytes=_vmem_limit_bytes()),
    )(*args)


# ---------------------------------------------------------------------------
# Kernel 2: quant_act_int32 + act2 — tiled, lane-dense fake-quant + ReLU.
# ---------------------------------------------------------------------------
def _quant_relu_kernel(scale_ref, x_ref, o_ref, *, n_levels):
    s = scale_ref[0]
    inv_s = 1.0 / s
    q = jnp.clip(jnp.round(x_ref[...] * inv_s), -n_levels - 1.0, n_levels) * s
    o_ref[...] = jnp.maximum(q, 0.0).astype(o_ref.dtype)


def quant_relu(x, scale):
    N, H, W, Cp = x.shape
    TH = _ew_row_tile(H, W, Cp)
    HB = H // TH
    kern = functools.partial(_quant_relu_kernel,
                             n_levels=float(2 ** (ACT_BITS - 1) - 1))
    return pl.pallas_call(
        kern,
        grid=(N, HB),
        in_specs=[pl.BlockSpec(memory_space=pltpu.MemorySpace.SMEM),
                  pl.BlockSpec((1, TH, W, Cp), lambda n, hb: (n, hb, 0, 0))],
        out_specs=pl.BlockSpec((1, TH, W, Cp), lambda n, hb: (n, hb, 0, 0)),
        out_shape=jax.ShapeDtypeStruct((N, H, W, Cp), jnp.float32),
        compiler_params=pltpu.CompilerParams(
            dimension_semantics=("parallel", "parallel"),
            vmem_limit_bytes=_vmem_limit_bytes()),
    )(jnp.reshape(scale, (1,)).astype(jnp.float32), x)


# ---------------------------------------------------------------------------
# Parameter setup (host-side glue): BN fold + per-channel weight quantization
# to integer levels (QuantBnConv2d.set_param), channel padding, im2col layout.
# ---------------------------------------------------------------------------
def prepare_convbn_params(w_oihw, gamma, beta, mean, var, cp, *, bits=WEIGHT_BITS):
    cout, cin, kh, kw = w_oihw.shape
    inv_std = gamma / jnp.sqrt(var + BN_EPS)
    w_fold = w_oihw * inv_std[:, None, None, None]
    b_fold = beta - mean * inv_std
    n = float(2 ** (bits - 1) - 1)
    max_abs = jnp.max(jnp.abs(w_fold.reshape(cout, -1)), axis=1)
    w_scale = jnp.maximum(max_abs, 1e-8) / n
    levels = jnp.clip(jnp.round(w_fold / w_scale[:, None, None, None]), -n - 1.0, n)
    lv_hwio = jnp.transpose(levels, (2, 3, 1, 0))                  # OIHW -> HWIO
    lv_pad = jnp.zeros((kh, kw, cp, cp), jnp.float32).at[:, :, :cin, :cout].set(lv_hwio)
    w2d = lv_pad.reshape(kh * kw * cp, cp).astype(jnp.bfloat16)    # exact integer levels
    ws_row = jnp.ones((1, cp), jnp.float32).at[0, :cout].set(w_scale)
    b_row = jnp.zeros((1, cp), jnp.float32).at[0, :cout].set(b_fold)
    return w2d, ws_row, b_row


# ---------------------------------------------------------------------------
# Q_ResBlockBn_Daq.forward  (resize_identity = False path)
# ---------------------------------------------------------------------------
def q_resblock_bn_daq_forward(x_nchw, params, scaling_factor_int32=None):
    # TODO(synk): resize_identity=True branch (strided 1x1 identity QuantBnConv2d),
    #             DAQ runtime_helper cluster-wise activation ranges, and the int32
    #             requantization path of quant_act_int32 are not modeled; per-batch
    #             symmetric ranges are used instead.
    del scaling_factor_int32
    n_act = float(2 ** (ACT_BITS - 1) - 1)

    x = jnp.transpose(x_nchw, (0, 2, 3, 1))                        # NCHW -> NHWC
    N, H, W, C = x.shape
    Cp = _round_up(C, LANE)
    if Cp != C:
        x = jnp.pad(x, ((0, 0), (0, 0), (0, 0), (0, Cp - C)))      # lane-dense channels
    identity = x

    # quant_act: per-tensor symmetric scale (cheap XLA reduction); the quantize
    # itself is fused into conv1 so x is never re-written to HBM.
    s_x = jnp.maximum(jnp.max(jnp.abs(x)), 1e-8) / n_act

    # quant_convbn1 + act1 (ReLU) + per-image |max| for quant_act1.
    y, pmax_y = convbn2d(x, s_x, params["w1"], params["ws1"], params["b1"],
                         apply_relu=True)
    s_y = jnp.maximum(jnp.max(pmax_y), 1e-8) / n_act

    # quant_act1 (fused) + quant_convbn2 + residual add + |max| for act_int32.
    z, pmax_z = convbn2d(y, s_y, params["w2"], params["ws2"], params["b2"],
                         identity=identity)
    s_z = jnp.maximum(jnp.max(pmax_z), 1e-8) / n_act

    # quant_act_int32 + act2 (ReLU), tiled Pallas pass.
    out = quant_relu(z, s_z)

    out = out[..., :C]                                             # drop channel pad
    return jnp.transpose(out, (0, 3, 1, 2)), jnp.reshape(s_z, (1,))


if __name__ == "__main__":
    key = jax.random.PRNGKey(0)
    kx, k1, k2, k3, k4, k5, k6, k7, k8, k9, k10 = jax.random.split(key, 11)

    N, C, H, W = 2, 4, 16, 16
    x = jax.random.normal(kx, (N, C, H, W), jnp.float32)

    # conv1 / bn1 parameters (deterministic, synthetic)
    w1 = 0.2 * jax.random.normal(k1, (C, C, 3, 3), jnp.float32)
    g1 = 1.0 + 0.1 * jax.random.normal(k2, (C,), jnp.float32)
    b1 = 0.05 * jax.random.normal(k3, (C,), jnp.float32)
    m1 = 0.1 * jax.random.normal(k4, (C,), jnp.float32)
    v1 = 0.5 + 0.25 * jax.random.uniform(k5, (C,), jnp.float32)
    # conv2 / bn2 parameters
    w2 = 0.2 * jax.random.normal(k6, (C, C, 3, 3), jnp.float32)
    g2 = 1.0 + 0.1 * jax.random.normal(k7, (C,), jnp.float32)
    b2 = 0.05 * jax.random.normal(k8, (C,), jnp.float32)
    m2 = 0.1 * jax.random.normal(k9, (C,), jnp.float32)
    v2 = 0.5 + 0.25 * jax.random.uniform(k10, (C,), jnp.float32)

    Cp = _round_up(C, LANE)
    w1_2d, ws1, bias1 = prepare_convbn_params(w1, g1, b1, m1, v1, Cp)
    w2_2d, ws2, bias2 = prepare_convbn_params(w2, g2, b2, m2, v2, Cp)
    params = {"w1": w1_2d, "ws1": ws1, "b1": bias1,
              "w2": w2_2d, "ws2": ws2, "b2": bias2}

    fwd = jax.jit(functools.partial(q_resblock_bn_daq_forward, params=params))
    out, act_sf = fwd(x)
    jax.block_until_ready((out, act_sf))

    assert out.shape == (N, C, H, W), out.shape
    assert act_sf.shape == (1,), act_sf.shape
    assert bool(jnp.all(jnp.isfinite(out)))
    assert bool(jnp.all(out >= 0.0))   # final ReLU
    print("KERNEL_OK")
</pallas_src>

<mosaic_0001>
module attributes {stable_mosaic.version = 11 : i64} {
  func.func @_convbn_kernel(%arg0: i32, %arg1: i32, %arg2: memref<1xf32, #tpu.memory_space<smem>>, %arg3: memref<1x16x16x128xf32, #tpu.memory_space<vmem>>, %arg4: memref<1152x128xbf16, #tpu.memory_space<vmem>>, %arg5: memref<1x128xf32, #tpu.memory_space<vmem>>, %arg6: memref<1x128xf32, #tpu.memory_space<vmem>>, %arg7: memref<1x16x16x128xf32, #tpu.memory_space<vmem>>, %arg8: memref<1x1x1x1xf32, #tpu.memory_space<vmem>>, %arg9: memref<18x18x128xf32, #tpu.memory_space<vmem>>) attributes {dimension_semantics = [#tpu.dimension_semantics<parallel>, #tpu.dimension_semantics<arbitrary>], iteration_bounds = array<i64: 2, 1>, scalar_prefetch = 0 : i64, scratch_operands = 1 : i64, tpu.core_type = #tpu.core_type<tc>, window_params = [{transform_indices = @transform_0, window_bounds = array<i64: 1>}, {transform_indices = @transform_1, window_bounds = array<i64: 1, 16, 16, 128>}, {pipeline_mode = #tpu.pipeline_mode<synchronous>, transform_indices = @transform_2, window_bounds = array<i64: 1152, 128>}, {pipeline_mode = #tpu.pipeline_mode<synchronous>, transform_indices = @transform_3, window_bounds = array<i64: 1, 128>}, {pipeline_mode = #tpu.pipeline_mode<synchronous>, transform_indices = @transform_4, window_bounds = array<i64: 1, 128>}, {transform_indices = @transform_5, window_bounds = array<i64: 1, 16, 16, 128>}, {transform_indices = @transform_6, window_bounds = array<i64: 1, 1, 1, 1>}]} {
    %c0 = arith.constant 0 : index
    %0 = memref.load %arg2[%c0] : memref<1xf32, #tpu.memory_space<smem>>
    %cst = arith.constant 1.000000e+00 : f32
    %1 = arith.divf %cst, %0 : f32
    %c16_i32 = arith.constant 16 : i32
    %2 = arith.muli %arg1, %c16_i32 : i32
    %3 = tpu.assume_multiple %2, 16 : i32
    %c0_i32 = arith.constant 0 : i32
    %4 = arith.cmpi eq, %arg1, %c0_i32 : i32
    %5 = arith.extui %4 : i1 to i32
    %c0_i32_0 = arith.constant 0 : i32
    %6 = arith.cmpi ne, %5, %c0_i32_0 : i32
    scf.if %6 {
      %cst_79 = arith.constant 0.000000e+00 : f32
      %104 = vector.broadcast %cst_79 : f32 to vector<18x18x128xf32>
      %c0_80 = arith.constant 0 : index
      %c0_81 = arith.constant 0 : index
      %c0_82 = arith.constant 0 : index
      %105 = vector.load %arg9[%c0_80, %c0_81, %c0_82] : memref<18x18x128xf32, #tpu.memory_space<vmem>>, vector<18x18x128xf32>
      tpu.vector_store %arg9[%c0_80, %c0_81, %c0_82], %104 {strides = array<i32>} : memref<18x18x128xf32, #tpu.memory_space<vmem>>, vector<18x18x128xf32>,
    } else {
    }
    %c0_i32_1 = arith.constant 0 : i32
    %7 = arith.cmpi eq, %arg1, %c0_i32_1 : i32
    %8 = arith.extui %7 : i1 to i32
    %c0_i32_2 = arith.constant 0 : i32
    %9 = arith.cmpi ne, %8, %c0_i32_2 : i32
    scf.if %9 {
      %cst_79 = arith.constant 0.000000e+00 : f32
      %104 = vector.broadcast %cst_79 : f32 to vector<1x18x128xf32>
      %c17 = arith.constant 17 : index
      %c0_80 = arith.constant 0 : index
      %c0_81 = arith.constant 0 : index
      %105 = vector.load %arg9[%c17, %c0_80, %c0_81] : memref<18x18x128xf32, #tpu.memory_space<vmem>>, vector<1x18x128xf32>
      tpu.vector_store %arg9[%c17, %c0_80, %c0_81], %104 {strides = array<i32>} : memref<18x18x128xf32, #tpu.memory_space<vmem>>, vector<1x18x128xf32>,
    } else {
    }
    %c0_3 = arith.constant 0 : index
    %10 = arith.index_cast %3 : i32 to index
    %c0_4 = arith.constant 0 : index
    %c0_5 = arith.constant 0 : index
    %11 = vector.load %arg3[%c0_3, %10, %c0_4, %c0_5] : memref<1x16x16x128xf32, #tpu.memory_space<vmem>>, vector<1x16x16x128xf32>
    %12 = vector.shape_cast %11 : vector<1x16x16x128xf32> to vector<16x16x128xf32>
    %13 = vector.broadcast %1 : f32 to vector<16x16x128xf32>
    %14 = arith.mulf %12, %13 : vector<16x16x128xf32>
    %15 = math.roundeven %14 : vector<16x16x128xf32>
    %cst_6 = arith.constant -1.280000e+02 : f32
    %cst_7 = arith.constant 1.270000e+02 : f32
    %16 = vector.broadcast %cst_6 : f32 to vector<16x16x128xf32>
    %17 = arith.maximumf %16, %15 : vector<16x16x128xf32>
    %18 = vector.broadcast %cst_7 : f32 to vector<16x16x128xf32>
    %19 = arith.minimumf %18, %17 : vector<16x16x128xf32>
    %c1 = arith.constant 1 : index
    %c1_8 = arith.constant 1 : index
    %c0_9 = arith.constant 0 : index
    %20 = vector.load %arg9[%c1, %c1_8, %c0_9] : memref<18x18x128xf32, #tpu.memory_space<vmem>>, vector<16x16x128xf32>
    tpu.vector_store %arg9[%c1, %c1_8, %c0_9], %19 {strides = array<i32>} : memref<18x18x128xf32, #tpu.memory_space<vmem>>, vector<16x16x128xf32>,
    %c0_i32_10 = arith.constant 0 : i32
    %21 = arith.cmpi sgt, %arg1, %c0_i32_10 : i32
    %22 = arith.extui %21 : i1 to i32
    %c0_i32_11 = arith.constant 0 : i32
    %23 = arith.cmpi ne, %22, %c0_i32_11 : i32
    scf.if %23 {
      %c1_i32 = arith.constant 1 : i32
      %104 = arith.subi %3, %c1_i32 : i32
      %c0_79 = arith.constant 0 : index
      %105 = arith.index_cast %104 : i32 to index
      %c0_80 = arith.constant 0 : index
      %c0_81 = arith.constant 0 : index
      %106 = vector.load %arg3[%c0_79, %105, %c0_80, %c0_81] : memref<1x16x16x128xf32, #tpu.memory_space<vmem>>, vector<1x1x16x128xf32>
      %107 = vector.shape_cast %106 : vector<1x1x16x128xf32> to vector<1x16x128xf32>
      %108 = vector.broadcast %1 : f32 to vector<1x16x128xf32>
      %109 = arith.mulf %107, %108 : vector<1x16x128xf32>
      %110 = math.roundeven %109 : vector<1x16x128xf32>
      %cst_82 = arith.constant -1.280000e+02 : f32
      %cst_83 = arith.constant 1.270000e+02 : f32
      %111 = vector.broadcast %cst_82 : f32 to vector<1x16x128xf32>
      %112 = arith.maximumf %111, %110 : vector<1x16x128xf32>
      %113 = vector.broadcast %cst_83 : f32 to vector<1x16x128xf32>
      %114 = arith.minimumf %113, %112 : vector<1x16x128xf32>
      %c0_84 = arith.constant 0 : index
      %c1_85 = arith.constant 1 : index
      %c0_86 = arith.constant 0 : index
      %115 = vector.load %arg9[%c0_84, %c1_85, %c0_86] : memref<18x18x128xf32, #tpu.memory_space<vmem>>, vector<1x16x128xf32>
      tpu.vector_store %arg9[%c0_84, %c1_85, %c0_86], %114 {strides = array<i32>} : memref<18x18x128xf32, #tpu.memory_space<vmem>>, vector<1x16x128xf32>,
    } else {
    }
    %c0_i32_12 = arith.constant 0 : i32
    %24 = arith.cmpi slt, %arg1, %c0_i32_12 : i32
    %25 = arith.extui %24 : i1 to i32
    %c0_i32_13 = arith.constant 0 : i32
    %26 = arith.cmpi ne, %25, %c0_i32_13 : i32
    scf.if %26 {
      %c16_i32_79 = arith.constant 16 : i32
      %104 = arith.addi %3, %c16_i32_79 : i32
      %c0_80 = arith.constant 0 : index
      %105 = arith.index_cast %104 : i32 to index
      %c0_81 = arith.constant 0 : index
      %c0_82 = arith.constant 0 : index
      %106 = vector.load %arg3[%c0_80, %105, %c0_81, %c0_82] : memref<1x16x16x128xf32, #tpu.memory_space<vmem>>, vector<1x1x16x128xf32>
      %107 = vector.shape_cast %106 : vector<1x1x16x128xf32> to vector<1x16x128xf32>
      %108 = vector.broadcast %1 : f32 to vector<1x16x128xf32>
      %109 = arith.mulf %107, %108 : vector<1x16x128xf32>
      %110 = math.roundeven %109 : vector<1x16x128xf32>
      %cst_83 = arith.constant -1.280000e+02 : f32
      %cst_84 = arith.constant 1.270000e+02 : f32
      %111 = vector.broadcast %cst_83 : f32 to vector<1x16x128xf32>
      %112 = arith.maximumf %111, %110 : vector<1x16x128xf32>
      %113 = vector.broadcast %cst_84 : f32 to vector<1x16x128xf32>
      %114 = arith.minimumf %113, %112 : vector<1x16x128xf32>
      %c17 = arith.constant 17 : index
      %c1_85 = arith.constant 1 : index
      %c0_86 = arith.constant 0 : index
      %115 = vector.load %arg9[%c17, %c1_85, %c0_86] : memref<18x18x128xf32, #tpu.memory_space<vmem>>, vector<1x16x128xf32>
      tpu.vector_store %arg9[%c17, %c1_85, %c0_86], %114 {strides = array<i32>} : memref<18x18x128xf32, #tpu.memory_space<vmem>>, vector<1x16x128xf32>,
    } else {
    }
    %c0_14 = arith.constant 0 : index
    %c0_15 = arith.constant 0 : index
    %c0_16 = arith.constant 0 : index
    %27 = vector.load %arg9[%c0_14, %c0_15, %c0_16] : memref<18x18x128xf32, #tpu.memory_space<vmem>>, vector<16x16x128xf32>
    %28 = vector.shape_cast %27 : vector<16x16x128xf32> to vector<256x128xf32>
    %29 = arith.truncf %28 : vector<256x128xf32> to vector<256x128xbf16>
    %c0_17 = arith.constant 0 : index
    %c0_18 = arith.constant 0 : index
    %30 = vector.load %arg4[%c0_17, %c0_18] : memref<1152x128xbf16, #tpu.memory_space<vmem>>, vector<128x128xbf16>
    %cst_19 = arith.constant dense<0.000000e+00> : vector<256x128xf32>
    %31 = tpu.matmul %29, %30, %cst_19 {dimension_numbers = #tpu.dot_dimension_numbers<[1], [0], [0], [1], [0, 0, 1, 1], [], []>} : vector<256x128xbf16>, vector<128x128xbf16>, vector<256x128xf32> -> vector<256x128xf32>
    %c0_20 = arith.constant 0 : index
    %c1_21 = arith.constant 1 : index
    %c0_22 = arith.constant 0 : index
    %32 = vector.load %arg9[%c0_20, %c1_21, %c0_22] : memref<18x18x128xf32, #tpu.memory_space<vmem>>, vector<16x16x128xf32>
    %33 = vector.shape_cast %32 : vector<16x16x128xf32> to vector<256x128xf32>
    %34 = arith.truncf %33 : vector<256x128xf32> to vector<256x128xbf16>
    %c128 = arith.constant 128 : index
    %c0_23 = arith.constant 0 : index
    %35 = vector.load %arg4[%c128, %c0_23] : memref<1152x128xbf16, #tpu.memory_space<vmem>>, vector<128x128xbf16>
    %cst_24 = arith.constant dense<0.000000e+00> : vector<256x128xf32>
    %36 = tpu.matmul %34, %35, %cst_24 {dimension_numbers = #tpu.dot_dimension_numbers<[1], [0], [0], [1], [0, 0, 1, 1], [], []>} : vector<256x128xbf16>, vector<128x128xbf16>, vector<256x128xf32> -> vector<256x128xf32>
    %37 = arith.addf %31, %36 : vector<256x128xf32>
    %c0_25 = arith.constant 0 : index
    %c2 = arith.constant 2 : index
    %c0_26 = arith.constant 0 : index
    %38 = vector.load %arg9[%c0_25, %c2, %c0_26] : memref<18x18x128xf32, #tpu.memory_space<vmem>>, vector<16x16x128xf32>
    %39 = vector.shape_cast %38 : vector<16x16x128xf32> to vector<256x128xf32>
    %40 = arith.truncf %39 : vector<256x128xf32> to vector<256x128xbf16>
    %c256 = arith.constant 256 : index
    %c0_27 = arith.constant 0 : index
    %41 = vector.load %arg4[%c256, %c0_27] : memref<1152x128xbf16, #tpu.memory_space<vmem>>, vector<128x128xbf16>
    %cst_28 = arith.constant dense<0.000000e+00> : vector<256x128xf32>
    %42 = tpu.matmul %40, %41, %cst_28 {dimension_numbers = #tpu.dot_dimension_numbers<[1], [0], [0], [1], [0, 0, 1, 1], [], []>} : vector<256x128xbf16>, vector<128x128xbf16>, vector<256x128xf32> -> vector<256x128xf32>
    %43 = arith.addf %37, %42 : vector<256x128xf32>
    %c1_29 = arith.constant 1 : index
    %c0_30 = arith.constant 0 : index
    %c0_31 = arith.constant 0 : index
    %44 = vector.load %arg9[%c1_29, %c0_30, %c0_31] : memref<18x18x128xf32, #tpu.memory_space<vmem>>, vector<16x16x128xf32>
    %45 = vector.shape_cast %44 : vector<16x16x128xf32> to vector<256x128xf32>
    %46 = arith.truncf %45 : vector<256x128xf32> to vector<256x128xbf16>
    %c384 = arith.constant 384 : index
    %c0_32 = arith.constant 0 : index
    %47 = vector.load %arg4[%c384, %c0_32] : memref<1152x128xbf16, #tpu.memory_space<vmem>>, vector<128x128xbf16>
    %cst_33 = arith.constant dense<0.000000e+00> : vector<256x128xf32>
    %48 = tpu.matmul %46, %47, %cst_33 {dimension_numbers = #tpu.dot_dimension_numbers<[1], [0], [0], [1], [0, 0, 1, 1], [], []>} : vector<256x128xbf16>, vector<128x128xbf16>, vector<256x128xf32> -> vector<256x128xf32>
    %49 = arith.addf %43, %48 : vector<256x128xf32>
    %c1_34 = arith.constant 1 : index
    %c1_35 = arith.constant 1 : index
    %c0_36 = arith.constant 0 : index
    %50 = vector.load %arg9[%c1_34, %c1_35, %c0_36] : memref<18x18x128xf32, #tpu.memory_space<vmem>>, vector<16x16x128xf32>
    %51 = vector.shape_cast %50 : vector<16x16x128xf32> to vector<256x128xf32>
    %52 = arith.truncf %51 : vector<256x128xf32> to vector<256x128xbf16>
    %c512 = arith.constant 512 : index
    %c0_37 = arith.constant 0 : index
    %53 = vector.load %arg4[%c512, %c0_37] : memref<1152x128xbf16, #tpu.memory_space<vmem>>, vector<128x128xbf16>
    %cst_38 = arith.constant dense<0.000000e+00> : vector<256x128xf32>
    %54 = tpu.matmul %52, %53, %cst_38 {dimension_numbers = #tpu.dot_dimension_numbers<[1], [0], [0], [1], [0, 0, 1, 1], [], []>} : vector<256x128xbf16>, vector<128x128xbf16>, vector<256x128xf32> -> vector<256x128xf32>
    %55 = arith.addf %49, %54 : vector<256x128xf32>
    %c1_39 = arith.constant 1 : index
    %c2_40 = arith.constant 2 : index
    %c0_41 = arith.constant 0 : index
    %56 = vector.load %arg9[%c1_39, %c2_40, %c0_41] : memref<18x18x128xf32, #tpu.memory_space<vmem>>, vector<16x16x128xf32>
    %57 = vector.shape_cast %56 : vector<16x16x128xf32> to vector<256x128xf32>
    %58 = arith.truncf %57 : vector<256x128xf32> to vector<256x128xbf16>
    %c640 = arith.constant 640 : index
    %c0_42 = arith.constant 0 : index
    %59 = vector.load %arg4[%c640, %c0_42] : memref<1152x128xbf16, #tpu.memory_space<vmem>>, vector<128x128xbf16>
    %cst_43 = arith.constant dense<0.000000e+00> : vector<256x128xf32>
    %60 = tpu.matmul %58, %59, %cst_43 {dimension_numbers = #tpu.dot_dimension_numbers<[1], [0], [0], [1], [0, 0, 1, 1], [], []>} : vector<256x128xbf16>, vector<128x128xbf16>, vector<256x128xf32> -> vector<256x128xf32>
    %61 = arith.addf %55, %60 : vector<256x128xf32>
    %c2_44 = arith.constant 2 : index
    %c0_45 = arith.constant 0 : index
    %c0_46 = arith.constant 0 : index
    %62 = vector.load %arg9[%c2_44, %c0_45, %c0_46] : memref<18x18x128xf32, #tpu.memory_space<vmem>>, vector<16x16x128xf32>
    %63 = vector.shape_cast %62 : vector<16x16x128xf32> to vector<256x128xf32>
    %64 = arith.truncf %63 : vector<256x128xf32> to vector<256x128xbf16>
    %c768 = arith.constant 768 : index
    %c0_47 = arith.constant 0 : index
    %65 = vector.load %arg4[%c768, %c0_47] : memref<1152x128xbf16, #tpu.memory_space<vmem>>, vector<128x128xbf16>
    %cst_48 = arith.constant dense<0.000000e+00> : vector<256x128xf32>
    %66 = tpu.matmul %64, %65, %cst_48 {dimension_numbers = #tpu.dot_dimension_numbers<[1], [0], [0], [1], [0, 0, 1, 1], [], []>} : vector<256x128xbf16>, vector<128x128xbf16>, vector<256x128xf32> -> vector<256x128xf32>
    %67 = arith.addf %61, %66 : vector<256x128xf32>
    %c2_49 = arith.constant 2 : index
    %c1_50 = arith.constant 1 : index
    %c0_51 = arith.constant 0 : index
    %68 = vector.load %arg9[%c2_49, %c1_50, %c0_51] : memref<18x18x128xf32, #tpu.memory_space<vmem>>, vector<16x16x128xf32>
    %69 = vector.shape_cast %68 : vector<16x16x128xf32> to vector<256x128xf32>
    %70 = arith.truncf %69 : vector<256x128xf32> to vector<256x128xbf16>
    %c896 = arith.constant 896 : index
    %c0_52 = arith.constant 0 : index
    %71 = vector.load %arg4[%c896, %c0_52] : memref<1152x128xbf16, #tpu.memory_space<vmem>>, vector<128x128xbf16>
    %cst_53 = arith.constant dense<0.000000e+00> : vector<256x128xf32>
    %72 = tpu.matmul %70, %71, %cst_53 {dimension_numbers = #tpu.dot_dimension_numbers<[1], [0], [0], [1], [0, 0, 1, 1], [], []>} : vector<256x128xbf16>, vector<128x128xbf16>, vector<256x128xf32> -> vector<256x128xf32>
    %73 = arith.addf %67, %72 : vector<256x128xf32>
    %c2_54 = arith.constant 2 : index
    %c2_55 = arith.constant 2 : index
    %c0_56 = arith.constant 0 : index
    %74 = vector.load %arg9[%c2_54, %c2_55, %c0_56] : memref<18x18x128xf32, #tpu.memory_space<vmem>>, vector<16x16x128xf32>
    %75 = vector.shape_cast %74 : vector<16x16x128xf32> to vector<256x128xf32>
    %76 = arith.truncf %75 : vector<256x128xf32> to vector<256x128xbf16>
    %c1024 = arith.constant 1024 : index
    %c0_57 = arith.constant 0 : index
    %77 = vector.load %arg4[%c1024, %c0_57] : memref<1152x128xbf16, #tpu.memory_space<vmem>>, vector<128x128xbf16>
    %cst_58 = arith.constant dense<0.000000e+00> : vector<256x128xf32>
    %78 = tpu.matmul %76, %77, %cst_58 {dimension_numbers = #tpu.dot_dimension_numbers<[1], [0], [0], [1], [0, 0, 1, 1], [], []>} : vector<256x128xbf16>, vector<128x128xbf16>, vector<256x128xf32> -> vector<256x128xf32>
    %79 = arith.addf %73, %78 : vector<256x128xf32>
    %c0_59 = arith.constant 0 : index
    %c0_60 = arith.constant 0 : index
    %80 = vector.load %arg5[%c0_59, %c0_60] : memref<1x128xf32, #tpu.memory_space<vmem>>, vector<1x128xf32>
    %81 = vector.broadcast %0 : f32 to vector<1x128xf32>
    %82 = arith.mulf %81, %80 : vector<1x128xf32>
    %83 = vector.broadcast %82 : vector<1x128xf32> to vector<256x128xf32>
    %84 = arith.mulf %79, %83 : vector<256x128xf32>
    %c0_61 = arith.constant 0 : index
    %c0_62 = arith.constant 0 : index
    %85 = vector.load %arg6[%c0_61, %c0_62] : memref<1x128xf32, #tpu.memory_space<vmem>>, vector<1x128xf32>
    %86 = vector.broadcast %85 : vector<1x128xf32> to vector<256x128xf32>
    %87 = arith.addf %84, %86 : vector<256x128xf32>
    %cst_63 = arith.constant 0.000000e+00 : f32
    %88 = vector.broadcast %cst_63 : f32 to vector<256x128xf32>
    %89 = arith.maximumf %87, %88 : vector<256x128xf32>
    %90 = vector.shape_cast %89 : vector<256x128xf32> to vector<1x16x16x128xf32>
    %c0_i32_64 = arith.constant 0 : i32
    %91 = arith.cmpi eq, %arg1, %c0_i32_64 : i32
    %92 = arith.extui %91 : i1 to i32
    %c0_i32_65 = arith.constant 0 : i32
    %93 = arith.cmpi ne, %92, %c0_i32_65 : i32
    scf.if %93 {
      %cst_79 = arith.constant 0.000000e+00 : f32
      %104 = vector.broadcast %cst_79 : f32 to vector<1x1x1x1xf32>
      %c0_80 = arith.constant 0 : index
      %c0_81 = arith.constant 0 : index
      %c0_82 = arith.constant 0 : index
      %c0_83 = arith.constant 0 : index
      %105 = vector.load %arg8[%c0_80, %c0_81, %c0_82, %c0_83] : memref<1x1x1x1xf32, #tpu.memory_space<vmem>>, vector<1x1x1x1xf32>
      tpu.vector_store %arg8[%c0_80, %c0_81, %c0_82, %c0_83], %104 {strides = array<i32>} : memref<1x1x1x1xf32, #tpu.memory_space<vmem>>, vector<1x1x1x1xf32>,
    } else {
    }
    %c0_66 = arith.constant 0 : index
    %c0_67 = arith.constant 0 : index
    %c0_68 = arith.constant 0 : index
    %c0_69 = arith.constant 0 : index
    %94 = vector.load %arg8[%c0_66, %c0_67, %c0_68, %c0_69] : memref<1x1x1x1xf32, #tpu.memory_space<vmem>>, vector<1x1x1x1xf32>
    %95 = math.absf %90 : vector<1x16x16x128xf32>
    %96 = vector.shape_cast %95 : vector<1x16x16x128xf32> to vector<1x1x16x16x128xf32>
    %cst_70 = arith.constant dense<0xFF800000> : vector<1xf32>
    %97 = vector.multi_reduction <maximumf>, %96, %cst_70 [1, 2, 3, 4] : vector<1x1x16x16x128xf32> to vector<1xf32>
    %98 = vector.shape_cast %97 : vector<1xf32> to vector<1x1x1x1x1xf32>
    %99 = vector.extract %98[0, 0, 0, 0, 0] : f32 from vector<1x1x1x1x1xf32>
    %100 = vector.broadcast %99 : f32 to vector<1x1x1x1xf32>
    %101 = arith.maximumf %94, %100 : vector<1x1x1x1xf32>
    %c0_71 = arith.constant 0 : index
    %c0_72 = arith.constant 0 : index
    %c0_73 = arith.constant 0 : index
    %c0_74 = arith.constant 0 : index
    %102 = vector.load %arg8[%c0_71, %c0_72, %c0_73, %c0_74] : memref<1x1x1x1xf32, #tpu.memory_space<vmem>>, vector<1x1x1x1xf32>
    tpu.vector_store %arg8[%c0_71, %c0_72, %c0_73, %c0_74], %101 {strides = array<i32>} : memref<1x1x1x1xf32, #tpu.memory_space<vmem>>, vector<1x1x1x1xf32>,
    %c0_75 = arith.constant 0 : index
    %c0_76 = arith.constant 0 : index
    %c0_77 = arith.constant 0 : index
    %c0_78 = arith.constant 0 : index
    %103 = vector.load %arg7[%c0_75, %c0_76, %c0_77, %c0_78] : memref<1x16x16x128xf32, #tpu.memory_space<vmem>>, vector<1x16x16x128xf32>
    tpu.vector_store %arg7[%c0_75, %c0_76, %c0_77, %c0_78], %90 {strides = array<i32>} : memref<1x16x16x128xf32, #tpu.memory_space<vmem>>, vector<1x16x16x128xf32>,
    return
  }
  func.func @transform_0(%arg0: i32, %arg1: i32) -> i32 {
    %c0_i32 = arith.constant 0 : i32
    %c0_i32_0 = arith.constant 0 : i32
    return %c0_i32 : i32
  }
  func.func @transform_1(%arg0: i32, %arg1: i32) -> (i32, i32, i32, i32) {
    %c0_i32 = arith.constant 0 : i32
    %c0_i32_0 = arith.constant 0 : i32
    %c0_i32_1 = arith.constant 0 : i32
    %c0_i32_2 = arith.constant 0 : i32
    return %arg0, %c0_i32, %c0_i32_0, %c0_i32_1 : i32, i32, i32, i32
  }
  func.func @transform_2(%arg0: i32, %arg1: i32) -> (i32, i32) {
    %c0_i32 = arith.constant 0 : i32
    %c0_i32_0 = arith.constant 0 : i32
    %c0_i32_1 = arith.constant 0 : i32
    return %c0_i32, %c0_i32_0 : i32, i32
  }
  func.func @transform_3(%arg0: i32, %arg1: i32) -> (i32, i32) {
    %c0_i32 = arith.constant 0 : i32
    %c0_i32_0 = arith.constant 0 : i32
    %c0_i32_1 = arith.constant 0 : i32
    return %c0_i32, %c0_i32_0 : i32, i32
  }
  func.func @transform_4(%arg0: i32, %arg1: i32) -> (i32, i32) {
    %c0_i32 = arith.constant 0 : i32
    %c0_i32_0 = arith.constant 0 : i32
    %c0_i32_1 = arith.constant 0 : i32
    return %c0_i32, %c0_i32_0 : i32, i32
  }
  func.func @transform_5(%arg0: i32, %arg1: i32) -> (i32, i32, i32, i32) {
    %c0_i32 = arith.constant 0 : i32
    %c0_i32_0 = arith.constant 0 : i32
    %c0_i32_1 = arith.constant 0 : i32
    return %arg0, %arg1, %c0_i32, %c0_i32_0 : i32, i32, i32, i32
  }
  func.func @transform_6(%arg0: i32, %arg1: i32) -> (i32, i32, i32, i32) {
    %c0_i32 = arith.constant 0 : i32
    %c0_i32_0 = arith.constant 0 : i32
    %c0_i32_1 = arith.constant 0 : i32
    %c0_i32_2 = arith.constant 0 : i32
    return %arg0, %c0_i32, %c0_i32_0, %c0_i32_1 : i32, i32, i32, i32
  }
}

module attributes {stable_mosaic.version = 11 : i64} {
  func.func @_quant_relu_kernel(%arg0: i32, %arg1: i32, %arg2: memref<1xf32, #tpu.memory_space<smem>>, %arg3: memref<1x16x16x128xf32, #tpu.memory_space<vmem>>, %arg4: memref<1x16x16x128xf32, #tpu.memory_space<vmem>>) attributes {dimension_semantics = [#tpu.dimension_semantics<parallel>, #tpu.dimension_semantics<parallel>], iteration_bounds = array<i64: 2, 1>, scalar_prefetch = 0 : i64, scratch_operands = 0 : i64, tpu.core_type = #tpu.core_type<tc>, window_params = [{transform_indices = @transform_0, window_bounds = array<i64: 1>}, {transform_indices = @transform_1, window_bounds = array<i64: 1, 16, 16, 128>}, {transform_indices = @transform_2, window_bounds = array<i64: 1, 16, 16, 128>}]} {
    %c0 = arith.constant 0 : index
    %0 = memref.load %arg2[%c0] : memref<1xf32, #tpu.memory_space<smem>>
    %cst = arith.constant 1.000000e+00 : f32
    %1 = arith.divf %cst, %0 : f32
    %c0_0 = arith.constant 0 : index
    %c0_1 = arith.constant 0 : index
    %c0_2 = arith.constant 0 : index
    %c0_3 = arith.constant 0 : index
    %2 = vector.load %arg3[%c0_0, %c0_1, %c0_2, %c0_3] : memref<1x16x16x128xf32, #tpu.memory_space<vmem>>, vector<1x16x16x128xf32>
    %3 = vector.broadcast %1 : f32 to vector<1x16x16x128xf32>
    %4 = arith.mulf %2, %3 : vector<1x16x16x128xf32>
    %5 = math.roundeven %4 : vector<1x16x16x128xf32>
    %cst_4 = arith.constant -1.280000e+02 : f32
    %cst_5 = arith.constant 1.270000e+02 : f32
    %6 = vector.broadcast %cst_4 : f32 to vector<1x16x16x128xf32>
    %7 = arith.maximumf %6, %5 : vector<1x16x16x128xf32>
    %8 = vector.broadcast %cst_5 : f32 to vector<1x16x16x128xf32>
    %9 = arith.minimumf %8, %7 : vector<1x16x16x128xf32>
    %10 = vector.broadcast %0 : f32 to vector<1x16x16x128xf32>
    %11 = arith.mulf %9, %10 : vector<1x16x16x128xf32>
    %cst_6 = arith.constant 0.000000e+00 : f32
    %12 = vector.broadcast %cst_6 : f32 to vector<1x16x16x128xf32>
    %13 = arith.maximumf %11, %12 : vector<1x16x16x128xf32>
    %c0_7 = arith.constant 0 : index
    %c0_8 = arith.constant 0 : index
    %c0_9 = arith.constant 0 : index
    %c0_10 = arith.constant 0 : index
    %14 = vector.load %arg4[%c0_7, %c0_8, %c0_9, %c0_10] : memref<1x16x16x128xf32, #tpu.memory_space<vmem>>, vector<1x16x16x128xf32>
    tpu.vector_store %arg4[%c0_7, %c0_8, %c0_9, %c0_10], %13 {strides = array<i32>} : memref<1x16x16x128xf32, #tpu.memory_space<vmem>>, vector<1x16x16x128xf32>,
    return
  }
  func.func @transform_0(%arg0: i32, %arg1: i32) -> i32 {
    %c0_i32 = arith.constant 0 : i32
    %c0_i32_0 = arith.constant 0 : i32
    return %c0_i32 : i32
  }
  func.func @transform_1(%arg0: i32, %arg1: i32) -> (i32, i32, i32, i32) {
    %c0_i32 = arith.constant 0 : i32
    %c0_i32_0 = arith.constant 0 : i32
    %c0_i32_1 = arith.constant 0 : i32
    return %arg0, %arg1, %c0_i32, %c0_i32_0 : i32, i32, i32, i32
  }
  func.func @transform_2(%arg0: i32, %arg1: i32) -> (i32, i32, i32, i32) {
    %c0_i32 = arith.constant 0 : i32
    %c0_i32_0 = arith.constant 0 : i32
    %c0_i32_1 = arith.constant 0 : i32
    return %arg0, %arg1, %c0_i32, %c0_i32_0 : i32, i32, i32, i32
  }
}

module attributes {stable_mosaic.version = 11 : i64} {
  func.func @_convbn_kernel(%arg0: i32, %arg1: i32, %arg2: memref<1xf32, #tpu.memory_space<smem>>, %arg3: memref<1x16x16x128xf32, #tpu.memory_space<vmem>>, %arg4: memref<1152x128xbf16, #tpu.memory_space<vmem>>, %arg5: memref<1x128xf32, #tpu.memory_space<vmem>>, %arg6: memref<1x128xf32, #tpu.memory_space<vmem>>, %arg7: memref<1x16x16x128xf32, #tpu.memory_space<vmem>>, %arg8: memref<1x16x16x128xf32, #tpu.memory_space<vmem>>, %arg9: memref<1x1x1x1xf32, #tpu.memory_space<vmem>>, %arg10: memref<18x18x128xf32, #tpu.memory_space<vmem>>) attributes {dimension_semantics = [#tpu.dimension_semantics<parallel>, #tpu.dimension_semantics<arbitrary>], iteration_bounds = array<i64: 2, 1>, scalar_prefetch = 0 : i64, scratch_operands = 1 : i64, tpu.core_type = #tpu.core_type<tc>, window_params = [{transform_indices = @transform_0, window_bounds = array<i64: 1>}, {transform_indices = @transform_1, window_bounds = array<i64: 1, 16, 16, 128>}, {pipeline_mode = #tpu.pipeline_mode<synchronous>, transform_indices = @transform_2, window_bounds = array<i64: 1152, 128>}, {pipeline_mode = #tpu.pipeline_mode<synchronous>, transform_indices = @transform_3, window_bounds = array<i64: 1, 128>}, {pipeline_mode = #tpu.pipeline_mode<synchronous>, transform_indices = @transform_4, window_bounds = array<i64: 1, 128>}, {transform_indices = @transform_5, window_bounds = array<i64: 1, 16, 16, 128>}, {transform_indices = @transform_6, window_bounds = array<i64: 1, 16, 16, 128>}, {transform_indices = @transform_7, window_bounds = array<i64: 1, 1, 1, 1>}]} {
    %c0 = arith.constant 0 : index
    %0 = memref.load %arg2[%c0] : memref<1xf32, #tpu.memory_space<smem>>
    %cst = arith.constant 1.000000e+00 : f32
    %1 = arith.divf %cst, %0 : f32
    %c16_i32 = arith.constant 16 : i32
    %2 = arith.muli %arg1, %c16_i32 : i32
    %3 = tpu.assume_multiple %2, 16 : i32
    %c0_i32 = arith.constant 0 : i32
    %4 = arith.cmpi eq, %arg1, %c0_i32 : i32
    %5 = arith.extui %4 : i1 to i32
    %c0_i32_0 = arith.constant 0 : i32
    %6 = arith.cmpi ne, %5, %c0_i32_0 : i32
    scf.if %6 {
      %cst_82 = arith.constant 0.000000e+00 : f32
      %104 = vector.broadcast %cst_82 : f32 to vector<18x18x128xf32>
      %c0_83 = arith.constant 0 : index
      %c0_84 = arith.constant 0 : index
      %c0_85 = arith.constant 0 : index
      %105 = vector.load %arg10[%c0_83, %c0_84, %c0_85] : memref<18x18x128xf32, #tpu.memory_space<vmem>>, vector<18x18x128xf32>
      tpu.vector_store %arg10[%c0_83, %c0_84, %c0_85], %104 {strides = array<i32>} : memref<18x18x128xf32, #tpu.memory_space<vmem>>, vector<18x18x128xf32>,
    } else {
    }
    %c0_i32_1 = arith.constant 0 : i32
    %7 = arith.cmpi eq, %arg1, %c0_i32_1 : i32
    %8 = arith.extui %7 : i1 to i32
    %c0_i32_2 = arith.constant 0 : i32
    %9 = arith.cmpi ne, %8, %c0_i32_2 : i32
    scf.if %9 {
      %cst_82 = arith.constant 0.000000e+00 : f32
      %104 = vector.broadcast %cst_82 : f32 to vector<1x18x128xf32>
      %c17 = arith.constant 17 : index
      %c0_83 = arith.constant 0 : index
      %c0_84 = arith.constant 0 : index
      %105 = vector.load %arg10[%c17, %c0_83, %c0_84] : memref<18x18x128xf32, #tpu.memory_space<vmem>>, vector<1x18x128xf32>
      tpu.vector_store %arg10[%c17, %c0_83, %c0_84], %104 {strides = array<i32>} : memref<18x18x128xf32, #tpu.memory_space<vmem>>, vector<1x18x128xf32>,
    } else {
    }
    %c0_3 = arith.constant 0 : index
    %10 = arith.index_cast %3 : i32 to index
    %c0_4 = arith.constant 0 : index
    %c0_5 = arith.constant 0 : index
    %11 = vector.load %arg3[%c0_3, %10, %c0_4, %c0_5] : memref<1x16x16x128xf32, #tpu.memory_space<vmem>>, vector<1x16x16x128xf32>
    %12 = vector.shape_cast %11 : vector<1x16x16x128xf32> to vector<16x16x128xf32>
    %13 = vector.broadcast %1 : f32 to vector<16x16x128xf32>
    %14 = arith.mulf %12, %13 : vector<16x16x128xf32>
    %15 = math.roundeven %14 : vector<16x16x128xf32>
    %cst_6 = arith.constant -1.280000e+02 : f32
    %cst_7 = arith.constant 1.270000e+02 : f32
    %16 = vector.broadcast %cst_6 : f32 to vector<16x16x128xf32>
    %17 = arith.maximumf %16, %15 : vector<16x16x128xf32>
    %18 = vector.broadcast %cst_7 : f32 to vector<16x16x128xf32>
    %19 = arith.minimumf %18, %17 : vector<16x16x128xf32>
    %c1 = arith.constant 1 : index
    %c1_8 = arith.constant 1 : index
    %c0_9 = arith.constant 0 : index
    %20 = vector.load %arg10[%c1, %c1_8, %c0_9] : memref<18x18x128xf32, #tpu.memory_space<vmem>>, vector<16x16x128xf32>
    tpu.vector_store %arg10[%c1, %c1_8, %c0_9], %19 {strides = array<i32>} : memref<18x18x128xf32, #tpu.memory_space<vmem>>, vector<16x16x128xf32>,
    %c0_i32_10 = arith.constant 0 : i32
    %21 = arith.cmpi sgt, %arg1, %c0_i32_10 : i32
    %22 = arith.extui %21 : i1 to i32
    %c0_i32_11 = arith.constant 0 : i32
    %23 = arith.cmpi ne, %22, %c0_i32_11 : i32
    scf.if %23 {
      %c1_i32 = arith.constant 1 : i32
      %104 = arith.subi %3, %c1_i32 : i32
      %c0_82 = arith.constant 0 : index
      %105 = arith.index_cast %104 : i32 to index
      %c0_83 = arith.constant 0 : index
      %c0_84 = arith.constant 0 : index
      %106 = vector.load %arg3[%c0_82, %105, %c0_83, %c0_84] : memref<1x16x16x128xf32, #tpu.memory_space<vmem>>, vector<1x1x16x128xf32>
      %107 = vector.shape_cast %106 : vector<1x1x16x128xf32> to vector<1x16x128xf32>
      %108 = vector.broadcast %1 : f32 to vector<1x16x128xf32>
      %109 = arith.mulf %107, %108 : vector<1x16x128xf32>
      %110 = math.roundeven %109 : vector<1x16x128xf32>
      %cst_85 = arith.constant -1.280000e+02 : f32
      %cst_86 = arith.constant 1.270000e+02 : f32
      %111 = vector.broadcast %cst_85 : f32 to vector<1x16x128xf32>
      %112 = arith.maximumf %111, %110 : vector<1x16x128xf32>
      %113 = vector.broadcast %cst_86 : f32 to vector<1x16x128xf32>
      %114 = arith.minimumf %113, %112 : vector<1x16x128xf32>
      %c0_87 = arith.constant 0 : index
      %c1_88 = arith.constant 1 : index
      %c0_89 = arith.constant 0 : index
      %115 = vector.load %arg10[%c0_87, %c1_88, %c0_89] : memref<18x18x128xf32, #tpu.memory_space<vmem>>, vector<1x16x128xf32>
      tpu.vector_store %arg10[%c0_87, %c1_88, %c0_89], %114 {strides = array<i32>} : memref<18x18x128xf32, #tpu.memory_space<vmem>>, vector<1x16x128xf32>,
    } else {
    }
    %c0_i32_12 = arith.constant 0 : i32
    %24 = arith.cmpi slt, %arg1, %c0_i32_12 : i32
    %25 = arith.extui %24 : i1 to i32
    %c0_i32_13 = arith.constant 0 : i32
    %26 = arith.cmpi ne, %25, %c0_i32_13 : i32
    scf.if %26 {
      %c16_i32_82 = arith.constant 16 : i32
      %104 = arith.addi %3, %c16_i32_82 : i32
      %c0_83 = arith.constant 0 : index
      %105 = arith.index_cast %104 : i32 to index
      %c0_84 = arith.constant 0 : index
      %c0_85 = arith.constant 0 : index
      %106 = vector.load %arg3[%c0_83, %105, %c0_84, %c0_85] : memref<1x16x16x128xf32, #tpu.memory_space<vmem>>, vector<1x1x16x128xf32>
      %107 = vector.shape_cast %106 : vector<1x1x16x128xf32> to vector<1x16x128xf32>
      %108 = vector.broadcast %1 : f32 to vector<1x16x128xf32>
      %109 = arith.mulf %107, %108 : vector<1x16x128xf32>
      %110 = math.roundeven %109 : vector<1x16x128xf32>
      %cst_86 = arith.constant -1.280000e+02 : f32
      %cst_87 = arith.constant 1.270000e+02 : f32
      %111 = vector.broadcast %cst_86 : f32 to vector<1x16x128xf32>
      %112 = arith.maximumf %111, %110 : vector<1x16x128xf32>
      %113 = vector.broadcast %cst_87 : f32 to vector<1x16x128xf32>
      %114 = arith.minimumf %113, %112 : vector<1x16x128xf32>
      %c17 = arith.constant 17 : index
      %c1_88 = arith.constant 1 : index
      %c0_89 = arith.constant 0 : index
      %115 = vector.load %arg10[%c17, %c1_88, %c0_89] : memref<18x18x128xf32, #tpu.memory_space<vmem>>, vector<1x16x128xf32>
      tpu.vector_store %arg10[%c17, %c1_88, %c0_89], %114 {strides = array<i32>} : memref<18x18x128xf32, #tpu.memory_space<vmem>>, vector<1x16x128xf32>,
    } else {
    }
    %c0_14 = arith.constant 0 : index
    %c0_15 = arith.constant 0 : index
    %c0_16 = arith.constant 0 : index
    %27 = vector.load %arg10[%c0_14, %c0_15, %c0_16] : memref<18x18x128xf32, #tpu.memory_space<vmem>>, vector<16x16x128xf32>
    %28 = vector.shape_cast %27 : vector<16x16x128xf32> to vector<256x128xf32>
    %29 = arith.truncf %28 : vector<256x128xf32> to vector<256x128xbf16>
    %c0_17 = arith.constant 0 : index
    %c0_18 = arith.constant 0 : index
    %30 = vector.load %arg4[%c0_17, %c0_18] : memref<1152x128xbf16, #tpu.memory_space<vmem>>, vector<128x128xbf16>
    %cst_19 = arith.constant dense<0.000000e+00> : vector<256x128xf32>
    %31 = tpu.matmul %29, %30, %cst_19 {dimension_numbers = #tpu.dot_dimension_numbers<[1], [0], [0], [1], [0, 0, 1, 1], [], []>} : vector<256x128xbf16>, vector<128x128xbf16>, vector<256x128xf32> -> vector<256x128xf32>
    %c0_20 = arith.constant 0 : index
    %c1_21 = arith.constant 1 : index
    %c0_22 = arith.constant 0 : index
    %32 = vector.load %arg10[%c0_20, %c1_21, %c0_22] : memref<18x18x128xf32, #tpu.memory_space<vmem>>, vector<16x16x128xf32>
    %33 = vector.shape_cast %32 : vector<16x16x128xf32> to vector<256x128xf32>
    %34 = arith.truncf %33 : vector<256x128xf32> to vector<256x128xbf16>
    %c128 = arith.constant 128 : index
    %c0_23 = arith.constant 0 : index
    %35 = vector.load %arg4[%c128, %c0_23] : memref<1152x128xbf16, #tpu.memory_space<vmem>>, vector<128x128xbf16>
    %cst_24 = arith.constant dense<0.000000e+00> : vector<256x128xf32>
    %36 = tpu.matmul %34, %35, %cst_24 {dimension_numbers = #tpu.dot_dimension_numbers<[1], [0], [0], [1], [0, 0, 1, 1], [], []>} : vector<256x128xbf16>, vector<128x128xbf16>, vector<256x128xf32> -> vector<256x128xf32>
    %37 = arith.addf %31, %36 : vector<256x128xf32>
    %c0_25 = arith.constant 0 : index
    %c2 = arith.constant 2 : index
    %c0_26 = arith.constant 0 : index
    %38 = vector.load %arg10[%c0_25, %c2, %c0_26] : memref<18x18x128xf32, #tpu.memory_space<vmem>>, vector<16x16x128xf32>
    %39 = vector.shape_cast %38 : vector<16x16x128xf32> to vector<256x128xf32>
    %40 = arith.truncf %39 : vector<256x128xf32> to vector<256x128xbf16>
    %c256 = arith.constant 256 : index
    %c0_27 = arith.constant 0 : index
    %41 = vector.load %arg4[%c256, %c0_27] : memref<1152x128xbf16, #tpu.memory_space<vmem>>, vector<128x128xbf16>
    %cst_28 = arith.constant dense<0.000000e+00> : vector<256x128xf32>
    %42 = tpu.matmul %40, %41, %cst_28 {dimension_numbers = #tpu.dot_dimension_numbers<[1], [0], [0], [1], [0, 0, 1, 1], [], []>} : vector<256x128xbf16>, vector<128x128xbf16>, vector<256x128xf32> -> vector<256x128xf32>
    %43 = arith.addf %37, %42 : vector<256x128xf32>
    %c1_29 = arith.constant 1 : index
    %c0_30 = arith.constant 0 : index
    %c0_31 = arith.constant 0 : index
    %44 = vector.load %arg10[%c1_29, %c0_30, %c0_31] : memref<18x18x128xf32, #tpu.memory_space<vmem>>, vector<16x16x128xf32>
    %45 = vector.shape_cast %44 : vector<16x16x128xf32> to vector<256x128xf32>
    %46 = arith.truncf %45 : vector<256x128xf32> to vector<256x128xbf16>
    %c384 = arith.constant 384 : index
    %c0_32 = arith.constant 0 : index
    %47 = vector.load %arg4[%c384, %c0_32] : memref<1152x128xbf16, #tpu.memory_space<vmem>>, vector<128x128xbf16>
    %cst_33 = arith.constant dense<0.000000e+00> : vector<256x128xf32>
    %48 = tpu.matmul %46, %47, %cst_33 {dimension_numbers = #tpu.dot_dimension_numbers<[1], [0], [0], [1], [0, 0, 1, 1], [], []>} : vector<256x128xbf16>, vector<128x128xbf16>, vector<256x128xf32> -> vector<256x128xf32>
    %49 = arith.addf %43, %48 : vector<256x128xf32>
    %c1_34 = arith.constant 1 : index
    %c1_35 = arith.constant 1 : index
    %c0_36 = arith.constant 0 : index
    %50 = vector.load %arg10[%c1_34, %c1_35, %c0_36] : memref<18x18x128xf32, #tpu.memory_space<vmem>>, vector<16x16x128xf32>
    %51 = vector.shape_cast %50 : vector<16x16x128xf32> to vector<256x128xf32>
    %52 = arith.truncf %51 : vector<256x128xf32> to vector<256x128xbf16>
    %c512 = arith.constant 512 : index
    %c0_37 = arith.constant 0 : index
    %53 = vector.load %arg4[%c512, %c0_37] : memref<1152x128xbf16, #tpu.memory_space<vmem>>, vector<128x128xbf16>
    %cst_38 = arith.constant dense<0.000000e+00> : vector<256x128xf32>
    %54 = tpu.matmul %52, %53, %cst_38 {dimension_numbers = #tpu.dot_dimension_numbers<[1], [0], [0], [1], [0, 0, 1, 1], [], []>} : vector<256x128xbf16>, vector<128x128xbf16>, vector<256x128xf32> -> vector<256x128xf32>
    %55 = arith.addf %49, %54 : vector<256x128xf32>
    %c1_39 = arith.constant 1 : index
    %c2_40 = arith.constant 2 : index
    %c0_41 = arith.constant 0 : index
    %56 = vector.load %arg10[%c1_39, %c2_40, %c0_41] : memref<18x18x128xf32, #tpu.memory_space<vmem>>, vector<16x16x128xf32>
    %57 = vector.shape_cast %56 : vector<16x16x128xf32> to vector<256x128xf32>
    %58 = arith.truncf %57 : vector<256x128xf32> to vector<256x128xbf16>
    %c640 = arith.constant 640 : index
    %c0_42 = arith.constant 0 : index
    %59 = vector.load %arg4[%c640, %c0_42] : memref<1152x128xbf16, #tpu.memory_space<vmem>>, vector<128x128xbf16>
    %cst_43 = arith.constant dense<0.000000e+00> : vector<256x128xf32>
    %60 = tpu.matmul %58, %59, %cst_43 {dimension_numbers = #tpu.dot_dimension_numbers<[1], [0], [0], [1], [0, 0, 1, 1], [], []>} : vector<256x128xbf16>, vector<128x128xbf16>, vector<256x128xf32> -> vector<256x128xf32>
    %61 = arith.addf %55, %60 : vector<256x128xf32>
    %c2_44 = arith.constant 2 : index
    %c0_45 = arith.constant 0 : index
    %c0_46 = arith.constant 0 : index
    %62 = vector.load %arg10[%c2_44, %c0_45, %c0_46] : memref<18x18x128xf32, #tpu.memory_space<vmem>>, vector<16x16x128xf32>
    %63 = vector.shape_cast %62 : vector<16x16x128xf32> to vector<256x128xf32>
    %64 = arith.truncf %63 : vector<256x128xf32> to vector<256x128xbf16>
    %c768 = arith.constant 768 : index
    %c0_47 = arith.constant 0 : index
    %65 = vector.load %arg4[%c768, %c0_47] : memref<1152x128xbf16, #tpu.memory_space<vmem>>, vector<128x128xbf16>
    %cst_48 = arith.constant dense<0.000000e+00> : vector<256x128xf32>
    %66 = tpu.matmul %64, %65, %cst_48 {dimension_numbers = #tpu.dot_dimension_numbers<[1], [0], [0], [1], [0, 0, 1, 1], [], []>} : vector<256x128xbf16>, vector<128x128xbf16>, vector<256x128xf32> -> vector<256x128xf32>
    %67 = arith.addf %61, %66 : vector<256x128xf32>
    %c2_49 = arith.constant 2 : index
    %c1_50 = arith.constant 1 : index
    %c0_51 = arith.constant 0 : index
    %68 = vector.load %arg10[%c2_49, %c1_50, %c0_51] : memref<18x18x128xf32, #tpu.memory_space<vmem>>, vector<16x16x128xf32>
    %69 = vector.shape_cast %68 : vector<16x16x128xf32> to vector<256x128xf32>
    %70 = arith.truncf %69 : vector<256x128xf32> to vector<256x128xbf16>
    %c896 = arith.constant 896 : index
    %c0_52 = arith.constant 0 : index
    %71 = vector.load %arg4[%c896, %c0_52] : memref<1152x128xbf16, #tpu.memory_space<vmem>>, vector<128x128xbf16>
    %cst_53 = arith.constant dense<0.000000e+00> : vector<256x128xf32>
    %72 = tpu.matmul %70, %71, %cst_53 {dimension_numbers = #tpu.dot_dimension_numbers<[1], [0], [0], [1], [0, 0, 1, 1], [], []>} : vector<256x128xbf16>, vector<128x128xbf16>, vector<256x128xf32> -> vector<256x128xf32>
    %73 = arith.addf %67, %72 : vector<256x128xf32>
    %c2_54 = arith.constant 2 : index
    %c2_55 = arith.constant 2 : index
    %c0_56 = arith.constant 0 : index
    %74 = vector.load %arg10[%c2_54, %c2_55, %c0_56] : memref<18x18x128xf32, #tpu.memory_space<vmem>>, vector<16x16x128xf32>
    %75 = vector.shape_cast %74 : vector<16x16x128xf32> to vector<256x128xf32>
    %76 = arith.truncf %75 : vector<256x128xf32> to vector<256x128xbf16>
    %c1024 = arith.constant 1024 : index
    %c0_57 = arith.constant 0 : index
    %77 = vector.load %arg4[%c1024, %c0_57] : memref<1152x128xbf16, #tpu.memory_space<vmem>>, vector<128x128xbf16>
    %cst_58 = arith.constant dense<0.000000e+00> : vector<256x128xf32>
    %78 = tpu.matmul %76, %77, %cst_58 {dimension_numbers = #tpu.dot_dimension_numbers<[1], [0], [0], [1], [0, 0, 1, 1], [], []>} : vector<256x128xbf16>, vector<128x128xbf16>, vector<256x128xf32> -> vector<256x128xf32>
    %79 = arith.addf %73, %78 : vector<256x128xf32>
    %c0_59 = arith.constant 0 : index
    %c0_60 = arith.constant 0 : index
    %80 = vector.load %arg5[%c0_59, %c0_60] : memref<1x128xf32, #tpu.memory_space<vmem>>, vector<1x128xf32>
    %81 = vector.broadcast %0 : f32 to vector<1x128xf32>
    %82 = arith.mulf %81, %80 : vector<1x128xf32>
    %83 = vector.broadcast %82 : vector<1x128xf32> to vector<256x128xf32>
    %84 = arith.mulf %79, %83 : vector<256x128xf32>
    %c0_61 = arith.constant 0 : index
    %c0_62 = arith.constant 0 : index
    %85 = vector.load %arg6[%c0_61, %c0_62] : memref<1x128xf32, #tpu.memory_space<vmem>>, vector<1x128xf32>
    %86 = vector.broadcast %85 : vector<1x128xf32> to vector<256x128xf32>
    %87 = arith.addf %84, %86 : vector<256x128xf32>
    %88 = vector.shape_cast %87 : vector<256x128xf32> to vector<1x16x16x128xf32>
    %c0_63 = arith.constant 0 : index
    %c0_64 = arith.constant 0 : index
    %c0_65 = arith.constant 0 : index
    %c0_66 = arith.constant 0 : index
    %89 = vector.load %arg7[%c0_63, %c0_64, %c0_65, %c0_66] : memref<1x16x16x128xf32, #tpu.memory_space<vmem>>, vector<1x16x16x128xf32>
    %90 = arith.addf %88, %89 : vector<1x16x16x128xf32>
    %c0_i32_67 = arith.constant 0 : i32
    %91 = arith.cmpi eq, %arg1, %c0_i32_67 : i32
    %92 = arith.extui %91 : i1 to i32
    %c0_i32_68 = arith.constant 0 : i32
    %93 = arith.cmpi ne, %92, %c0_i32_68 : i32
    scf.if %93 {
      %cst_82 = arith.constant 0.000000e+00 : f32
      %104 = vector.broadcast %cst_82 : f32 to vector<1x1x1x1xf32>
      %c0_83 = arith.constant 0 : index
      %c0_84 = arith.constant 0 : index
      %c0_85 = arith.constant 0 : index
      %c0_86 = arith.constant 0 : index
      %105 = vector.load %arg9[%c0_83, %c0_84, %c0_85, %c0_86] : memref<1x1x1x1xf32, #tpu.memory_space<vmem>>, vector<1x1x1x1xf32>
      tpu.vector_store %arg9[%c0_83, %c0_84, %c0_85, %c0_86], %104 {strides = array<i32>} : memref<1x1x1x1xf32, #tpu.memory_space<vmem>>, vector<1x1x1x1xf32>,
    } else {
    }
    %c0_69 = arith.constant 0 : index
    %c0_70 = arith.constant 0 : index
    %c0_71 = arith.constant 0 : index
    %c0_72 = arith.constant 0 : index
    %94 = vector.load %arg9[%c0_69, %c0_70, %c0_71, %c0_72] : memref<1x1x1x1xf32, #tpu.memory_space<vmem>>, vector<1x1x1x1xf32>
    %95 = math.absf %90 : vector<1x16x16x128xf32>
    %96 = vector.shape_cast %95 : vector<1x16x16x128xf32> to vector<1x1x16x16x128xf32>
    %cst_73 = arith.constant dense<0xFF800000> : vector<1xf32>
    %97 = vector.multi_reduction <maximumf>, %96, %cst_73 [1, 2, 3, 4] : vector<1x1x16x16x128xf32> to vector<1xf32>
    %98 = vector.shape_cast %97 : vector<1xf32> to vector<1x1x1x1x1xf32>
    %99 = vector.extract %98[0, 0, 0, 0, 0] : f32 from vector<1x1x1x1x1xf32>
    %100 = vector.broadcast %99 : f32 to vector<1x1x1x1xf32>
    %101 = arith.maximumf %94, %100 : vector<1x1x1x1xf32>
    %c0_74 = arith.constant 0 : index
    %c0_75 = arith.constant 0 : index
    %c0_76 = arith.constant 0 : index
    %c0_77 = arith.constant 0 : index
    %102 = vector.load %arg9[%c0_74, %c0_75, %c0_76, %c0_77] : memref<1x1x1x1xf32, #tpu.memory_space<vmem>>, vector<1x1x1x1xf32>
    tpu.vector_store %arg9[%c0_74, %c0_75, %c0_76, %c0_77], %101 {strides = array<i32>} : memref<1x1x1x1xf32, #tpu.memory_space<vmem>>, vector<1x1x1x1xf32>,
    %c0_78 = arith.constant 0 : index
    %c0_79 = arith.constant 0 : index
    %c0_80 = arith.constant 0 : index
    %c0_81 = arith.constant 0 : index
    %103 = vector.load %arg8[%c0_78, %c0_79, %c0_80, %c0_81] : memref<1x16x16x128xf32, #tpu.memory_space<vmem>>, vector<1x16x16x128xf32>
    tpu.vector_store %arg8[%c0_78, %c0_79, %c0_80, %c0_81], %90 {strides = array<i32>} : memref<1x16x16x128xf32, #tpu.memory_space<vmem>>, vector<1x16x16x128xf32>,
    return
  }
  func.func @transform_0(%arg0: i32, %arg1: i32) -> i32 {
    %c0_i32 = arith.constant 0 : i32
    %c0_i32_0 = arith.constant 0 : i32
    return %c0_i32 : i32
  }
  func.func @transform_1(%arg0: i32, %arg1: i32) -> (i32, i32, i32, i32) {
    %c0_i32 = arith.constant 0 : i32
    %c0_i32_0 = arith.constant 0 : i32
    %c0_i32_1 = arith.constant 0 : i32
    %c0_i32_2 = arith.constant 0 : i32
    return %arg0, %c0_i32, %c0_i32_0, %c0_i32_1 : i32, i32, i32, i32
  }
  func.func @transform_2(%arg0: i32, %arg1: i32) -> (i32, i32) {
    %c0_i32 = arith.constant 0 : i32
    %c0_i32_0 = arith.constant 0 : i32
    %c0_i32_1 = arith.constant 0 : i32
    return %c0_i32, %c0_i32_0 : i32, i32
  }
  func.func @transform_3(%arg0: i32, %arg1: i32) -> (i32, i32) {
    %c0_i32 = arith.constant 0 : i32
    %c0_i32_0 = arith.constant 0 : i32
    %c0_i32_1 = arith.constant 0 : i32
    return %c0_i32, %c0_i32_0 : i32, i32
  }
  func.func @transform_4(%arg0: i32, %arg1: i32) -> (i32, i32) {
    %c0_i32 = arith.constant 0 : i32
    %c0_i32_0 = arith.constant 0 : i32
    %c0_i32_1 = arith.constant 0 : i32
    return %c0_i32, %c0_i32_0 : i32, i32
  }
  func.func @transform_5(%arg0: i32, %arg1: i32) -> (i32, i32, i32, i32) {
    %c0_i32 = arith.constant 0 : i32
    %c0_i32_0 = arith.constant 0 : i32
    %c0_i32_1 = arith.constant 0 : i32
    return %arg0, %arg1, %c0_i32, %c0_i32_0 : i32, i32, i32, i32
  }
  func.func @transform_6(%arg0: i32, %arg1: i32) -> (i32, i32, i32, i32) {
    %c0_i32 = arith.constant 0 : i32
    %c0_i32_0 = arith.constant 0 : i32
    %c0_i32_1 = arith.constant 0 : i32
    return %arg0, %arg1, %c0_i32, %c0_i32_0 : i32, i32, i32, i32
  }
  func.func @transform_7(%arg0: i32, %arg1: i32) -> (i32, i32, i32, i32) {
    %c0_i32 = arith.constant 0 : i32
    %c0_i32_0 = arith.constant 0 : i32
    %c0_i32_1 = arith.constant 0 : i32
    %c0_i32_2 = arith.constant 0 : i32
    return %arg0, %c0_i32, %c0_i32_0, %c0_i32_1 : i32, i32, i32, i32
  }
}

</mosaic_0001>

<bundles_post_ra>
// kernel: q_resblock_bn_daq_forward.5
= control target key start
LH: loop header
LB: loop body
LE: loop exit
PB: predicated region body
PF: predicated region fallthrough
CT: control target
= control target key end

     0   :  { %s1330_s0 = inlined_call_operand.<no memory space> [shape: f32[1], index: 0, kind: input, shape index: {}]   ;;  %s1331_s1 = inlined_call_operand.hbm [shape: f32[2,16,16,128], index: 1, kind: input, shape index: {}]   ;;  %s1332_s2 = inlined_call_operand.hbm [shape: f32[2,16,16,128], index: 2, kind: output, shape index: {}]  }
   0x1   :  { %7 = sst [smem:[#allocation2]] %s1330_s0 }
   0x2   :  { %8 = vsyncpa [#allocation4], 0 }
   0x3   :  { %10 = vsyncpa [#allocation4 + $0x1], 0 }
   0x4   :  { %11 = vsyncpa [#allocation5], 0 }
   0x5   :  { %13 = vsyncpa [#allocation5 + $0x1], 0  ;;  %s807_s11 = smov 0   ;;  %s809_s12 = smov 0  }
   0x6   :  { %s811_s13 = smov 0   ;;  %s813_s14 = smov 0  }
   0x7   :  { %s815_s15 = smov 0   ;;  %s817_s16 = smov 0  }
   0x8 LB: > { %s550_s0 = sadd.s32 4294967295, %s781_s16   ;;  %s551_s17 = sadd.s32 4294967294, %s781_s16   ;;  %s781_s16 = sphi %s817_s16, %s19_s16   ;;  %s777_s15 = sphi %s815_s15, %s1347_s15   ;;  %s773_s14 = sphi %s813_s14, %s1346_s14   ;;  %s769_s13 = sphi %s811_s13, %s1345_s13   ;;  %s765_s12 = sphi %s809_s12, %s1344_s12   ;;  %s761_s11 = sphi %s807_s11, %s1343_s11  }
   0x9   : > { %s31_s18 = sadd.s32 1, %s777_s15  ;;  %s61_s19 = sadd.s32 1, %s769_s13 }
   0xa   : > { %p33_p0 = scmp.ge.s32.totalorder %s31_s18, 2  ;;  %p68_p1 = scmp.ne.s32.totalorder %s769_s13, %s765_s12 }
   0xb   : > { %p69_p2 = scmp.eq.s32.totalorder %s781_s16, 0  ;;  %p74_p3 = scmp.ne.s32.totalorder %s765_s12, %s761_s11 }
   0xc   : > { %s1349_s18 = smov (%p33_p0, %s31_s18), 0  ;;  %p75_p5 = scmp.eq.s32.totalorder %s550_s0, 0 }
   0xd   : > { %p848_p4 = por %p69_p2, %p68_p1  ;;  %s56_s21 = ssub.s32 %s777_s15, %s1349_s18 }
   0xe   : > { %p100_p6 = scmp.eq.s32.totalorder %s550_s0, 1  ;;  %p59_p7 = scmp.eq.s32.totalorder %s56_s21, 0 }
   0xf   : > { %p854_p8 = por %p75_p5, %p74_p3  ;;  %p106_p10 = scmp.eq.s32.totalorder %s551_s17, 1 }
  0x10   : > { %p858_p9 = por %p100_p6, %p68_p1  ;;  %p613_p13 = scmp.lt.s32.totalorder %s781_s16, 2 }
  0x11   : > { %s863_s24 = scalar_select %p59_p7, %s769_s13, %s61_s19  }
  0x12   : > { %s1336_s23 = scalar_select %p858_p9, 1, 0 }
  0x13   : > { %p865_p11 = por %p106_p10, %p74_p3  ;;  %s129_s26 = sand.u32 1, %s769_s13  }
  0x14   : > { %s554_s27 = sshll.u32 %s129_s26, 8  ;;  %s565_s28 = sshll.u32 %s777_s15, 12 }
  0x15   : > { %s1337_s25 = scalar_select %p865_p11, 1, 0 }
  0x16   : > { %s876_s3 = scalar_lea.hbm %s1331_s1, %s565_s28  ;;  %s133_s4 = scalar_lea.vmem [#allocation3], %s554_s27 }
  0x17   : > { %s143_s5 = sshll.u32 %s133_s4, 4  ;;  %p882_p0 = pnand %p613_p13, %p848_p4  ;;  %s878_s5 = int_to_ptr.vmem [resolvable:$true] %s143_s5 }
  0x18   : > { %s887_s7 = scalar_lea.sflag [#allocation4], %s129_s26  ;;  %s669_s8 = scalar_lea.hbm %s876_s3, 4096 }
  0x19   : > { %p670_p2 = scmp.ne.s32.totalorder %s876_s3, %s669_s8  ;;  %p671_p3 = pneg %p882_p0 }
  0x1a   : > { %s674_s0 = scalar_lea.hbm %s1331_s1, 8192  ;;  %p675_p4 = scmp.lt.u32.totalorder %s876_s3, %s1331_s1 }
  0x1b   : > { %p672_p5 = pnand %p671_p3, %p670_p2  ;;  %p676_p7 = scmp.lt.u32.totalorder %s674_s0, %s669_s8 }
  0x1c   : > { %p678_p13 = scmp.lt.u32.totalorder %s669_s8, %s876_s3 }
  0x1d   : > { %p673_p6 = pneg %p672_p5  ;;  %p677_p10 = por %p676_p7, %p675_p4 }
  0x1f   : > { %p679_p12 = por %p678_p13, %p677_p10 }
  0x21   : > { %p680_p1 = pnand %p679_p12, %p673_p6 }
  0x23   : > { %683 = shalt.err (!%p680_p1)
}
  0x24   : > { %s684_s20 = scalar_lea.vmem %s878_s5, 4096  ;;  %s783_s21 = smov [#allocation3]  }
  0x25   : > { %p685_p2 = scmp.ne.s32.totalorder %s878_s5, %s684_s20  ;;  %s689_s26 = sshll.u32 %s783_s21, 4  ;;  %s690_s26 = int_to_ptr.vmem [resolvable:$false] %s689_s26 }
  0x26   : > { %s691_s27 = scalar_lea.vmem %s690_s26, 8192  ;;  %p692_p9 = scmp.lt.s32.totalorder %s878_s5, %s690_s26 }
  0x27   : > { %p687_p5 = pnand %p685_p2, %p671_p3  ;;  %p693_p4 = scmp.lt.s32.totalorder %s691_s27, %s684_s20 }
  0x29   : > { %p688_p11 = pneg %p687_p5  ;;  %p694_p7 = por %p693_p4, %p692_p9 }
  0x2b   : > { %p695_p10 = pnand %p694_p7, %p688_p11 }
  0x2d   : > { %698 = shalt.err (!%p695_p10)
}
  0x2e   : > { %s784_s28 = smov 128   ;;  %s785_s29 = smov 8  }
  0x2f   : > { %608 = dma.hbm_to_vmem [thread:$0]  (!%p882_p0), %s876_s3, 4096, %s878_s5, %s887_s7, %s784_s28, %s784_s28, %s785_s29  }
  0x30   : > { %p151_p12 = scmp.lt.s32.totalorder %s781_s16, 3  ;;  %p1339_p1 = scmp.ge.s32.totalorder %s781_s16, 1 }
  0x32   : > { %p152_p3 = pnand %p1339_p1, %p151_p12 }
  0x33   : > { %s919_s30 = sand.u32 (!%p152_p3), 1, %s765_s12  }
  0x34   : > { %155 = sbr.rel (%p152_p3) target bundleno = 201 (0xc9), region = 28  ;;  %s558_s4 = sshll.u32 (!%p152_p3), %s919_s30, 8 }
  0x35   : > { %s158_s8 = scalar_lea.sflag (!%p152_p3), [#allocation4], %s919_s30  ;;  %s925_s9 = scalar_lea.vmem (!%p152_p3), [#allocation3], %s558_s4 }
  0x3b   : > { %752 = dma.done.wait (%p854_p8), %s158_s8, 4096  }
  0x3c   : > { %754 = vsyncadd (%p854_p8), %s158_s8, 4294963200  ;;  %s184_s3 = sld [smem:[#allocation2]]  ;;  %v188_v2 = vld [vmem:[%s925_s9] sm:$0xff]  ;;  %v189_v3 = vld [vmem:[%s925_s9 + $0x8] sm:$0xff]  ;;  %s1224_s5 = scalar_lea.vmem [#allocation6], %s558_s4 }
  0x3d   : > { %v190_v4 = vld [vmem:[%s925_s9 + $0x10] sm:$0xff]  ;;  %v191_v5 = vld [vmem:[%s925_s9 + $0x18] sm:$0xff]  ;;  %v192_v6 = vld [vmem:[%s925_s9 + $0x20] sm:$0xff]  ;;  %s566_s6 = sshll.u32 %s773_s14, 12  ;;  %s463_s7 = sshll.u32 %s1224_s5, 4  ;;  %s1265_s7 = int_to_ptr.vmem [resolvable:$true] %s463_s7 }
  0x3e   : > { %v193_v7 = vld [vmem:[%s925_s9 + $0x28] sm:$0xff]  ;;  %v194_v8 = vld [vmem:[%s925_s9 + $0x30] sm:$0xff]  ;;  %v195_v9 = vld [vmem:[%s925_s9 + $0x38] sm:$0xff]  ;;  %s1263_s0 = scalar_lea.hbm %s1332_s2, %s566_s6  ;;  %s447_s17 = scalar_lea.sflag [#allocation5], %s919_s30 }
  0x3f   : > { %v196_v10 = vld [vmem:[%s925_s9 + $0x40] sm:$0xff]  ;;  %v197_v11 = vld [vmem:[%s925_s9 + $0x48] sm:$0xff]  ;;  %v198_v12 = vld [vmem:[%s925_s9 + $0x50] sm:$0xff]  ;;  %s699_s19 = scalar_lea.vmem %s1265_s7, 4096  ;;  %p1340_p9 = scmp.ne.s32.totalorder %s1336_s23, 0 }
  0x40   : > { %v199_v13 = vld [vmem:[%s925_s9 + $0x58] sm:$0xff]  ;;  %v200_v14 = vld [vmem:[%s925_s9 + $0x60] sm:$0xff]  ;;  %v201_v15 = vld [vmem:[%s925_s9 + $0x68] sm:$0xff]  ;;  %p700_p8 = scmp.ne.s32.totalorder %s1265_s7, %s699_s19  ;;  %s786_s20 = smov [#allocation6]  }
  0x41   : > { %v202_v16 = vld [vmem:[%s925_s9 + $0x70] sm:$0xff]  ;;  %v203_v17 = vld [vmem:[%s925_s9 + $0x78] sm:$0xff]  ;;  %v204_v18 = vld [vmem:[%s925_s9 + $0x80] sm:$0xff]  ;;  %s703_s21 = sshll.u32 %s786_s20, 4  ;;  %s704_s21 = int_to_ptr.vmem [resolvable:$false] %s703_s21 }
  0x42   : > { %v931_v0 = vstv %s184_s3  ;;  %v205_v20 = vld [vmem:[%s925_s9 + $0x88] sm:$0xff]  ;;  %v206_v21 = vld [vmem:[%s925_s9 + $0x90] sm:$0xff]  ;;  %v207_v22 = vld [vmem:[%s925_s9 + $0x98] sm:$0xff]  ;;  %p701_p11 = pnand %p700_p8, %p1340_p9  ;;  %s705_s26 = scalar_lea.vmem %s704_s21, 8192 }
  0x43   : > { %667 = vrcp.f32 %v931_v0  ;;  %v208_v27 = vld [vmem:[%s925_s9 + $0xa0] sm:$0xff]  ;;  %v209_v28 = vld [vmem:[%s925_s9 + $0xa8] sm:$0xff]  ;;  %v210_v29 = vld [vmem:[%s925_s9 + $0xb0] sm:$0xff]  ;;  %p706_p6 = scmp.lt.s32.totalorder %s1265_s7, %s704_s21  ;;  %p707_p13 = scmp.lt.s32.totalorder %s705_s26, %s699_s19 }
  0x44   : > { %v211_v34 = vld [vmem:[%s925_s9 + $0xb8] sm:$0xff]  ;;  %v212_v35 = vld [vmem:[%s925_s9 + $0xc0] sm:$0xff]  ;;  %v213_v36 = vld [vmem:[%s925_s9 + $0xc8] sm:$0xff]  ;;  %p702_p0 = pneg %p701_p11 }
  0x45   : > { %v214_v41 = vld [vmem:[%s925_s9 + $0xd0] sm:$0xff]  ;;  %v215_v42 = vld [vmem:[%s925_s9 + $0xd8] sm:$0xff]  ;;  %v216_v43 = vld [vmem:[%s925_s9 + $0xe0] sm:$0xff]  ;;  %p708_p2 = por %p707_p13, %p706_p6 }
  0x46   : > { %v217_v48 = vld [vmem:[%s925_s9 + $0xe8] sm:$0xff]  ;;  %v218_v49 = vld [vmem:[%s925_s9 + $0xf0] sm:$0xff]  ;;  %v219_v50 = vld [vmem:[%s925_s9 + $0xf8] sm:$0xff] }
  0x47   : > { %p709_p5 = pnand %p708_p2, %p702_p0 }
  0x4d   : > { %v668_v1 = vpop.eup %667 }
  0x4e   : > { %567 = vpush %v668_v1 }
  0x7f   : > { %s568_s22 = spop %567 }
  0x80   : > { %v220_v19 = vstv %s568_s22 }
  0x81   : > { %v954_v23 = vmul.f32 %v220_v19, %v188_v2  ;;  %v956_v24 = vmul.f32 %v220_v19, %v189_v3  ;;  %v958_v25 = vmul.f32 %v220_v19, %v190_v4  ;;  %v960_v26 = vmul.f32 %v220_v19, %v191_v5 }
  0x82   : > { %v965_v30 = vmul.f32 %v220_v19, %v192_v6  ;;  %v967_v31 = vmul.f32 %v220_v19, %v193_v7  ;;  %v969_v32 = vmul.f32 %v220_v19, %v194_v8  ;;  %v971_v33 = vmul.f32 %v220_v19, %v195_v9 }
  0x83   : > { %v976_v37 = vmul.f32 %v220_v19, %v196_v10  ;;  %v978_v38 = vmul.f32 %v220_v19, %v197_v11  ;;  %v980_v39 = vmul.f32 %v220_v19, %v198_v12  ;;  %v982_v40 = vmul.f32 %v220_v19, %v199_v13 }
  0x84   : > { %v987_v44 = vmul.f32 %v220_v19, %v200_v14  ;;  %v989_v45 = vmul.f32 %v220_v19, %v201_v15  ;;  %v991_v46 = vmul.f32 %v220_v19, %v202_v16  ;;  %v993_v47 = vmul.f32 %v220_v19, %v203_v17 }
  0x85   : > { %v998_v51 = vmul.f32 %v220_v19, %v204_v18  ;;  %v1000_v52 = vmul.f32 %v220_v19, %v205_v20  ;;  %v1002_v53 = vmul.f32 %v220_v19, %v206_v21  ;;  %v1004_v54 = vmul.f32 %v220_v19, %v207_v22 }
  0x86   : > { %v1006_v55 = vmul.f32 %v220_v19, %v208_v27  ;;  %v1008_v56 = vmul.f32 %v220_v19, %v209_v28  ;;  %v1010_v57 = vmul.f32 %v220_v19, %v210_v29  ;;  %v1012_v58 = vmul.f32 %v220_v19, %v211_v34 }
  0x87   : > { %v1014_v59 = vmul.f32 %v220_v19, %v212_v35  ;;  %v1016_v60 = vmul.f32 %v220_v19, %v213_v36  ;;  %v1018_v61 = vmul.f32 %v220_v19, %v214_v41  ;;  %v1020_v62 = vmul.f32 %v220_v19, %v215_v42 }
  0x88   : > { %v1022_v63 = vmul.f32 %v220_v19, %v216_v43  ;;  %v1024_v1 = vmul.f32 %v220_v19, %v217_v48  ;;  %v1026_v2 = vmul.f32 %v220_v19, %v218_v49  ;;  %v1028_v3 = vmul.f32 %v220_v19, %v219_v50 }
  0x89   : > { %v569_v4 = vround.rtne.f32 %v954_v23  ;;  %v570_v5 = vround.rtne.f32 %v956_v24  ;;  %v571_v6 = vround.rtne.f32 %v958_v25  ;;  %v572_v7 = vround.rtne.f32 %v960_v26 }
  0x8a   : > { %v573_v8 = vround.rtne.f32 %v965_v30  ;;  %v574_v9 = vround.rtne.f32 %v967_v31  ;;  %v575_v10 = vround.rtne.f32 %v969_v32  ;;  %v576_v11 = vround.rtne.f32 %v971_v33 }
  0x8b   : > { %v577_v12 = vround.rtne.f32 %v976_v37  ;;  %v578_v13 = vround.rtne.f32 %v978_v38  ;;  %v579_v14 = vround.rtne.f32 %v980_v39  ;;  %v580_v15 = vround.rtne.f32 %v982_v40 }
  0x8c   : > { %v581_v16 = vround.rtne.f32 %v987_v44  ;;  %v582_v17 = vround.rtne.f32 %v989_v45  ;;  %v583_v18 = vround.rtne.f32 %v991_v46  ;;  %v584_v19 = vround.rtne.f32 %v993_v47 }
  0x8d   : > { %v585_v20 = vround.rtne.f32 %v998_v51  ;;  %v586_v21 = vround.rtne.f32 %v1000_v52  ;;  %v587_v22 = vround.rtne.f32 %v1002_v53  ;;  %v588_v23 = vround.rtne.f32 %v1004_v54 }
  0x8e   : > { %v589_v24 = vround.rtne.f32 %v1006_v55  ;;  %v590_v25 = vround.rtne.f32 %v1008_v56  ;;  %v591_v26 = vround.rtne.f32 %v1010_v57  ;;  %v592_v27 = vround.rtne.f32 %v1012_v58 }
  0x8f   : > { %v593_v28 = vround.rtne.f32 %v1014_v59  ;;  %v594_v29 = vround.rtne.f32 %v1016_v60  ;;  %v595_v30 = vround.rtne.f32 %v1018_v61  ;;  %v596_v31 = vround.rtne.f32 %v1020_v62 }
  0x90   : > { %v597_v32 = vround.rtne.f32 %v1022_v63  ;;  %v598_v33 = vround.rtne.f32 %v1024_v1  ;;  %v599_v34 = vround.rtne.f32 %v1026_v2  ;;  %v600_v35 = vround.rtne.f32 %v1028_v3 }
  0x91   : > { %v1062_v36 = vmax.f32 %v569_v4, -128.0  ;;  %v1064_v37 = vmax.f32 %v570_v5, -128.0  ;;  %v1066_v38 = vmax.f32 %v571_v6, -128.0  ;;  %v1068_v39 = vmax.f32 %v572_v7, -128.0 }
  0x92   : > { %v1070_v40 = vmax.f32 %v573_v8, -128.0  ;;  %v1072_v41 = vmax.f32 %v574_v9, -128.0  ;;  %v1074_v42 = vmax.f32 %v575_v10, -128.0  ;;  %v1076_v43 = vmax.f32 %v576_v11, -128.0 }
  0x93   : > { %v1078_v44 = vmax.f32 %v577_v12, -128.0  ;;  %v1080_v45 = vmax.f32 %v578_v13, -128.0  ;;  %v1082_v46 = vmax.f32 %v579_v14, -128.0  ;;  %v1084_v47 = vmax.f32 %v580_v15, -128.0 }
  0x94   : > { %v1086_v48 = vmax.f32 %v581_v16, -128.0  ;;  %v1088_v49 = vmax.f32 %v582_v17, -128.0  ;;  %v1090_v50 = vmax.f32 %v583_v18, -128.0  ;;  %v1092_v51 = vmax.f32 %v584_v19, -128.0 }
  0x95   : > { %v1094_v52 = vmax.f32 %v585_v20, -128.0  ;;  %v1096_v53 = vmax.f32 %v586_v21, -128.0  ;;  %v1098_v54 = vmax.f32 %v587_v22, -128.0  ;;  %v1100_v55 = vmax.f32 %v588_v23, -128.0 }
  0x96   : > { %v1102_v56 = vmax.f32 %v589_v24, -128.0  ;;  %v1104_v57 = vmax.f32 %v590_v25, -128.0  ;;  %v1106_v58 = vmax.f32 %v591_v26, -128.0  ;;  %v1108_v59 = vmax.f32 %v592_v27, -128.0 }
  0x97   : > { %v1110_v60 = vmax.f32 %v593_v28, -128.0  ;;  %v1112_v61 = vmax.f32 %v594_v29, -128.0  ;;  %v1114_v62 = vmax.f32 %v595_v30, -128.0  ;;  %v1116_v63 = vmax.f32 %v596_v31, -128.0 }
  0x98   : > { %v1118_v1 = vmax.f32 %v597_v32, -128.0  ;;  %v1120_v2 = vmax.f32 %v598_v33, -128.0  ;;  %v1122_v3 = vmax.f32 %v599_v34, -128.0  ;;  %v1124_v4 = vmax.f32 %v600_v35, -128.0 }
  0x99   : > { %v317_v5 = vmin.f32 %v1062_v36, 127.0  ;;  %v318_v6 = vmin.f32 %v1064_v37, 127.0  ;;  %v319_v7 = vmin.f32 %v1066_v38, 127.0  ;;  %v320_v8 = vmin.f32 %v1068_v39, 127.0 }
  0x9a   : > { %v321_v9 = vmin.f32 %v1070_v40, 127.0  ;;  %v322_v10 = vmin.f32 %v1072_v41, 127.0  ;;  %v323_v11 = vmin.f32 %v1074_v42, 127.0  ;;  %v324_v12 = vmin.f32 %v1076_v43, 127.0 }
  0x9b   : > { %v325_v13 = vmin.f32 %v1078_v44, 127.0  ;;  %v326_v14 = vmin.f32 %v1080_v45, 127.0  ;;  %v327_v15 = vmin.f32 %v1082_v46, 127.0  ;;  %v328_v16 = vmin.f32 %v1084_v47, 127.0 }
  0x9c   : > { %v329_v17 = vmin.f32 %v1086_v48, 127.0  ;;  %v330_v18 = vmin.f32 %v1088_v49, 127.0  ;;  %v331_v19 = vmin.f32 %v1090_v50, 127.0  ;;  %v332_v20 = vmin.f32 %v1092_v51, 127.0 }
  0x9d   : > { %v333_v21 = vmin.f32 %v1094_v52, 127.0  ;;  %v334_v22 = vmin.f32 %v1096_v53, 127.0  ;;  %v335_v23 = vmin.f32 %v1098_v54, 127.0  ;;  %v336_v24 = vmin.f32 %v1100_v55, 127.0 }
  0x9e   : > { %v337_v25 = vmin.f32 %v1102_v56, 127.0  ;;  %v338_v26 = vmin.f32 %v1104_v57, 127.0  ;;  %v339_v27 = vmin.f32 %v1106_v58, 127.0  ;;  %v340_v28 = vmin.f32 %v1108_v59, 127.0 }
  0x9f   : > { %v341_v29 = vmin.f32 %v1110_v60, 127.0  ;;  %v342_v30 = vmin.f32 %v1112_v61, 127.0  ;;  %v343_v31 = vmin.f32 %v1114_v62, 127.0  ;;  %v344_v32 = vmin.f32 %v1116_v63, 127.0 }
  0xa0   : > { %v345_v33 = vmin.f32 %v1118_v1, 127.0  ;;  %v346_v34 = vmin.f32 %v1120_v2, 127.0  ;;  %v347_v35 = vmin.f32 %v1122_v3, 127.0  ;;  %v348_v36 = vmin.f32 %v1124_v4, 127.0 }
  0xa1   : > { %v350_v37 = vmul.f32 %v317_v5, %v931_v0  ;;  %v351_v38 = vmul.f32 %v318_v6, %v931_v0  ;;  %v352_v39 = vmul.f32 %v319_v7, %v931_v0  ;;  %v353_v40 = vmul.f32 %v320_v8, %v931_v0 }
  0xa2   : > { %v354_v41 = vmul.f32 %v321_v9, %v931_v0  ;;  %v355_v42 = vmul.f32 %v322_v10, %v931_v0  ;;  %v356_v43 = vmul.f32 %v323_v11, %v931_v0  ;;  %v357_v44 = vmul.f32 %v324_v12, %v931_v0 }
  0xa3   : > { %v358_v45 = vmul.f32 %v325_v13, %v931_v0  ;;  %v359_v46 = vmul.f32 %v326_v14, %v931_v0  ;;  %v360_v47 = vmul.f32 %v327_v15, %v931_v0  ;;  %v361_v48 = vmul.f32 %v328_v16, %v931_v0 }
  0xa4   : > { %v362_v49 = vmul.f32 %v329_v17, %v931_v0  ;;  %v363_v50 = vmul.f32 %v330_v18, %v931_v0  ;;  %v364_v51 = vmul.f32 %v331_v19, %v931_v0  ;;  %v365_v52 = vmul.f32 %v332_v20, %v931_v0 }
  0xa5   : > { %v1175_v53 = vmul.f32 %v333_v21, %v931_v0  ;;  %v1178_v54 = vmul.f32 %v334_v22, %v931_v0  ;;  %v1181_v55 = vmul.f32 %v335_v23, %v931_v0  ;;  %v1184_v56 = vmul.f32 %v336_v24, %v931_v0 }
  0xa6   : > { %v1187_v57 = vmul.f32 %v337_v25, %v931_v0  ;;  %v1190_v58 = vmul.f32 %v338_v26, %v931_v0  ;;  %v1193_v59 = vmul.f32 %v339_v27, %v931_v0  ;;  %v1196_v60 = vmul.f32 %v340_v28, %v931_v0 }
  0xa7   : > { %v1199_v61 = vmul.f32 %v341_v29, %v931_v0  ;;  %v1202_v62 = vmul.f32 %v342_v30, %v931_v0  ;;  %v1205_v63 = vmul.f32 %v343_v31, %v931_v0  ;;  %v1208_v1 = vmul.f32 %v344_v32, %v931_v0 }
  0xa8   : > { %v1211_v2 = vmul.f32 %v345_v33, %v931_v0  ;;  %v1214_v3 = vmul.f32 %v346_v34, %v931_v0  ;;  %v1217_v4 = vmul.f32 %v347_v35, %v931_v0  ;;  %v1220_v5 = vmul.f32 %v348_v36, %v931_v0 }
  0xa9   : > { %v382_v6 = vmax.f32 %v350_v37, 0.0  ;;  %v383_v7 = vmax.f32 %v351_v38, 0.0  ;;  %v384_v8 = vmax.f32 %v352_v39, 0.0  ;;  %v385_v9 = vmax.f32 %v353_v40, 0.0 }
  0xaa   : > { %v386_v10 = vmax.f32 %v354_v41, 0.0  ;;  %v387_v11 = vmax.f32 %v355_v42, 0.0  ;;  %v388_v12 = vmax.f32 %v356_v43, 0.0  ;;  %v389_v13 = vmax.f32 %v357_v44, 0.0 }
  0xab   : > { %v390_v14 = vmax.f32 %v358_v45, 0.0  ;;  %v391_v15 = vmax.f32 %v359_v46, 0.0  ;;  %v392_v16 = vmax.f32 %v360_v47, 0.0  ;;  %v393_v17 = vmax.f32 %v361_v48, 0.0  ;;  %414 = vst [vmem:[%s1224_s5] sm:$0xff] %v382_v6  ;;  %415 = vst [vmem:[%s1224_s5 + $0x8] sm:$0xff] %v383_v7 }
  0xac   : > { %416 = vst [vmem:[%s1224_s5 + $0x10] sm:$0xff] %v384_v8  ;;  %417 = vst [vmem:[%s1224_s5 + $0x18] sm:$0xff] %v385_v9  ;;  %v394_v0 = vmax.f32 %v362_v49, 0.0  ;;  %v395_v18 = vmax.f32 %v363_v50, 0.0  ;;  %v396_v19 = vmax.f32 %v364_v51, 0.0  ;;  %v397_v20 = vmax.f32 %v365_v52, 0.0 }
  0xad   : > { %418 = vst [vmem:[%s1224_s5 + $0x20] sm:$0xff] %v386_v10  ;;  %419 = vst [vmem:[%s1224_s5 + $0x28] sm:$0xff] %v387_v11  ;;  %v398_v21 = vmax.f32 %v1175_v53, 0.0  ;;  %v399_v22 = vmax.f32 %v1178_v54, 0.0  ;;  %v400_v23 = vmax.f32 %v1181_v55, 0.0  ;;  %v401_v24 = vmax.f32 %v1184_v56, 0.0 }
  0xae   : > { %420 = vst [vmem:[%s1224_s5 + $0x30] sm:$0xff] %v388_v12  ;;  %421 = vst [vmem:[%s1224_s5 + $0x38] sm:$0xff] %v389_v13  ;;  %v402_v25 = vmax.f32 %v1187_v57, 0.0  ;;  %v403_v26 = vmax.f32 %v1190_v58, 0.0  ;;  %v404_v27 = vmax.f32 %v1193_v59, 0.0  ;;  %v405_v28 = vmax.f32 %v1196_v60, 0.0 }
  0xaf   : > { %422 = vst [vmem:[%s1224_s5 + $0x40] sm:$0xff] %v390_v14  ;;  %423 = vst [vmem:[%s1224_s5 + $0x48] sm:$0xff] %v391_v15  ;;  %v406_v29 = vmax.f32 %v1199_v61, 0.0  ;;  %v407_v30 = vmax.f32 %v1202_v62, 0.0  ;;  %v408_v31 = vmax.f32 %v1205_v63, 0.0  ;;  %v409_v32 = vmax.f32 %v1208_v1, 0.0 }
  0xb0   : > { %424 = vst [vmem:[%s1224_s5 + $0x50] sm:$0xff] %v392_v16  ;;  %425 = vst [vmem:[%s1224_s5 + $0x58] sm:$0xff] %v393_v17  ;;  %v410_v33 = vmax.f32 %v1211_v2, 0.0  ;;  %v411_v34 = vmax.f32 %v1214_v3, 0.0  ;;  %v412_v35 = vmax.f32 %v1217_v4, 0.0  ;;  %v413_v36 = vmax.f32 %v1220_v5, 0.0 }
  0xb1   : > { %426 = vst [vmem:[%s1224_s5 + $0x60] sm:$0xff] %v394_v0  ;;  %427 = vst [vmem:[%s1224_s5 + $0x68] sm:$0xff] %v395_v18 }
  0xb2   : > { %428 = vst [vmem:[%s1224_s5 + $0x70] sm:$0xff] %v396_v19  ;;  %429 = vst [vmem:[%s1224_s5 + $0x78] sm:$0xff] %v397_v20 }
  0xb3   : > { %430 = vst [vmem:[%s1224_s5 + $0x80] sm:$0xff] %v398_v21  ;;  %431 = vst [vmem:[%s1224_s5 + $0x88] sm:$0xff] %v399_v22 }
  0xb4   : > { %432 = vst [vmem:[%s1224_s5 + $0x90] sm:$0xff] %v400_v23  ;;  %433 = vst [vmem:[%s1224_s5 + $0x98] sm:$0xff] %v401_v24 }
  0xb5   : > { %434 = vst [vmem:[%s1224_s5 + $0xa0] sm:$0xff] %v402_v25  ;;  %435 = vst [vmem:[%s1224_s5 + $0xa8] sm:$0xff] %v403_v26 }
  0xb6   : > { %436 = vst [vmem:[%s1224_s5 + $0xb0] sm:$0xff] %v404_v27  ;;  %437 = vst [vmem:[%s1224_s5 + $0xb8] sm:$0xff] %v405_v28 }
  0xb7   : > { %438 = vst [vmem:[%s1224_s5 + $0xc0] sm:$0xff] %v406_v29  ;;  %439 = vst [vmem:[%s1224_s5 + $0xc8] sm:$0xff] %v407_v30 }
  0xb8   : > { %440 = vst [vmem:[%s1224_s5 + $0xd0] sm:$0xff] %v408_v31  ;;  %441 = vst [vmem:[%s1224_s5 + $0xd8] sm:$0xff] %v409_v32 }
  0xb9   : > { %442 = vst [vmem:[%s1224_s5 + $0xe0] sm:$0xff] %v410_v33  ;;  %443 = vst [vmem:[%s1224_s5 + $0xe8] sm:$0xff] %v411_v34 }
  0xba   : > { %444 = vst [vmem:[%s1224_s5 + $0xf0] sm:$0xff] %v412_v35  ;;  %445 = vst [vmem:[%s1224_s5 + $0xf8] sm:$0xff] %v413_v36 }
  0xbb   : > { %712 = shalt.err (!%p709_p5)
}
  0xbc   : > { %s713_s27 = scalar_lea.hbm %s1263_s0, 4096  ;;  %s717_s4 = scalar_lea.hbm %s1332_s2, 8192 }
  0xbd   : > { %p714_p4 = scmp.ne.s32.totalorder %s1263_s0, %s713_s27  ;;  %p718_p12 = scmp.lt.u32.totalorder %s1263_s0, %s1332_s2 }
  0xbe   : > { %p719_p1 = scmp.lt.u32.totalorder %s717_s4, %s713_s27  ;;  %p721_p8 = scmp.lt.u32.totalorder %s713_s27, %s1263_s0 }
  0xbf   : > { %p715_p7 = pnand %p714_p4, %p1340_p9 }
  0xc0   : > { %p720_p3 = por %p719_p1, %p718_p12 }
  0xc1   : > { %p716_p10 = pneg %p715_p7 }
  0xc2   : > { %p722_p11 = por %p721_p8, %p720_p3 }
  0xc4   : > { %p723_p0 = pnand %p722_p11, %p716_p10 }
  0xc6   : > { %726 = shalt.err (!%p723_p0)
}
  0xc7   : > { %s787_s3 = smov 128   ;;  %s788_s22 = smov 8  }
  0xc8   : > { %603 = dma.vmem_to_hbm [thread:$0]  (%p1340_p9), %s1265_s7, 4096, %s1263_s0, %s447_s17, %s787_s3, %s787_s3, %s788_s22  }
  0xc9 PF: > { %s478_s5 = sand.u32 1, %s761_s11   ;;  %p1341_p6 = scmp.ne.s32.totalorder %s1337_s25, 0 }
  0xca   : > { %p1342_p13 = scmp.ge.s32.totalorder %s781_s16, 2  ;;  %s479_s6 = scalar_lea.sflag [#allocation5], %s478_s5 }
  0xcc   : > { %p610_p2 = pnand %p1342_p13, %p1341_p6 }
  0xce   : > { %756 = dma.done.wait (!%p610_p2), %s479_s6, 4096  }
  0xcf   : > { %758 = vsyncadd (!%p610_p2), %s479_s6, 4294963200  ;;  %s19_s16 = sadd.s32 1, %s781_s16   ;;  %s1343_s11 = smov %s765_s12 }
  0xd0   : > { %p16_p5 = scmp.ge.s32.totalorder %s19_s16, 4   ;;  %s1344_s12 = smov %s769_s13 }
  0xd1   : > { %s1345_s13 = smov %s863_s24  ;;  %s1346_s14 = smov %s777_s15 }
  0xd2   : > { %s1347_s15 = smov %s1349_s18  ;;  %18 = sbr.rel (!%p16_p5) target bundleno = 8 (0x8), region = 73 }
  0xd9   :  { %484 = vsyncpa [#allocation4], 1 }
  0xda   :  { %486 = vsyncpa [#allocation4 + $0x1], 1 }
  0xdb   :  { %487 = vsyncpa [#allocation5], 1 }
  0xdc   :  { %489 = vsyncpa [#allocation5 + $0x1], 1 }

// kernel: q_resblock_bn_daq_forward.3
= control target key start
LH: loop header
LB: loop body
LE: loop exit
PB: predicated region body
PF: predicated region fallthrough
CT: control target
= control target key end

     0   :  { %s6156_s0 = inlined_call_operand.<no memory space> [shape: f32[1], index: 0, kind: input, shape index: {}]   ;;  %s6157_s1 = inlined_call_operand.hbm [shape: f32[2,16,16,128], index: 1, kind: input, shape index: {}]   ;;  %s6158_s2 = inlined_call_operand.hbm [shape: bf16[1152,128], index: 2, kind: input, shape index: {}]   ;;  %s6159_s3 = inlined_call_operand.hbm [shape: f32[1,128], index: 3, kind: input, shape index: {}]   ;;  %s6160_s4 = inlined_call_operand.hbm [shape: f32[1,128], index: 4, kind: input, shape index: {}]   ;;  %s6161_s5 = inlined_call_operand.hbm [shape: f32[2,16,16,128], index: 5, kind: output, shape index: {0}]   ;;  %s6162_s6 = inlined_call_operand.hbm [shape: f32[2,1,1,1], index: 6, kind: output, shape index: {1}]  }
   0x1   :  { %12 = sst [smem:[#allocation3]] %s6156_s0 }
   0x2   :  { %13 = vsyncpa [#allocation5], 0 }
   0x3   :  { %15 = vsyncpa [#allocation5 + $0x1], 0 }
   0x4   :  { %16 = vsyncpa [#allocation8], 0 }
   0x5   :  { %17 = vsyncpa [#allocation11], 0 }
   0x6   :  { %18 = vsyncpa [#allocation6], 0 }
   0x7   :  { %20 = vsyncpa [#allocation6 + $0x1], 0 }
   0x8   :  { %21 = vsyncpa [#allocation14], 0 }
   0x9   :  { %23 = vsyncpa [#allocation14 + $0x1], 0  ;;  %s5282_s23 = smov 0   ;;  %s5284_s24 = smov 0  }
   0xa   :  { %s5286_s25 = smov 0   ;;  %s5288_s26 = smov 0  }
   0xb   :  { %s5290_s27 = smov 0   ;;  %s5292_s28 = smov 0  }
   0xc LB: > { %6169 = sst [smem:[#allocation20_spill]] %s5209_s23  ;;  %s3730_s0 = sadd.s32 4294967295, %s5229_s28   ;;  %s5229_s28 = sphi %s5292_s28, %s29_s28   ;;  %s5225_s27 = sphi %s5290_s27, %s6193_s27   ;;  %s5221_s26 = sphi %s5288_s26, %s6192_s26   ;;  %s5217_s25 = sphi %s5286_s25, %s6191_s25   ;;  %s5213_s24 = sphi %s5284_s24, %s6190_s24   ;;  %s5209_s23 = sphi %s5282_s23, %s6189_s23  }
   0xd   : > { %s3731_s29 = sadd.s32 4294967294, %s5229_s28   ;;  %p82_p0 = scmp.ne.s32.totalorder %s5213_s24, %s5209_s23 }
   0xe   : > { %p5316_p1 = scmp.eq.s32.totalorder %s3730_s0, 0  ;;  %p5320_p2 = scmp.eq.s32.totalorder %s3730_s0, 1 }
   0xf   : > { %p177_p3 = scmp.eq.s32.totalorder %s3731_s29, 1  ;;  %p3732_p5 = scmp.ge.s32.totalorder %s5229_s28, 1 }
  0x10   : > { %s6170_s30 = scalar_select %p5316_p1, 1, 0 }
  0x11   : > { %s6171_s7 = scalar_select %p5320_p2, 1, 0 }
  0x12   : > { %p5326_p4 = por %p5316_p1, %p82_p0  ;;  %p5331_p6 = por %p177_p3, %p82_p0 }
  0x13   : > { %p210_p7 = scmp.lt.s32.totalorder %s5229_s28, 3  ;;  %s5231_s11 = smov [#allocation7]  }
  0x14   : > { %s6172_s8 = scalar_select %p5326_p4, 1, 0 }
  0x15   : > { %s6173_s9 = scalar_select %p5331_p6, 1, 0 }
  0x16   : > { %p5336_p8 = pnand %p3732_p5, %p210_p7  ;;  %s225_s12 = sshll.u32 %s5231_s11, 4  ;;  %s5340_s12 = int_to_ptr.vmem [resolvable:$true] %s225_s12 }
  0x17   : > { %6174 = sst [smem:[#allocation21_spill]] %s6173_s9  ;;  %s5232_s14 = smov [#allocation9]  }
  0x18   : > { %s6175_s10 = scalar_select %p5336_p8, 1, 0 }
  0x19   : > { %p4805_p9 = pneg %p5336_p8  ;;  %s239_s15 = sshll.u32 %s5232_s14, 4  ;;  %s5351_s15 = int_to_ptr.vmem [resolvable:$true] %s239_s15 }
  0x1a   : > { %s5233_s16 = smov [#allocation10]   ;;  %s4976_s20 = scalar_lea.hbm %s6158_s2, 9216 }
  0x1b   : > { %p5347_p11 = pnand %p4805_p9, %p5316_p1  ;;  %s5353_s17 = sshll.u32 %s5233_s16, 4  ;;  %s251_s17 = int_to_ptr.vmem [resolvable:$true] %s5353_s17 }
  0x1c   : > { %p4977_p12 = scmp.ne.s32.totalorder %s6158_s2, %s4976_s20  ;;  %p4983_p5 = scmp.lt.u32.totalorder %s4976_s20, %s6158_s2 }
  0x1d   : > { %p5363_p13 = pneg %p5347_p11 }
  0x1f   : > { %p4979_p0 = pnand %p5363_p13, %p4977_p12 }
  0x21   : > { %p4980_p3 = pneg %p4979_p0 }
  0x23   : > { %p4985_p7 = pnand %p4983_p5, %p4980_p3 }
  0x25   : > { %4988 = shalt.err (!%p4985_p7)
}
  0x26   : > { %s4989_s14 = scalar_lea.vmem %s5340_s12, 9216  ;;  %p4997_p1 = scmp.lt.s32.totalorder %s5340_s12, %s5340_s12 }
  0x27   : > { %p4990_p9 = scmp.ne.s32.totalorder %s5340_s12, %s4989_s14  ;;  %p4998_p4 = scmp.lt.s32.totalorder %s4989_s14, %s4989_s14 }
  0x29   : > { %p4992_p10 = pnand %p4990_p9, %p5363_p13  ;;  %p4999_p12 = por %p4998_p4, %p4997_p1 }
  0x2b   : > { %p4993_p6 = pneg %p4992_p10 }
  0x2d   : > { %p5000_p0 = pnand %p4999_p12, %p4993_p6 }
  0x2f   : > { %5003 = shalt.err (!%p5000_p0)
}
  0x30   : > { %s5234_s16 = smov 64   ;;  %s5235_s18 = smov 4  }
  0x31   : > { %4808 = dma.hbm_to_vmem [thread:$0]  (!%p5347_p11), %s6158_s2, 9216, %s5340_s12, [#allocation8], %s5234_s16, %s5234_s16, %s5235_s18  }
  0x32   : > { %s5004_s29 = scalar_lea.hbm %s6159_s3, 16 }
  0x33   : > { %p5005_p1 = scmp.ne.s32.totalorder %s6159_s3, %s5004_s29  ;;  %p5011_p10 = scmp.lt.u32.totalorder %s5004_s29, %s6159_s3 }
  0x35   : > { %p5007_p4 = pnand %p5005_p1, %p5363_p13 }
  0x37   : > { %p5008_p6 = pneg %p5007_p4 }
  0x39   : > { %p5013_p3 = pnand %p5011_p10, %p5008_p6 }
  0x3b   : > { %5016 = shalt.err (!%p5013_p3)
}
  0x3c   : > { %s5017_s12 = scalar_lea.vmem %s5351_s15, 16  ;;  %s5024_s9 = scalar_lea.vmem %s5351_s15, 32 }
  0x3d   : > { %p5018_p5 = scmp.ne.s32.totalorder %s5351_s15, %s5017_s12  ;;  %p5025_p12 = scmp.lt.s32.totalorder %s5351_s15, %s5351_s15 }
  0x3e   : > { %p5026_p0 = scmp.lt.s32.totalorder %s5024_s9, %s5017_s12 }
  0x3f   : > { %p5020_p7 = pnand %p5018_p5, %p5363_p13 }
  0x40   : > { %p5027_p1 = por %p5026_p0, %p5025_p12 }
  0x41   : > { %p5021_p9 = pneg %p5020_p7 }
  0x43   : > { %p5028_p4 = pnand %p5027_p1, %p5021_p9 }
  0x45   : > { %5031 = shalt.err (!%p5028_p4)
}
  0x46   : > { %4811 = dma.hbm_to_vmem [thread:$0]  (!%p5347_p11), %s6159_s3, 16, %s5351_s15, [#allocation8]  }
  0x47   : > { %s5032_s20 = scalar_lea.hbm %s6160_s4, 16 }
  0x48   : > { %p5033_p6 = scmp.ne.s32.totalorder %s6160_s4, %s5032_s20  ;;  %p5039_p5 = scmp.lt.u32.totalorder %s5032_s20, %s6160_s4 }
  0x4a   : > { %p5035_p10 = pnand %p5033_p6, %p5363_p13 }
  0x4c   : > { %p5036_p3 = pneg %p5035_p10 }
  0x4e   : > { %p5041_p7 = pnand %p5039_p5, %p5036_p3 }
  0x50   : > { %5044 = shalt.err (!%p5041_p7)
}
  0x51   : > { %s5045_s14 = scalar_lea.vmem %s251_s17, 16  ;;  %s5052_s15 = scalar_lea.vmem %s251_s17, 32 }
  0x52   : > { %p5046_p9 = scmp.ne.s32.totalorder %s251_s17, %s5045_s14  ;;  %p5053_p1 = scmp.lt.s32.totalorder %s251_s17, %s251_s17 }
  0x53   : > { %p5054_p4 = scmp.lt.s32.totalorder %s5052_s15, %s5045_s14 }
  0x54   : > { %p5048_p12 = pnand %p5046_p9, %p5363_p13 }
  0x55   : > { %p5055_p8 = por %p5054_p4, %p5053_p1 }
  0x56   : > { %p5049_p0 = pneg %p5048_p12 }
  0x58   : > { %p5056_p2 = pnand %p5055_p8, %p5049_p0 }
  0x5a   : > { %5059 = shalt.err (!%p5056_p2)
}
  0x5b   : > { %4814 = dma.hbm_to_vmem [thread:$0]  (!%p5347_p11), %s6160_s4, 16, %s251_s17, [#allocation11]  }
  0x5c   : > { %s69_s0 = sadd.s32 1, %s5217_s25  ;;  %s41_s23 = sadd.s32 1, %s5225_s27 }
  0x5d   : > { %p76_p2 = scmp.ne.s32.totalorder %s5217_s25, %s5213_s24  ;;  %p43_p8 = scmp.ge.s32.totalorder %s41_s23, 2 }
  0x5e   : > { %p77_p13 = scmp.eq.s32.totalorder %s5229_s28, 0  ;;  %p6178_p6 = scmp.ne.s32.totalorder %s6171_s7, 0 }
  0x5f   : > { %p4829_p3 = scmp.lt.s32.totalorder %s5229_s28, 2  ;;  %s6195_s23 = smov (%p43_p8, %s41_s23), 0 }
  0x60   : > { %p5434_p10 = por %p6178_p6, %p76_p2  ;;  %p78_p5 = por %p77_p13, %p76_p2 }
  0x61   : > { %s261_s16 = sand.u32 1, %s5217_s25   ;;  %s66_s18 = ssub.s32 %s5225_s27, %s6195_s23 }
  0x62   : > { %p67_p7 = scmp.eq.s32.totalorder %s66_s18, 0  ;;  %s3737_s17 = sshll.u32 %s261_s16, 8 }
  0x63   : > { %s3829_s19 = sshll.u32 %s5225_s27, 12  ;;  %s265_s29 = scalar_lea.vmem [#allocation4], %s3737_s17 }
  0x64   : > { %s5446_s20 = scalar_select %p67_p7, %s5217_s25, %s69_s0  }
  0x65   : > { %s5451_s7 = scalar_lea.hbm %s6157_s1, %s3829_s19  ;;  %s272_s11 = sshll.u32 %s265_s29, 4  ;;  %s5453_s11 = int_to_ptr.vmem [resolvable:$true] %s272_s11 }
  0x66   : > { %p5457_p11 = pnand %p4829_p3, %p78_p5  ;;  %s5461_s15 = scalar_lea.sflag [#allocation5], %s261_s16 }
  0x67   : > { %s5060_s12 = scalar_lea.hbm %s5451_s7, 4096  ;;  %s5065_s18 = scalar_lea.hbm %s6157_s1, 8192 }
  0x68   : > { %p5061_p9 = scmp.ne.s32.totalorder %s5451_s7, %s5060_s12  ;;  %p5062_p12 = pneg %p5457_p11 }
  0x69   : > { %p5066_p4 = scmp.lt.u32.totalorder %s5451_s7, %s6157_s1  ;;  %p5067_p2 = scmp.lt.u32.totalorder %s5065_s18, %s5060_s12 }
  0x6a   : > { %p5063_p0 = pnand %p5062_p12, %p5061_p9  ;;  %p5069_p13 = scmp.lt.u32.totalorder %s5060_s12, %s5451_s7 }
  0x6b   : > { %p5068_p8 = por %p5067_p2, %p5066_p4 }
  0x6c   : > { %p5064_p1 = pneg %p5063_p0 }
  0x6d   : > { %p5070_p6 = por %p5069_p13, %p5068_p8 }
  0x6f   : > { %p5071_p3 = pnand %p5070_p6, %p5064_p1 }
  0x71   : > { %5074 = shalt.err (!%p5071_p3)
}
  0x72   : > { %s5075_s16 = scalar_lea.vmem %s5453_s11, 4096  ;;  %s5236_s21 = smov [#allocation4]  }
  0x73   : > { %p5076_p5 = scmp.ne.s32.totalorder %s5453_s11, %s5075_s16  ;;  %s5080_s22 = sshll.u32 %s5236_s21, 4  ;;  %s5081_s22 = int_to_ptr.vmem [resolvable:$false] %s5080_s22 }
  0x74   : > { %s5082_s29 = scalar_lea.vmem %s5081_s22, 8192  ;;  %p5083_p0 = scmp.lt.s32.totalorder %s5453_s11, %s5081_s22 }
  0x75   : > { %p5078_p7 = pnand %p5076_p5, %p5062_p12  ;;  %p5084_p4 = scmp.lt.s32.totalorder %s5082_s29, %s5075_s16 }
  0x77   : > { %p5079_p9 = pneg %p5078_p7  ;;  %p5085_p2 = por %p5084_p4, %p5083_p0 }
  0x79   : > { %p5086_p8 = pnand %p5085_p2, %p5079_p9 }
  0x7b   : > { %5089 = shalt.err (!%p5086_p8)
}
  0x7c   : > { %s5237_s12 = smov 128   ;;  %s5238_s9 = smov 8  }
  0x7d   : > { %4818 = dma.hbm_to_vmem [thread:$0]  (!%p5457_p11), %s5451_s7, 4096, %s5453_s11, %s5461_s15, %s5237_s12, %s5237_s12, %s5238_s9  }
  0x7e   : > { %p6181_p12 = scmp.ne.s32.totalorder %s6175_s10, 0 }
  0x7f   : > { %s5492_s0 = sand.u32 (!%p6181_p12), 1, %s5213_s24   ;;  %p6182_p1 = scmp.ne.s32.totalorder (!%p6181_p12), %s6172_s8, 0 }
  0x80   : > { %284 = sbr.rel (%p6181_p12) target bundleno = 960 (0x3c0), region = 40  ;;  %s3741_s18 = sshll.u32 (!%p6181_p12), %s5492_s0, 8 }
  0x81   : > { %s287_s17 = scalar_lea.sflag (!%p6181_p12), [#allocation5], %s5492_s0  ;;  %s5498_s19 = scalar_lea.vmem (!%p6181_p12), [#allocation4], %s3741_s18 }
  0x87   : > { %5171 = dma.done.wait (%p6182_p1), %s287_s17, 4096  }
  0x88   : > { %5173 = vsyncadd (%p6182_p1), %s287_s17, 4294963200  ;;  %p6183_p11 = scmp.ne.s32.totalorder %s6170_s30, 0 }
  0x8a   : > { %5175 = dma.done.wait (%p6183_p11), [#allocation8], 9232  }
  0x8b   : > { %5177 = vsyncadd (%p6183_p11), [#allocation8], 4294958064 }
  0x8c   : > { %5179 = dma.done.wait (%p6183_p11), [#allocation11], 16  }
  0x8d   : > { %5181 = vsyncadd (%p6183_p11), [#allocation11], 4294967280  ;;  %s5512_s10 = sld [smem:[#allocation3]]  ;;  %v5239_v0 = vmov 0.0   ;;  %v4892_v2 = vld [vmem:[#allocation7 + $0x40] sm:$0xff]   ;;  %v4894_v4 = vld [vmem:[#allocation7 + $0x48] sm:$0xff]  }
  0x8e   : > { %346 = vst [vmem:[#allocation2] sm:$0xff] %v5239_v0  ;;  %347 = vst [vmem:[#allocation2 + $0x8] sm:$0xff] %v5239_v0  ;;  %v4893_v3 = vld [vmem:[#allocation7 + $0x100] sm:$0xff]   ;;  %4047 = vmatprep.subr.bf16.mxu1 %v4892_v2  ;;  %v4895_v5 = vld [vmem:[#allocation7 + $0x108] sm:$0xff]   ;;  %s5964_s8 = scalar_lea.vmem [#allocation12], %s3741_s18  ;;  %vm3436_vm0 = vcmask 0  }
  0x8f   : > { %348 = vst [vmem:[#allocation2 + $0x10] sm:$0x3] %v5239_v0  ;;  %349 = vst [vmem:[#allocation2 + $0x18] sm:$0xff] %v5239_v0  ;;  %4239 = vmatprep.subr.bf16.mxu0 %v4893_v3  ;;  %4048 = vmatpush3.bf16.msra.mxu1 %v4892_v2  ;;  %v4896_v6 = vld [vmem:[#allocation7 + $0x50] sm:$0xff]   ;;  %v4898_v8 = vld [vmem:[#allocation7 + $0x58] sm:$0xff]   ;;  %s6062_s7 = scalar_lea.vmem [#allocation13], %s5492_s0 }
  0x90   : > { %350 = vst [vmem:[#allocation2 + $0x20] sm:$0xff] %v5239_v0  ;;  %351 = vst [vmem:[#allocation2 + $0x28] sm:$0x3] %v5239_v0  ;;  %4240 = vmatpush3.bf16.msra.mxu0 %v4893_v3  ;;  %4049 = vmatprep.subr.bf16.mxu1 %v4894_v4  ;;  %v4897_v7 = vld [vmem:[#allocation7 + $0x110] sm:$0xff]   ;;  %v4899_v9 = vld [vmem:[#allocation7 + $0x118] sm:$0xff]   ;;  %s3830_s11 = sshll.u32 %s5221_s26, 12 }
  0x91   : > { %352 = vst [vmem:[#allocation2 + $0x30] sm:$0xff] %v5239_v0  ;;  %353 = vst [vmem:[#allocation2 + $0x38] sm:$0xff] %v5239_v0  ;;  %4241 = vmatprep.subr.bf16.mxu0 %v4895_v5  ;;  %v4900_v11 = vld [vmem:[#allocation7 + $0x60] sm:$0xff]   ;;  %v4902_v15 = vld [vmem:[#allocation7 + $0x68] sm:$0xff]   ;;  %s6070_s16 = scalar_lea.hbm %s6161_s5, %s3830_s11  ;;  %s3568_s21 = sshll.u32 %s5964_s8, 4  ;;  %s6073_s21 = int_to_ptr.vmem [resolvable:$true] %s3568_s21 }
  0x92   : > { %354 = vst [vmem:[#allocation2 + $0x40] sm:$0x3] %v5239_v0  ;;  %355 = vst [vmem:[#allocation2 + $0x48] sm:$0xff] %v5239_v0  ;;  %v4901_v12 = vld [vmem:[#allocation7 + $0x120] sm:$0xff]   ;;  %v4903_v17 = vld [vmem:[#allocation7 + $0x128] sm:$0xff]   ;;  %s3548_s22 = scalar_lea.sflag [#allocation6], %s5492_s0 }
  0x93   : > { %356 = vst [vmem:[#allocation2 + $0x50] sm:$0xff] %v5239_v0  ;;  %357 = vst [vmem:[#allocation2 + $0x58] sm:$0x3] %v5239_v0  ;;  %v338_v1 = vstv %s5512_s10  ;;  %4050 = vmatpush3.bf16.msra.mxu1 %v4894_v4  ;;  %v4904_v18 = vld [vmem:[#allocation7 + $0x70] sm:$0xff]   ;;  %v4906_v20 = vld [vmem:[#allocation7 + $0x78] sm:$0xff]   ;;  %s5090_s29 = scalar_lea.vmem %s6073_s21, 4096 }
  0x94   : > { %358 = vst [vmem:[#allocation2 + $0x60] sm:$0xff] %v5239_v0  ;;  %359 = vst [vmem:[#allocation2 + $0x68] sm:$0xff] %v5239_v0  ;;  %4964 = vrcp.f32 %v338_v1  ;;  %4242 = vmatpush3.bf16.msra.mxu0 %v4895_v5  ;;  %4051 = vmatprep.subr.bf16.mxu1 %v4896_v6  ;;  %v4905_v19 = vld [vmem:[#allocation7 + $0x130] sm:$0xff]   ;;  %v4907_v21 = vld [vmem:[#allocation7 + $0x138] sm:$0xff]   ;;  %p5091_p13 = scmp.ne.s32.totalorder %s6073_s21, %s5090_s29  ;;  %s5240_s12 = smov [#allocation12]  }
  0x95   : > { %360 = vst [vmem:[#allocation2 + $0x70] sm:$0x3] %v5239_v0  ;;  %361 = vst [vmem:[#allocation2 + $0x78] sm:$0xff] %v5239_v0  ;;  %4243 = vmatprep.subr.bf16.mxu0 %v4897_v7  ;;  %v703_v13 = vld [vmem:[#allocation2 + $0x1] sm:$0xff]  ;;  %v5517_v22 = vld [vmem:[#allocation7] sm:$0xff]   ;;  %s5094_s9 = sshll.u32 %s5240_s12, 4  ;;  %s5095_s9 = int_to_ptr.vmem [resolvable:$false] %s5094_s9 }
  0x96   : > { %362 = vst [vmem:[#allocation2 + $0x80] sm:$0xff] %v5239_v0  ;;  %363 = vst [vmem:[#allocation2 + $0x88] sm:$0x3] %v5239_v0  ;;  %v704_v14 = vld [vmem:[#allocation2 + $0x9] sm:$0xff]  ;;  %v407_v25 = vld [vmem:[%s5498_s19 + $0x8] sm:$0xff]  ;;  %p5092_p6 = pnand %p5091_p13, %p5434_p10  ;;  %s5096_s18 = scalar_lea.vmem %s5095_s9, 8192 }
  0x97   : > { %364 = vst [vmem:[#allocation2 + $0x90] sm:$0xff] %v5239_v0  ;;  %365 = vst [vmem:[#allocation2 + $0x98] sm:$0xff] %v5239_v0  ;;  %4052 = vmatpush3.bf16.msra.mxu1 %v4896_v6  ;;  %v735_v16 = vpack.c.bf16 %v704_v14, %v703_v13  ;;  %v5519_v23 = vld [vmem:[#allocation7 + $0x140] sm:$0xff]   ;;  %v408_v26 = vld [vmem:[%s5498_s19 + $0x10] sm:$0xff]  ;;  %p5097_p5 = scmp.lt.s32.totalorder %s6073_s21, %s5095_s9  ;;  %p5098_p7 = scmp.lt.s32.totalorder %s5096_s18, %s5090_s29 }
  0x98   : > { %366 = vst [vmem:[#allocation2 + $0xa0] sm:$0x3] %v5239_v0  ;;  %367 = vst [vmem:[#allocation2 + $0xa8] sm:$0xff] %v5239_v0  ;;  %4244 = vmatpush3.bf16.msra.mxu0 %v4897_v7  ;;  %4053 = vmatprep.subr.bf16.mxu1 %v4898_v8  ;;  %v406_v24 = vld [vmem:[%s5498_s19] sm:$0xff]  ;;  %v409_v27 = vld [vmem:[%s5498_s19 + $0x18] sm:$0xff]  ;;  %p5093_p3 = pneg %p5092_p6 }
  0x99   : > { %368 = vst [vmem:[#allocation2 + $0xb0] sm:$0xff] %v5239_v0  ;;  %369 = vst [vmem:[#allocation2 + $0xb8] sm:$0x3] %v5239_v0  ;;  %4245 = vmatprep.subr.bf16.mxu0 %v4899_v9  ;;  %4063 = vmatprep.mubr.bf16.mxu1 %v735_v16  ;;  %v410_v28 = vld [vmem:[%s5498_s19 + $0x20] sm:$0xff]  ;;  %v411_v29 = vld [vmem:[%s5498_s19 + $0x28] sm:$0xff]  ;;  %p5099_p9 = por %p5098_p7, %p5097_p5 }
  0x9a   : > { %370 = vst [vmem:[#allocation2 + $0xc0] sm:$0xff] %v5239_v0  ;;  %371 = vst [vmem:[#allocation2 + $0xc8] sm:$0xff] %v5239_v0  ;;  %v412_v30 = vld [vmem:[%s5498_s19 + $0x30] sm:$0xff]  ;;  %v413_v31 = vld [vmem:[%s5498_s19 + $0x38] sm:$0xff] }
  0x9b   : > { %372 = vst [vmem:[#allocation2 + $0xd0] sm:$0x3] %v5239_v0  ;;  %373 = vst [vmem:[#allocation2 + $0xd8] sm:$0xff] %v5239_v0  ;;  %4054 = vmatpush3.bf16.msra.mxu1 %v4898_v8  ;;  %v414_v49 = vld [vmem:[%s5498_s19 + $0x40] sm:$0xff]  ;;  %v415_v50 = vld [vmem:[%s5498_s19 + $0x48] sm:$0xff]  ;;  %p5100_p0 = pnand %p5099_p9, %p5093_p3 }
  0x9c   : > { %374 = vst [vmem:[#allocation2 + $0xe0] sm:$0xff] %v5239_v0  ;;  %375 = vst [vmem:[#allocation2 + $0xe8] sm:$0x3] %v5239_v0  ;;  %4246 = vmatpush3.bf16.msra.mxu0 %v4899_v9  ;;  %4055 = vmatprep.subr.bf16.mxu1 %v4900_v11  ;;  %v416_v55 = vld [vmem:[%s5498_s19 + $0x50] sm:$0xff]  ;;  %v417_v56 = vld [vmem:[%s5498_s19 + $0x58] sm:$0xff] }
  0x9d   : > { %376 = vst [vmem:[#allocation2 + $0xf0] sm:$0xff] %v5239_v0  ;;  %377 = vst [vmem:[#allocation2 + $0xf8] sm:$0xff] %v5239_v0  ;;  %4247 = vmatprep.subr.bf16.mxu0 %v4901_v12  ;;  %v418_v61 = vld [vmem:[%s5498_s19 + $0x60] sm:$0xff]  ;;  %v419_v62 = vld [vmem:[%s5498_s19 + $0x68] sm:$0xff] }
  0x9e   : > { %378 = vst [vmem:[#allocation2 + $0x100] sm:$0x3] %v5239_v0  ;;  %379 = vst [vmem:[#allocation2 + $0x108] sm:$0xff] %v5239_v0  ;;  %v4965_v10 = vpop.eup %4964  ;;  %v4911_v4 = vld [vmem:[#allocation7 + $0x8] sm:$0xff]   ;;  %v420_v5 = vld [vmem:[%s5498_s19 + $0x70] sm:$0xff] }
  0x9f   : > { %380 = vst [vmem:[#allocation2 + $0x110] sm:$0xff] %v5239_v0  ;;  %381 = vst [vmem:[#allocation2 + $0x118] sm:$0x3] %v5239_v0  ;;  %4056 = vmatpush3.bf16.msra.mxu1 %v4900_v11  ;;  %v421_v6 = vld [vmem:[%s5498_s19 + $0x78] sm:$0xff] }
  0xa0   : > { %382 = vst [vmem:[#allocation2 + $0x120] sm:$0xff] %v5239_v0  ;;  %383 = vst [vmem:[#allocation2 + $0x128] sm:$0xff] %v5239_v0  ;;  %4248 = vmatpush3.bf16.msra.mxu0 %v4901_v12  ;;  %4057 = vmatprep.subr.bf16.mxu1 %v4902_v15 }
  0xa1   : > { %384 = vst [vmem:[#allocation2 + $0x130] sm:$0x3] %v5239_v0  ;;  %385 = vst [vmem:[#allocation2 + $0x138] sm:$0xff] %v5239_v0  ;;  %4249 = vmatprep.subr.bf16.mxu0 %v4903_v17 }
  0xa2   : > { %386 = vst [vmem:[#allocation2 + $0x140] sm:$0xff] %v5239_v0  ;;  %387 = vst [vmem:[#allocation2 + $0x148] sm:$0x3] %v5239_v0 }
  0xa3   : > { %388 = vst [vmem:[#allocation2 + $0x150] sm:$0xff] %v5239_v0  ;;  %389 = vst [vmem:[#allocation2 + $0x158] sm:$0xff] %v5239_v0  ;;  %4058 = vmatpush3.bf16.msra.mxu1 %v4902_v15 }
  0xa4   : > { %390 = vst [vmem:[#allocation2 + $0x160] sm:$0x3] %v5239_v0  ;;  %391 = vst [vmem:[#allocation2 + $0x168] sm:$0xff] %v5239_v0  ;;  %4250 = vmatpush3.bf16.msra.mxu0 %v4903_v17  ;;  %4059 = vmatprep.subr.bf16.mxu1 %v4904_v18 }
  0xa5   : > { %392 = vst [vmem:[#allocation2 + $0x170] sm:$0xff] %v5239_v0  ;;  %393 = vst [vmem:[#allocation2 + $0x178] sm:$0x3] %v5239_v0  ;;  %4251 = vmatprep.subr.bf16.mxu0 %v4905_v19 }
  0xa6   : > { %394 = vst [vmem:[#allocation2 + $0x180] sm:$0xff] %v5239_v0  ;;  %395 = vst [vmem:[#allocation2 + $0x188] sm:$0xff] %v5239_v0 }
  0xa7   : > { %396 = vst [vmem:[#allocation2 + $0x190] sm:$0x3] %v5239_v0  ;;  %399 = vst [vmem:[#allocation2 + $0x1a8] sm:$0x3] %v5239_v0  ;;  %4060 = vmatpush3.bf16.msra.mxu1 %v4904_v18  ;;  %v4910_v18 = vld [vmem:[#allocation7 + $0x148] sm:$0xff]  }
  0xa8   : > { %401 = vst [vmem:[#allocation2 + $0x198] sm:$0xff] %v5239_v0  ;;  %402 = vst [vmem:[#allocation2 + $0x1a0] sm:$0xff] %v5239_v0  ;;  %4252 = vmatpush3.bf16.msra.mxu0 %v4905_v19  ;;  %4061 = vmatprep.subr.bf16.mxu1 %v4906_v20 }
  0xa9   : > { %403 = vst [vmem:[#allocation2 + $0x1a8] sm:$0x3] %v5239_v0  ;;  %4751 = vpush %v4965_v10  ;;  %4253 = vmatprep.subr.bf16.mxu0 %v4907_v21 }
  0xab   : > { %4062 = vmatpush3.bf16.msra.mxu1 %v4906_v20 }
  0xac   : > { %4254 = vmatpush3.bf16.msra.mxu0 %v4907_v21  ;;  %4095 = vmatprep.subr.bf16.mxu1 %v5517_v22  ;;  %v4914_v21 = vld [vmem:[#allocation7 + $0x10] sm:$0xff]  }
  0xad   : > { %4287 = vmatprep.subr.bf16.mxu0 %v5519_v23 }
  0xda   : > { %s4752_s30 = spop %4751 }
  0xdb   : > { %v5531_v32 = vstv %s4752_s30 }
  0xdc   : > { %v439_v33 = vmul.f32 %v5531_v32, %v406_v24  ;;  %v440_v34 = vmul.f32 %v5531_v32, %v407_v25  ;;  %v441_v35 = vmul.f32 %v5531_v32, %v408_v26  ;;  %v442_v36 = vmul.f32 %v5531_v32, %v409_v27 }
  0xdd   : > { %v443_v37 = vmul.f32 %v5531_v32, %v410_v28  ;;  %v444_v38 = vmul.f32 %v5531_v32, %v411_v29  ;;  %v445_v39 = vmul.f32 %v5531_v32, %v412_v30  ;;  %v446_v40 = vmul.f32 %v5531_v32, %v413_v31  ;;  %v4912_v30 = vld [vmem:[#allocation7 + $0x150] sm:$0xff]  }
  0xde   : > { %v4753_v41 = vround.rtne.f32 %v439_v33  ;;  %v4754_v42 = vround.rtne.f32 %v440_v34  ;;  %v4755_v43 = vround.rtne.f32 %v441_v35  ;;  %v4756_v44 = vround.rtne.f32 %v442_v36  ;;  %v422_v36 = vld [vmem:[%s5498_s19 + $0x80] sm:$0xff] }
  0xdf   : > { %v4757_v45 = vround.rtne.f32 %v443_v37  ;;  %v4758_v46 = vround.rtne.f32 %v444_v38  ;;  %v4759_v47 = vround.rtne.f32 %v445_v39  ;;  %v4760_v48 = vround.rtne.f32 %v446_v40 }
  0xe0   : > { %v503_v51 = vmax.f32 %v4753_v41, -128.0  ;;  %v504_v52 = vmax.f32 %v4754_v42, -128.0  ;;  %v505_v53 = vmax.f32 %v4755_v43, -128.0  ;;  %v506_v54 = vmax.f32 %v4756_v44, -128.0 }
  0xe1   : > { %v507_v57 = vmax.f32 %v4757_v45, -128.0  ;;  %v508_v58 = vmax.f32 %v4758_v46, -128.0  ;;  %v5545_v59 = vmax.f32 %v4759_v47, -128.0  ;;  %v5547_v60 = vmax.f32 %v4760_v48, -128.0  ;;  %v423_v47 = vld [vmem:[%s5498_s19 + $0x88] sm:$0xff]  ;;  %v424_v48 = vld [vmem:[%s5498_s19 + $0x90] sm:$0xff] }
  0xe2   : > { %v535_v63 = vmin.f32 %v503_v51, 127.0  ;;  %v536_v0 = vmin.f32 %v504_v52, 127.0  ;;  %v537_v2 = vmin.f32 %v505_v53, 127.0  ;;  %v538_v3 = vmin.f32 %v506_v54, 127.0  ;;  %v4917_v51 = vld [vmem:[#allocation7 + $0x18] sm:$0xff]  }
  0xe3   : > { %v539_v7 = vmin.f32 %v507_v57, 127.0  ;;  %v540_v8 = vmin.f32 %v508_v58, 127.0  ;;  %v541_v9 = vmin.f32 %v5545_v59, 127.0  ;;  %v542_v10 = vmin.f32 %v5547_v60, 127.0  ;;  %v425_v52 = vld [vmem:[%s5498_s19 + $0x98] sm:$0xff]  ;;  %v426_v57 = vld [vmem:[%s5498_s19 + $0xa0] sm:$0xff] }
  0xe4   : > { %568 = vst [vmem:[#allocation2 + $0x19] sm:$0xff] %v535_v63  ;;  %569 = vst [vmem:[#allocation2 + $0x21] sm:$0xff] %v536_v0  ;;  %v736_v11 = vpack.c.bf16 %v536_v0, %v535_v63  ;;  %v737_v12 = vpack.c.bf16 %v538_v3, %v537_v2  ;;  %v447_v13 = vmul.f32 %v5531_v32, %v414_v49  ;;  %v4913_v58 = vld [vmem:[#allocation7 + $0x158] sm:$0xff]  }
  0xe5   : > { %570 = vst [vmem:[#allocation2 + $0x31] sm:$0xff] %v537_v2  ;;  %571 = vst [vmem:[#allocation2 + $0x39] sm:$0xff] %v538_v3  ;;  %v448_v14 = vmul.f32 %v5531_v32, %v415_v50  ;;  %v1829_v15 = vpack.c.bf16 %v540_v8, %v539_v7  ;;  %v449_v16 = vmul.f32 %v5531_v32, %v416_v55  ;;  %v429_v3 = vld [vmem:[%s5498_s19 + $0xb8] sm:$0xff] }
  0xe6   : > { %572 = vst [vmem:[#allocation2 + $0x49] sm:$0xff] %v539_v7  ;;  %573 = vst [vmem:[#allocation2 + $0x51] sm:$0xff] %v540_v8  ;;  %v450_v17 = vmul.f32 %v5531_v32, %v417_v56  ;;  %4064 = vmatmul.mubr.bf16.vlgmr.msra.gmra.mrb[0].mxu1 %v736_v11  ;;  %4255 = vmatprep.mubr.bf16.mxu0 %v736_v11  ;;  %v4761_v19 = vround.rtne.f32 %v447_v13  ;;  %v451_v24 = vmul.f32 %v5531_v32, %v418_v61  ;;  %v427_v61 = vld [vmem:[%s5498_s19 + $0xa8] sm:$0xff] }
  0xe7   : > { %574 = vst [vmem:[#allocation2 + $0x61] sm:$0xff] %v541_v9  ;;  %575 = vst [vmem:[#allocation2 + $0x69] sm:$0xff] %v542_v10  ;;  %v4762_v20 = vround.rtne.f32 %v448_v14  ;;  %v452_v25 = vmul.f32 %v5531_v32, %v419_v62  ;;  %4067 = vmatprep.mubr.bf16.mxu1 %v737_v12  ;;  %4096 = vmatpush3.bf16.msra.mxu1 %v5517_v22  ;;  %v4763_v26 = vround.rtne.f32 %v449_v16  ;;  %v428_v62 = vld [vmem:[%s5498_s19 + $0xb0] sm:$0xff] }
  0xe8   : > { %v4764_v27 = vround.rtne.f32 %v450_v17  ;;  %v453_v28 = vmul.f32 %v5531_v32, %v420_v5  ;;  %v454_v29 = vmul.f32 %v5531_v32, %v421_v6  ;;  %4256 = vmatmul.mubr.bf16.vlgmr.msra.gmra.mrb[0].mxu0 %v737_v12  ;;  %4097 = vmatprep.subr.bf16.mxu1 %v4911_v4  ;;  %v511_v31 = vmax.f32 %v4761_v19, -128.0  ;;  %v4920_v5 = vld [vmem:[#allocation7 + $0x20] sm:$0xff]  }
  0xe9   : > { %v512_v33 = vmax.f32 %v4762_v20, -128.0  ;;  %v4765_v34 = vround.rtne.f32 %v451_v24  ;;  %v4766_v35 = vround.rtne.f32 %v452_v25  ;;  %4288 = vmatpush3.bf16.msra.mxu0 %v5519_v23  ;;  %4259 = vmatprep.mubr.bf16.mxu0 %v1829_v15  ;;  %v5570_v22 = vmax.f32 %v4763_v26, -128.0  ;;  %v4915_v12 = vld [vmem:[#allocation7 + $0x160] sm:$0xff]   ;;  %v4922_v26 = vld [vmem:[#allocation7 + $0x28] sm:$0xff]  }
  0xea   : > { %v5572_v37 = vmax.f32 %v4764_v27, -128.0  ;;  %v4767_v38 = vround.rtne.f32 %v453_v28  ;;  %v4768_v39 = vround.rtne.f32 %v454_v29  ;;  %4289 = vmatprep.subr.bf16.mxu0 %v4910_v18  ;;  %v543_v40 = vmin.f32 %v511_v31, 127.0  ;;  %v430_v28 = vld [vmem:[%s5498_s19 + $0xc0] sm:$0xff] }
  0xeb   : > { %v544_v41 = vmin.f32 %v512_v33, 127.0  ;;  %v5574_v42 = vmax.f32 %v4765_v34, -128.0  ;;  %v5576_v43 = vmax.f32 %v4766_v35, -128.0  ;;  %4098 = vmatpush3.bf16.msra.mxu1 %v4911_v4  ;;  %v545_v23 = vmin.f32 %v5570_v22, 127.0  ;;  %v431_v34 = vld [vmem:[%s5498_s19 + $0xc8] sm:$0xff]  ;;  %v432_v35 = vld [vmem:[%s5498_s19 + $0xd0] sm:$0xff] }
  0xec   : > { %v546_v44 = vmin.f32 %v5572_v37, 127.0  ;;  %v5580_v45 = vmax.f32 %v4767_v38, -128.0  ;;  %v5582_v46 = vmax.f32 %v4768_v39, -128.0  ;;  %576 = vst [vmem:[#allocation2 + $0x79] sm:$0xff] %v543_v40  ;;  %4099 = vmatprep.subr.bf16.mxu1 %v4914_v21  ;;  %v739_v53 = vpack.c.bf16 %v542_v10, %v541_v9  ;;  %v4916_v38 = vld [vmem:[#allocation7 + $0x168] sm:$0xff]  }
  0xed   : > { %577 = vst [vmem:[#allocation2 + $0x81] sm:$0xff] %v544_v41  ;;  %v547_v49 = vmin.f32 %v5574_v42, 127.0  ;;  %v548_v50 = vmin.f32 %v5576_v43, 127.0  ;;  %4290 = vmatpush3.bf16.msra.mxu0 %v4910_v18  ;;  %578 = vst [vmem:[#allocation2 + $0x91] sm:$0xff] %v545_v23  ;;  %v455_v56 = vmul.f32 %v5531_v32, %v422_v36  ;;  %v456_v59 = vmul.f32 %v5531_v32, %v423_v47  ;;  %v433_v36 = vld [vmem:[%s5498_s19 + $0xd8] sm:$0xff] }
  0xee   : > { %579 = vst [vmem:[#allocation2 + $0x99] sm:$0xff] %v546_v44  ;;  %v549_v54 = vmin.f32 %v5580_v45, 127.0  ;;  %v550_v55 = vmin.f32 %v5582_v46, 127.0  ;;  %4068 = vmatmul.mubr.bf16.gmra.mrb[4].mxu1 %v1829_v15  ;;  %4291 = vmatprep.subr.bf16.mxu0 %v4912_v30  ;;  %v457_v60 = vmul.f32 %v5531_v32, %v424_v48  ;;  %v1831_v63 = vpack.c.bf16 %v544_v41, %v543_v40 }
  0xef   : > { %580 = vst [vmem:[#allocation2 + $0xa9] sm:$0xff] %v547_v49  ;;  %581 = vst [vmem:[#allocation2 + $0xb1] sm:$0xff] %v548_v50  ;;  %4071 = vmatprep.mubr.bf16.mxu1 %v739_v53  ;;  %4100 = vmatpush3.bf16.msra.mxu1 %v4914_v21  ;;  %v4769_v0 = vround.rtne.f32 %v455_v56  ;;  %v458_v2 = vmul.f32 %v5531_v32, %v425_v52  ;;  %v4770_v4 = vround.rtne.f32 %v456_v59  ;;  %v4918_v52 = vld [vmem:[#allocation7 + $0x170] sm:$0xff]  }
  0xf0   : > { %582 = vst [vmem:[#allocation2 + $0xc1] sm:$0xff] %v549_v54  ;;  %583 = vst [vmem:[#allocation2 + $0xc9] sm:$0xff] %v550_v55  ;;  %4260 = vmatmul.mubr.bf16.gmra.mrb[4].mxu0 %v739_v53  ;;  %4101 = vmatprep.subr.bf16.mxu1 %v4917_v51  ;;  %v4771_v6 = vround.rtne.f32 %v457_v60  ;;  %v459_v7 = vmul.f32 %v5531_v32, %v426_v57  ;;  %v460_v10 = vmul.f32 %v5531_v32, %v427_v61 }
  0xf1   : > { %4292 = vmatpush3.bf16.msra.mxu0 %v4912_v30  ;;  %4263 = vmatprep.mubr.bf16.mxu0 %v1831_v63  ;;  %v5616_v8 = vmax.f32 %v4769_v0, -128.0  ;;  %v4772_v9 = vround.rtne.f32 %v458_v2  ;;  %v461_v11 = vmul.f32 %v5531_v32, %v428_v62  ;;  %v5620_v13 = vmax.f32 %v4770_v4, -128.0  ;;  %v4926_v62 = vld [vmem:[#allocation7 + $0x38] sm:$0xff]  }
  0xf2   : > { %4293 = vmatprep.subr.bf16.mxu0 %v4913_v58  ;;  %v5622_v14 = vmax.f32 %v4771_v6, -128.0  ;;  %v4773_v15 = vround.rtne.f32 %v459_v7  ;;  %v462_v16 = vmul.f32 %v5531_v32, %v429_v3  ;;  %v4774_v19 = vround.rtne.f32 %v460_v10 }
  0xf3   : > { %4102 = vmatpush3.bf16.msra.mxu1 %v4917_v51  ;;  %v551_v17 = vmin.f32 %v5616_v8, 127.0  ;;  %v5626_v18 = vmax.f32 %v4772_v9, -128.0  ;;  %v4775_v20 = vround.rtne.f32 %v461_v11  ;;  %v552_v21 = vmin.f32 %v5620_v13, 127.0  ;;  %v4919_v9 = vld [vmem:[#allocation7 + $0x178] sm:$0xff]   ;;  %v4923_v8 = vld [vmem:[#allocation7 + $0x188] sm:$0xff]  }
  0xf4   : > { %4103 = vmatprep.subr.bf16.mxu1 %v4920_v5  ;;  %v553_v24 = vmin.f32 %v5622_v14, 127.0  ;;  %v5630_v25 = vmax.f32 %v4773_v15, -128.0  ;;  %v4776_v27 = vround.rtne.f32 %v462_v16  ;;  %v741_v29 = vpack.c.bf16 %v546_v44, %v545_v23  ;;  %v4924_v44 = vld [vmem:[#allocation7 + $0x30] sm:$0xff]   ;;  %v437_v16 = vld [vmem:[%s5498_s19 + $0xf8] sm:$0xff] }
  0xf5   : > { %4294 = vmatpush3.bf16.msra.mxu0 %v4913_v58  ;;  %584 = vst [vmem:[#allocation2 + $0xd9] sm:$0xff] %v551_v17  ;;  %v554_v30 = vmin.f32 %v5626_v18, 127.0  ;;  %v5640_v31 = vmax.f32 %v4774_v19, -128.0  ;;  %v5642_v33 = vmax.f32 %v4775_v20, -128.0  ;;  %585 = vst [vmem:[#allocation2 + $0xe1] sm:$0xff] %v552_v21  ;;  %v1833_v39 = vpack.c.bf16 %v548_v50, %v547_v49  ;;  %v434_v49 = vld [vmem:[%s5498_s19 + $0xe0] sm:$0xff] }
  0xf6   : > { %4072 = vmatmul.mubr.bf16.gmra.mrb[8].mxu1 %v1831_v63  ;;  %4295 = vmatprep.subr.bf16.mxu0 %v4915_v12  ;;  %586 = vst [vmem:[#allocation2 + $0xf1] sm:$0xff] %v553_v24  ;;  %v555_v22 = vmin.f32 %v5630_v25, 127.0  ;;  %v5652_v37 = vmax.f32 %v4776_v27, -128.0  ;;  %v463_v23 = vmul.f32 %v5531_v32, %v430_v28  ;;  %v464_v43 = vmul.f32 %v5531_v32, %v431_v34  ;;  %v435_v50 = vld [vmem:[%s5498_s19 + $0xe8] sm:$0xff]  ;;  %v2101_v63 = vld [vmem:[#allocation2 + $0x22] sm:$0xff]  ;;  %v4929_v25 = vld [vmem:[#allocation7 + $0x1a0] sm:$0xff]  }
  0xf7   : > { %4075 = vmatprep.mubr.bf16.mxu1 %v741_v29  ;;  %587 = vst [vmem:[#allocation2 + $0xf9] sm:$0xff] %v554_v30  ;;  %4104 = vmatpush3.bf16.msra.mxu1 %v4920_v5  ;;  %v556_v40 = vmin.f32 %v5640_v31, 127.0  ;;  %v557_v41 = vmin.f32 %v5642_v33, 127.0  ;;  %v465_v47 = vmul.f32 %v5531_v32, %v432_v35  ;;  %v466_v48 = vmul.f32 %v5531_v32, %v433_v36  ;;  %v2100_v58 = vld [vmem:[#allocation2 + $0x1a] sm:$0xff]  ;;  %v2102_v27 = vld [vmem:[#allocation2 + $0x32] sm:$0xff]  ;;  %v2104_v36 = vld [vmem:[#allocation2 + $0x4a] sm:$0xff] }
  0xf8   : > { %4264 = vmatmul.mubr.bf16.gmra.mrb[8].mxu0 %v741_v29  ;;  %588 = vst [vmem:[#allocation2 + $0x109] sm:$0xff] %v555_v22  ;;  %4105 = vmatprep.subr.bf16.mxu1 %v4922_v26  ;;  %v558_v42 = vmin.f32 %v5652_v37, 127.0  ;;  %v4777_v51 = vround.rtne.f32 %v463_v23  ;;  %v4778_v53 = vround.rtne.f32 %v464_v43  ;;  %v467_v60 = vmul.f32 %v5531_v32, %v434_v49  ;;  %v436_v15 = vld [vmem:[%s5498_s19 + $0xf0] sm:$0xff]  ;;  %v2110_v31 = vld [vmem:[#allocation2 + $0x92] sm:$0xff]  ;;  %v2112_v37 = vld [vmem:[#allocation2 + $0xaa] sm:$0xff] }
  0xf9   : > { %4296 = vmatpush3.bf16.msra.mxu0 %v4915_v12  ;;  %4267 = vmatprep.mubr.bf16.mxu0 %v1833_v39  ;;  %589 = vst [vmem:[#allocation2 + $0x111] sm:$0xff] %v556_v40  ;;  %590 = vst [vmem:[#allocation2 + $0x121] sm:$0xff] %v557_v41  ;;  %v4779_v56 = vround.rtne.f32 %v465_v47  ;;  %v4780_v57 = vround.rtne.f32 %v466_v48  ;;  %v468_v61 = vmul.f32 %v5531_v32, %v435_v50  ;;  %v2103_v28 = vld [vmem:[#allocation2 + $0x3a] sm:$0xff]  ;;  %v2109_v50 = vld [vmem:[#allocation2 + $0x82] sm:$0xff] }
  0xfa   : > { %4297 = vmatprep.subr.bf16.mxu0 %v4916_v38  ;;  %591 = vst [vmem:[#allocation2 + $0x129] sm:$0xff] %v558_v42  ;;  %v5677_v59 = vmax.f32 %v4777_v51, -128.0  ;;  %v5681_v0 = vmax.f32 %v4778_v53, -128.0  ;;  %v743_v4 = vpack.c.bf16 %v550_v55, %v549_v54  ;;  %v4781_v6 = vround.rtne.f32 %v467_v60  ;;  %v5709_v55 = vld [vmem:[#allocation7 + $0x80] sm:$0xff]   ;;  %v2108_v49 = vld [vmem:[#allocation2 + $0x7a] sm:$0xff]  ;;  %v4927_v53 = vld [vmem:[#allocation7 + $0x198] sm:$0xff]  }
  0xfb   : > { %4106 = vmatpush3.bf16.msra.mxu1 %v4922_v26  ;;  %v5683_v2 = vmax.f32 %v4779_v56, -128.0  ;;  %v5685_v3 = vmax.f32 %v4780_v57, -128.0  ;;  %v4782_v7 = vround.rtne.f32 %v468_v61  ;;  %v5695_v45 = vpack.c.bf16 %v2101_v63, %v2100_v58  ;;  %v4921_v26 = vld [vmem:[#allocation7 + $0x180] sm:$0xff]   ;;  %v2111_v33 = vld [vmem:[#allocation2 + $0x9a] sm:$0xff]  ;;  %v2114_v60 = vld [vmem:[#allocation2 + $0xc2] sm:$0xff] }
  0xfc   : > { %4107 = vmatprep.subr.bf16.mxu1 %v4924_v44  ;;  %v559_v5 = vmin.f32 %v5677_v59, 127.0  ;;  %v560_v10 = vmin.f32 %v5681_v0, 127.0  ;;  %v5699_v46 = vmax.f32 %v4781_v6, -128.0  ;;  %v469_v29 = vmul.f32 %v5531_v32, %v436_v15  ;;  %v4931_v57 = vld [vmem:[#allocation7 + $0x1a8] sm:$0xff]   ;;  %v4933_v59 = vld [vmem:[#allocation7 + $0x1b0] sm:$0xff]   ;;  %v2115_v61 = vld [vmem:[#allocation2 + $0xca] sm:$0xff] }
  0xfd   : > { %4298 = vmatpush3.bf16.msra.mxu0 %v4916_v38  ;;  %v561_v11 = vmin.f32 %v5683_v2, 127.0  ;;  %v562_v12 = vmin.f32 %v5685_v3, 127.0  ;;  %v5701_v54 = vmax.f32 %v4782_v7, -128.0  ;;  %v470_v34 = vmul.f32 %v5531_v32, %v437_v16  ;;  %v2105_v38 = vld [vmem:[#allocation2 + $0x52] sm:$0xff]  ;;  %v2116_v2 = vld [vmem:[#allocation2 + $0xda] sm:$0xff]  ;;  %v2117_v3 = vld [vmem:[#allocation2 + $0xe2] sm:$0xff] }
  0xfe   : > { %4076 = vmatmul.mubr.bf16.gmra.mrb[12].mxu1 %v1833_v39  ;;  %4299 = vmatprep.subr.bf16.mxu0 %v4918_v52  ;;  %592 = vst [vmem:[#allocation2 + $0x139] sm:$0xff] %v559_v5  ;;  %593 = vst [vmem:[#allocation2 + $0x141] sm:$0xff] %v560_v10  ;;  %v563_v19 = vmin.f32 %v5699_v46, 127.0  ;;  %v744_v35 = vpack.c.bf16 %v552_v21, %v551_v17  ;;  %v745_v39 = vpack.c.bf16 %v554_v30, %v553_v24  ;;  %v4925_v24 = vld [vmem:[#allocation7 + $0x190] sm:$0xff]   ;;  %v641_v7 = vld [vmem:[#allocation2 + $0x18] sm:$0xff] }
  0xff   : > { %4079 = vmatprep.mubr.bf16.mxu1 %v743_v4  ;;  %4108 = vmatpush3.bf16.msra.mxu1 %v4924_v44  ;;  %594 = vst [vmem:[#allocation2 + $0x151] sm:$0xff] %v561_v11  ;;  %595 = vst [vmem:[#allocation2 + $0x159] sm:$0xff] %v562_v12  ;;  %v564_v20 = vmin.f32 %v5701_v54, 127.0  ;;  %v4783_v23 = vround.rtne.f32 %v469_v29  ;;  %v4784_v43 = vround.rtne.f32 %v470_v34  ;;  %v5731_v32 = vpack.c.bf16 %v2103_v28, %v2102_v27  ;;  %v2106_v30 = vld [vmem:[#allocation2 + $0x62] sm:$0xff]  ;;  %v2107_v44 = vld [vmem:[#allocation2 + $0x6a] sm:$0xff] }
 0x100   : > { %4268 = vmatmul.mubr.bf16.gmra.mrb[12].mxu0 %v743_v4  ;;  %4109 = vmatprep.subr.bf16.mxu1 %v4926_v62  ;;  %596 = vst [vmem:[#allocation2 + $0x169] sm:$0xff] %v563_v19  ;;  %v5733_v13 = vpack.c.bf16 %v2105_v38, %v2104_v36  ;;  %v746_v48 = vpack.c.bf16 %v556_v40, %v555_v22  ;;  %v2113_v40 = vld [vmem:[#allocation2 + $0xb2] sm:$0xff]  ;;  %v2119_v54 = vld [vmem:[#allocation2 + $0xfa] sm:$0xff]  ;;  %v2120_v16 = vld [vmem:[#allocation2 + $0x10a] sm:$0xff] }
 0x101   : > { %4300 = vmatpush3.bf16.msra.mxu0 %v4918_v52  ;;  %4303 = vmatprep.mubr.bf16.mxu0 %v5695_v45  ;;  %597 = vst [vmem:[#allocation2 + $0x171] sm:$0xff] %v564_v20  ;;  %v533_v17 = vmax.f32 %v4783_v23, -128.0  ;;  %v534_v21 = vmax.f32 %v4784_v43, -128.0  ;;  %v747_v51 = vpack.c.bf16 %v558_v42, %v557_v41  ;;  %v5747_v52 = vpack.c.bf16 %v2107_v44, %v2106_v30  ;;  %v2118_v46 = vld [vmem:[#allocation2 + $0xf2] sm:$0xff]  ;;  %v4932_v29 = vld [vmem:[#allocation7 + $0x90] sm:$0xff]   ;;  %v645_v34 = vld [vmem:[#allocation2 + $0x48] sm:$0xff] }
 0x102   : > { %4301 = vmatprep.subr.bf16.mxu0 %v4919_v9  ;;  %v5749_v56 = vpack.c.bf16 %v2109_v50, %v2108_v49  ;;  %v748_v22 = vpack.c.bf16 %v560_v10, %v559_v5  ;;  %v749_v41 = vpack.c.bf16 %v562_v12, %v561_v11  ;;  %v5761_v42 = vpack.c.bf16 %v2111_v33, %v2110_v31  ;;  %v4935_v5 = vld [vmem:[#allocation7 + $0x1b8] sm:$0xff]   ;;  %v643_v10 = vld [vmem:[#allocation2 + $0x30] sm:$0xff]  ;;  %v644_v11 = vld [vmem:[#allocation2 + $0x38] sm:$0xff] }
 0x103   : > { %4110 = vmatpush3.bf16.msra.mxu1 %v4926_v62  ;;  %v565_v14 = vmin.f32 %v533_v17, 127.0  ;;  %v566_v18 = vmin.f32 %v534_v21, 127.0  ;;  %v5763_v58 = vpack.c.bf16 %v2113_v40, %v2112_v37  ;;  %v4966_v62 = vld [vmem:[#allocation2] sm:$0xff]  ;;  %v750_v0 = vpack.c.bf16 %v564_v20, %v563_v19  ;;  %v5780_v12 = vld [vmem:[#allocation7 + $0x1c0] sm:$0xff]   ;;  %v4930_v20 = vld [vmem:[#allocation7 + $0x88] sm:$0xff]  }
 0x104   : > { %4143 = vmatprep.subr.bf16.mxu1 %v5709_v55  ;;  %v5767_v63 = vpack.c.bf16 %v4966_v62, %v4966_v62  ;;  %v5773_v4 = vpack.c.bf16 %v2115_v61, %v2114_v60  ;;  %v5775_v6 = vpack.c.bf16 %v2117_v3, %v2116_v2  ;;  %v2121_v19 = vld [vmem:[#allocation2 + $0x112] sm:$0xff]  ;;  %v5787_v27 = vpack.c.bf16 %v2119_v54, %v2118_v46  ;;  %v647_v36 = vld [vmem:[#allocation2 + $0x60] sm:$0xff]  ;;  %v648_v38 = vld [vmem:[#allocation2 + $0x68] sm:$0xff] }
 0x105   : > { %4302 = vmatpush3.bf16.msra.mxu0 %v4919_v9  ;;  %598 = vst [vmem:[#allocation2 + $0x181] sm:$0xff] %v565_v14  ;;  %599 = vst [vmem:[#allocation2 + $0x189] sm:$0xff] %v566_v18  ;;  %v5737_v47 = vpack.c.bf16 %v566_v18, %v565_v14  ;;  %v642_v9 = vld [vmem:[#allocation2 + $0x20] sm:$0xff]  ;;  %v5792_v28 = vpack.c.bf16 %v2121_v19, %v2120_v16  ;;  %v2123_v23 = vld [vmem:[#allocation2 + $0x12a] sm:$0xff]  ;;  %v5798_v21 = vpack.c.bf16 %v648_v38, %v647_v36 }
 0x106   : > { %4080 = vmatmul.mubr.bf16.gmra.mrb[16].mxu1 %v744_v35  ;;  %4335 = vmatprep.subr.bf16.mxu0 %v4921_v26  ;;  %v5782_v15 = vpack.c.bf16 %v642_v9, %v641_v7  ;;  %v646_v35 = vld [vmem:[#allocation2 + $0x50] sm:$0xff]  ;;  %v2125_v17 = vld [vmem:[#allocation2 + $0x142] sm:$0xff]  ;;  %v649_v30 = vld [vmem:[#allocation2 + $0x78] sm:$0xff] }
 0x107   : > { %4083 = vmatprep.mubr.bf16.mxu1 %v745_v39  ;;  %v2122_v39 = vld [vmem:[#allocation2 + $0x122] sm:$0xff]  ;;  %v5796_v43 = vpack.c.bf16 %v646_v35, %v645_v34  ;;  %v652_v49 = vld [vmem:[#allocation2 + $0x98] sm:$0xff]  ;;  %v5826_v9 = vld [vmem:[#allocation7 + $0xc0] sm:$0xff]  }
 0x108   : > { %4304 = vmatmul.mubr.bf16.vlgmr.msra.gmra.mrb[0].mxu0 %v5731_v32  ;;  %v5801_v14 = vpack.c.bf16 %v2123_v23, %v2122_v39  ;;  %v650_v44 = vld [vmem:[#allocation2 + $0x80] sm:$0xff]  ;;  %v2126_v50 = vld [vmem:[#allocation2 + $0x152] sm:$0xff]  ;;  %v656_v61 = vld [vmem:[#allocation2 + $0xc8] sm:$0xff] }
 0x109   : > { %4336 = vmatpush3.bf16.msra.mxu0 %v4921_v26  ;;  %4307 = vmatprep.mubr.bf16.mxu0 %v5733_v13  ;;  %v5784_v26 = vpack.c.bf16 %v644_v11, %v643_v10  ;;  %v2129_v31 = vld [vmem:[#allocation2 + $0x172] sm:$0xff]  ;;  %v655_v60 = vld [vmem:[#allocation2 + $0xc0] sm:$0xff]  ;;  %v4942_v3 = vld [vmem:[#allocation7 + $0xb8] sm:$0xff]  }
 0x10a   : > { %4337 = vmatprep.subr.bf16.mxu0 %v4923_v8  ;;  %v4938_v33 = vld [vmem:[#allocation7 + $0xa8] sm:$0xff]   ;;  %v658_v11 = vld [vmem:[#allocation2 + $0xe0] sm:$0xff]  ;;  %v659_v46 = vld [vmem:[#allocation2 + $0xf0] sm:$0xff] }
 0x10b   : > { %v657_v10 = vld [vmem:[#allocation2 + $0xd8] sm:$0xff]  ;;  %v662_v34 = vld [vmem:[#allocation2 + $0x110] sm:$0xff]  ;;  %v663_v35 = vld [vmem:[#allocation2 + $0x120] sm:$0xff] }
 0x10c   : > { %v2130_v62 = vld [vmem:[#allocation2 + $0x182] sm:$0xff]  ;;  %v660_v54 = vld [vmem:[#allocation2 + $0xf8] sm:$0xff]  ;;  %v5829_v16 = vpack.c.bf16 %v658_v11, %v657_v10 }
 0x10d   : > { %4338 = vmatpush3.bf16.msra.mxu0 %v4923_v8  ;;  %v2124_v8 = vld [vmem:[#allocation2 + $0x13a] sm:$0xff]  ;;  %v5832_v19 = vpack.c.bf16 %v660_v54, %v659_v46  ;;  %v664_v36 = vld [vmem:[#allocation2 + $0x128] sm:$0xff]  ;;  %v2714_v46 = vld [vmem:[#allocation2 + $0x51] sm:$0xff] }
 0x10e   : > { %4084 = vmatmul.mubr.bf16.gmra.mrb[20].mxu1 %v746_v48  ;;  %4339 = vmatprep.subr.bf16.mxu0 %v4925_v24  ;;  %v5804_v18 = vpack.c.bf16 %v2125_v17, %v2124_v8  ;;  %v651_v48 = vld [vmem:[#allocation2 + $0x90] sm:$0xff]  ;;  %v4941_v38 = vld [vmem:[#allocation7 + $0x1d0] sm:$0xff]   ;;  %v5841_v23 = vpack.c.bf16 %v664_v36, %v663_v35  ;;  %v4943_v8 = vld [vmem:[#allocation7 + $0x1d8] sm:$0xff]  }
 0x10f   : > { %4087 = vmatprep.mubr.bf16.mxu1 %v747_v51  ;;  %v2127_v51 = vld [vmem:[#allocation2 + $0x15a] sm:$0xff]  ;;  %v4958_v11 = vld [vmem:[#allocation7 + $0xf8] sm:$0xff]  }
 0x110   : > { %4308 = vmatmul.mubr.bf16.gmra.mrb[4].mxu0 %v5747_v52  ;;  %v5813_v37 = vpack.c.bf16 %v2127_v51, %v2126_v50  ;;  %v666_v17 = vld [vmem:[#allocation2 + $0x140] sm:$0xff]  ;;  %v1186_v51 = vld [vmem:[#allocation2 + $0xa] sm:$0xff] }
 0x111   : > { %4311 = vmatprep.mubr.bf16.mxu0 %v5749_v56  ;;  %4340 = vmatpush3.bf16.msra.mxu0 %v4925_v24  ;;  %v4936_v24 = vld [vmem:[#allocation7 + $0xa0] sm:$0xff]   ;;  %v1185_v50 = vld [vmem:[#allocation2 + $0x2] sm:$0xff]  ;;  %v2712_v10 = vld [vmem:[#allocation2 + $0x39] sm:$0xff] }
 0x112   : > { %4341 = vmatprep.subr.bf16.mxu0 %v4927_v53  ;;  %v2715_v54 = vld [vmem:[#allocation2 + $0x61] sm:$0xff]  ;;  %v2717_v35 = vld [vmem:[#allocation2 + $0x79] sm:$0xff] }
 0x113   : > { %v2718_v36 = vld [vmem:[#allocation2 + $0x81] sm:$0xff] }
 0x115   : > { %4342 = vmatpush3.bf16.msra.mxu0 %v4927_v53  ;;  %v5808_v53 = vpack.c.bf16 %v650_v44, %v649_v30  ;;  %v4945_v30 = vld [vmem:[#allocation7 + $0x1e0] sm:$0xff]  }
 0x116   : > { %4088 = vmatmul.mubr.bf16.gmra.mrb[24].mxu1 %v748_v22  ;;  %4343 = vmatprep.subr.bf16.mxu0 %v4929_v25  ;;  %v5810_v22 = vpack.c.bf16 %v652_v49, %v651_v48  ;;  %v4947_v49 = vld [vmem:[#allocation7 + $0x1e8] sm:$0xff]  }
 0x117   : > { %4091 = vmatprep.mubr.bf16.mxu1 %v749_v41  ;;  %v4940_v41 = vld [vmem:[#allocation7 + $0xb0] sm:$0xff]  }
 0x118   : > { %4312 = vmatmul.mubr.bf16.gmra.mrb[8].mxu0 %v5761_v42 }
 0x119   : > { %4315 = vmatprep.mubr.bf16.mxu0 %v5763_v58  ;;  %4344 = vmatpush3.bf16.msra.mxu0 %v4929_v25  ;;  %v2128_v25 = vld [vmem:[#allocation2 + $0x16a] sm:$0xff] }
 0x11a   : > { %4345 = vmatprep.subr.bf16.mxu0 %v4931_v57  ;;  %v5816_v40 = vpack.c.bf16 %v2129_v31, %v2128_v25  ;;  %v669_v25 = vld [vmem:[#allocation2 + $0x168] sm:$0xff]  ;;  %v670_v31 = vld [vmem:[#allocation2 + $0x170] sm:$0xff] }
 0x11d   : > { %4346 = vmatpush3.bf16.msra.mxu0 %v4931_v57  ;;  %v653_v57 = vld [vmem:[#allocation2 + $0xa8] sm:$0xff] }
 0x11e   : > { %4092 = vmatmul.mubr.bf16.gmra.mrb[28].mxu1 %v750_v0  ;;  %4347 = vmatprep.subr.bf16.mxu0 %v4933_v59  ;;  %v2131_v0 = vld [vmem:[#allocation2 + $0x18a] sm:$0xff] }
 0x11f   : > { %4111 = vmatprep.mubr.bf16.mxu1 %v5767_v63  ;;  %v2147_v7 = vpack.c.bf16 %v2131_v0, %v2130_v62  ;;  %v4948_v62 = vld [vmem:[#allocation7 + $0xd0] sm:$0xff]   ;;  %v4950_v0 = vld [vmem:[#allocation7 + $0xd8] sm:$0xff]  }
 0x120   : > { %4316 = vmatmul.mubr.bf16.gmra.mrb[12].mxu0 %v5773_v4 }
 0x121   : > { %4319 = vmatprep.mubr.bf16.mxu0 %v5775_v6  ;;  %4348 = vmatpush3.bf16.msra.mxu0 %v4933_v59  ;;  %v654_v59 = vld [vmem:[#allocation2 + $0xb0] sm:$0xff] }
 0x122   : > { %4349 = vmatprep.subr.bf16.mxu0 %v4935_v5  ;;  %v5820_v2 = vpack.c.bf16 %v654_v59, %v653_v57  ;;  %v5855_v57 = vpack.c.bf16 %v670_v31, %v669_v25  ;;  %v4951_v59 = vld [vmem:[#allocation7 + $0x1f8] sm:$0xff]   ;;  %v2725_v25 = vld [vmem:[#allocation2 + $0xd9] sm:$0xff] }
 0x123   : > { %v2726_v31 = vld [vmem:[#allocation2 + $0xe1] sm:$0xff] }
 0x125   : > { %4350 = vmatpush3.bf16.msra.mxu0 %v4935_v5  ;;  %v5822_v5 = vpack.c.bf16 %v656_v61, %v655_v60  ;;  %v4953_v60 = vld [vmem:[#allocation7 + $0x200] sm:$0xff]   ;;  %v4946_v61 = vld [vmem:[#allocation7 + $0xc8] sm:$0xff]  }
 0x126   : > { %4112 = vmatmul.mubr.bf16.vlgmr.msra.gmra.mrb[0].mxu1 %v5782_v15  ;;  %4383 = vmatprep.subr.bf16.mxu0 %v5780_v12 }
 0x127   : > { %4115 = vmatprep.mubr.bf16.mxu1 %v5784_v26  ;;  %4144 = vmatpush3.bf16.msra.mxu1 %v5709_v55  ;;  %v4934_v55 = vld [vmem:[#allocation7 + $0x98] sm:$0xff]  }
 0x128   : > { %4320 = vmatmul.mubr.bf16.gmra.mrb[16].mxu0 %v5787_v27  ;;  %4145 = vmatprep.subr.bf16.mxu1 %v4930_v20 }
 0x129   : > { %4323 = vmatprep.mubr.bf16.mxu0 %v5792_v28 }
 0x12b   : > { %4146 = vmatpush3.bf16.msra.mxu1 %v4930_v20  ;;  %v4939_v20 = vld [vmem:[#allocation7 + $0x1c8] sm:$0xff]  }
 0x12c   : > { %4147 = vmatprep.subr.bf16.mxu1 %v4932_v29 }
 0x12e   : > { %4116 = vmatmul.mubr.bf16.gmra.mrb[4].mxu1 %v5796_v43 }
 0x12f   : > { %4119 = vmatprep.mubr.bf16.mxu1 %v5798_v21  ;;  %4148 = vmatpush3.bf16.msra.mxu1 %v4932_v29  ;;  %v661_v29 = vld [vmem:[#allocation2 + $0x108] sm:$0xff] }
 0x130   : > { %4324 = vmatmul.mubr.bf16.gmra.mrb[20].mxu0 %v5801_v14  ;;  %4149 = vmatprep.subr.bf16.mxu1 %v4934_v55  ;;  %v5839_v39 = vpack.c.bf16 %v662_v34, %v661_v29  ;;  %v5878_v29 = vld [vmem:[#allocation7 + $0x100] sm:$0xff]   ;;  %v4955_v34 = vld [vmem:[#allocation7 + $0x208] sm:$0xff]  }
 0x131   : > { %4327 = vmatprep.mubr.bf16.mxu0 %v5804_v18 }
 0x133   : > { %4150 = vmatpush3.bf16.msra.mxu1 %v4934_v55  ;;  %v667_v55 = vld [vmem:[#allocation2 + $0x150] sm:$0xff] }
 0x134   : > { %4151 = vmatprep.subr.bf16.mxu1 %v4936_v24 }
 0x136   : > { %4120 = vmatmul.mubr.bf16.gmra.mrb[8].mxu1 %v5808_v53 }
 0x137   : > { %4123 = vmatprep.mubr.bf16.mxu1 %v5810_v22  ;;  %4152 = vmatpush3.bf16.msra.mxu1 %v4936_v24  ;;  %v668_v24 = vld [vmem:[#allocation2 + $0x158] sm:$0xff] }
 0x138   : > { %4328 = vmatmul.mubr.bf16.gmra.mrb[24].mxu0 %v5813_v37  ;;  %4153 = vmatprep.subr.bf16.mxu1 %v4938_v33  ;;  %v5849_v48 = vpack.c.bf16 %v668_v24, %v667_v55  ;;  %v2721_v55 = vld [vmem:[#allocation2 + $0xa9] sm:$0xff]  ;;  %v2722_v24 = vld [vmem:[#allocation2 + $0xb1] sm:$0xff] }
 0x139   : > { %4331 = vmatprep.mubr.bf16.mxu0 %v5816_v40 }
 0x13b   : > { %4154 = vmatpush3.bf16.msra.mxu1 %v4938_v33  ;;  %v4949_v33 = vld [vmem:[#allocation7 + $0x1f0] sm:$0xff]  }
 0x13c   : > { %4155 = vmatprep.subr.bf16.mxu1 %v4940_v41 }
 0x13e   : > { %4124 = vmatmul.mubr.bf16.gmra.mrb[12].mxu1 %v5820_v2 }
 0x13f   : > { %4127 = vmatprep.mubr.bf16.mxu1 %v5822_v5  ;;  %4156 = vmatpush3.bf16.msra.mxu1 %v4940_v41  ;;  %v1217_v41 = vpack.c.bf16 %v1186_v51, %v1185_v50  ;;  %v2748_v50 = vpack.c.bf16 %v2722_v24, %v2721_v55  ;;  %v3028_v55 = vld [vmem:[#allocation2 + $0xc2] sm:$0xff]  ;;  %v3029_v24 = vld [vmem:[#allocation2 + $0xca] sm:$0xff] }
 0x140   : > { %4332 = vmatmul.mubr.bf16.gmra.mrb[28].mxu0 %v2147_v7  ;;  %4157 = vmatprep.subr.bf16.mxu1 %v4942_v3  ;;  %v4954_v7 = vld [vmem:[#allocation7 + $0xe8] sm:$0xff]  }
 0x141   : > { %4351 = vmatprep.mubr.bf16.mxu0 %v5784_v26 }
 0x143   : > { %4158 = vmatpush3.bf16.msra.mxu1 %v4942_v3  ;;  %v2435_v3 = vld [vmem:[#allocation2 + $0x188] sm:$0xff] }
 0x144   : > { %4191 = vmatprep.subr.bf16.mxu1 %v5826_v9 }
 0x146   : > { %4128 = vmatmul.mubr.bf16.gmra.mrb[16].mxu1 %v5829_v16 }
 0x147   : > { %4131 = vmatprep.mubr.bf16.mxu1 %v5832_v19 }
 0x148   : > { %4352 = vmatmul.mubr.bf16.vlgmr.msra.gmra.mrb[0].mxu0 %v5796_v43 }
 0x149   : > { %4384 = vmatpush3.bf16.msra.mxu0 %v5780_v12  ;;  %4355 = vmatprep.mubr.bf16.mxu0 %v5798_v21  ;;  %v665_v12 = vld [vmem:[#allocation2 + $0x138] sm:$0xff] }
 0x14a   : > { %4385 = vmatprep.subr.bf16.mxu0 %v4939_v20  ;;  %v5847_v44 = vpack.c.bf16 %v666_v17, %v665_v12  ;;  %v2746_v12 = vpack.c.bf16 %v2718_v36, %v2717_v35  ;;  %v3021_v35 = vld [vmem:[#allocation2 + $0x6a] sm:$0xff] }
 0x14d   : > { %4386 = vmatpush3.bf16.msra.mxu0 %v4939_v20  ;;  %v2716_v20 = vld [vmem:[#allocation2 + $0x69] sm:$0xff] }
 0x14e   : > { %4132 = vmatmul.mubr.bf16.gmra.mrb[20].mxu1 %v5839_v39  ;;  %4387 = vmatprep.subr.bf16.mxu0 %v4941_v38 }
 0x14f   : > { %4135 = vmatprep.mubr.bf16.mxu1 %v5841_v23 }
 0x150   : > { %4356 = vmatmul.mubr.bf16.gmra.mrb[4].mxu0 %v5808_v53 }
 0x151   : > { %4359 = vmatprep.mubr.bf16.mxu0 %v5810_v22  ;;  %4388 = vmatpush3.bf16.msra.mxu0 %v4941_v38  ;;  %v2719_v38 = vld [vmem:[#allocation2 + $0x91] sm:$0xff] }
 0x152   : > { %4389 = vmatprep.subr.bf16.mxu0 %v4943_v8 }
 0x155   : > { %4390 = vmatpush3.bf16.msra.mxu0 %v4943_v8  ;;  %v2720_v8 = vld [vmem:[#allocation2 + $0x99] sm:$0xff] }
 0x156   : > { %4136 = vmatmul.mubr.bf16.gmra.mrb[24].mxu1 %v5847_v44  ;;  %4391 = vmatprep.subr.bf16.mxu0 %v4945_v30  ;;  %v2747_v17 = vpack.c.bf16 %v2720_v8, %v2719_v38  ;;  %v3024_v8 = vld [vmem:[#allocation2 + $0x92] sm:$0xff] }
 0x157   : > { %4139 = vmatprep.mubr.bf16.mxu1 %v5849_v48 }
 0x158   : > { %4360 = vmatmul.mubr.bf16.gmra.mrb[8].mxu0 %v5820_v2 }
 0x159   : > { %4363 = vmatprep.mubr.bf16.mxu0 %v5822_v5  ;;  %4392 = vmatpush3.bf16.msra.mxu0 %v4945_v30  ;;  %v2723_v30 = vld [vmem:[#allocation2 + $0xc1] sm:$0xff] }
 0x15a   : > { %4393 = vmatprep.subr.bf16.mxu0 %v4947_v49 }
 0x15d   : > { %4394 = vmatpush3.bf16.msra.mxu0 %v4947_v49  ;;  %v2724_v49 = vld [vmem:[#allocation2 + $0xc9] sm:$0xff] }
 0x15e   : > { %4140 = vmatmul.mubr.bf16.gmra.mrb[28].mxu1 %v5855_v57  ;;  %4395 = vmatprep.subr.bf16.mxu0 %v4949_v33  ;;  %v2749_v51 = vpack.c.bf16 %v2724_v49, %v2723_v30  ;;  %v3054_v30 = vpack.c.bf16 %v3029_v24, %v3028_v55  ;;  %v3030_v49 = vld [vmem:[#allocation2 + $0xda] sm:$0xff] }
 0x15f   : > { %4159 = vmatprep.mubr.bf16.mxu1 %v1217_v41  ;;  %v2728_v41 = vld [vmem:[#allocation2 + $0xf9] sm:$0xff] }
 0x160   : > { %4364 = vmatmul.mubr.bf16.gmra.mrb[12].mxu0 %v5829_v16 }
 0x161   : > { %4367 = vmatprep.mubr.bf16.mxu0 %v5832_v19  ;;  %4396 = vmatpush3.bf16.msra.mxu0 %v4949_v33  ;;  %v2727_v33 = vld [vmem:[#allocation2 + $0xf1] sm:$0xff] }
 0x162   : > { %4397 = vmatprep.subr.bf16.mxu0 %v4951_v59 }
 0x165   : > { %4398 = vmatpush3.bf16.msra.mxu0 %v4951_v59  ;;  %v5888_v59 = vpack.c.bf16 %v2726_v31, %v2725_v25  ;;  %v3036_v25 = vld [vmem:[#allocation2 + $0x122] sm:$0xff]  ;;  %v3037_v31 = vld [vmem:[#allocation2 + $0x12a] sm:$0xff] }
 0x166   : > { %4160 = vmatmul.mubr.bf16.vlgmr.msra.gmra.mrb[0].mxu1 %v5695_v45  ;;  %4431 = vmatprep.subr.bf16.mxu0 %v4953_v60  ;;  %v4952_v45 = vld [vmem:[#allocation7 + $0xe0] sm:$0xff]  }
 0x167   : > { %4163 = vmatprep.mubr.bf16.mxu1 %v5731_v32  ;;  %4192 = vmatpush3.bf16.msra.mxu1 %v5826_v9  ;;  %v2434_v32 = vld [vmem:[#allocation2 + $0x180] sm:$0xff] }
 0x168   : > { %4368 = vmatmul.mubr.bf16.gmra.mrb[16].mxu0 %v5839_v39  ;;  %4193 = vmatprep.subr.bf16.mxu1 %v4946_v61  ;;  %v5871_v9 = vpack.c.bf16 %v2435_v3, %v2434_v32  ;;  %v2733_v32 = vld [vmem:[#allocation2 + $0x139] sm:$0xff]  ;;  %v2734_v3 = vld [vmem:[#allocation2 + $0x141] sm:$0xff] }
 0x169   : > { %4371 = vmatprep.mubr.bf16.mxu0 %v5841_v23 }
 0x16b   : > { %4194 = vmatpush3.bf16.msra.mxu1 %v4946_v61  ;;  %v2730_v61 = vld [vmem:[#allocation2 + $0x111] sm:$0xff] }
 0x16c   : > { %4195 = vmatprep.subr.bf16.mxu1 %v4948_v62 }
 0x16e   : > { %4164 = vmatmul.mubr.bf16.gmra.mrb[4].mxu1 %v5733_v13  ;;  %v4956_v13 = vld [vmem:[#allocation7 + $0xf0] sm:$0xff]  }
 0x16f   : > { %4167 = vmatprep.mubr.bf16.mxu1 %v5747_v52  ;;  %4196 = vmatpush3.bf16.msra.mxu1 %v4948_v62  ;;  %v2711_v52 = vld [vmem:[#allocation2 + $0x31] sm:$0xff]  ;;  %v2731_v62 = vld [vmem:[#allocation2 + $0x121] sm:$0xff] }
 0x170   : > { %4372 = vmatmul.mubr.bf16.gmra.mrb[20].mxu0 %v5847_v44  ;;  %4197 = vmatprep.subr.bf16.mxu1 %v4950_v0 }
 0x171   : > { %4375 = vmatprep.mubr.bf16.mxu0 %v5849_v48 }
 0x173   : > { %4198 = vmatpush3.bf16.msra.mxu1 %v4950_v0  ;;  %v2732_v0 = vld [vmem:[#allocation2 + $0x129] sm:$0xff] }
 0x174   : > { %4199 = vmatprep.subr.bf16.mxu1 %v4952_v45 }
 0x176   : > { %4168 = vmatmul.mubr.bf16.gmra.mrb[8].mxu1 %v5749_v56  ;;  %v2743_v56 = vpack.c.bf16 %v2712_v10, %v2711_v52  ;;  %v4970_v10 = vld [vmem:[#allocation7 + $0x118] sm:$0xff]  }
 0x177   : > { %4171 = vmatprep.mubr.bf16.mxu1 %v5761_v42  ;;  %4200 = vmatpush3.bf16.msra.mxu1 %v4952_v45  ;;  %v2713_v42 = vld [vmem:[#allocation2 + $0x49] sm:$0xff]  ;;  %v4968_v45 = vld [vmem:[#allocation7 + $0x108] sm:$0xff]  }
 0x178   : > { %4376 = vmatmul.mubr.bf16.gmra.mrb[24].mxu0 %v5855_v57  ;;  %4201 = vmatprep.subr.bf16.mxu1 %v4954_v7 }
 0x179   : > { %4379 = vmatprep.mubr.bf16.mxu0 %v5871_v9 }
 0x17b   : > { %4202 = vmatpush3.bf16.msra.mxu1 %v4954_v7  ;;  %v2735_v7 = vld [vmem:[#allocation2 + $0x151] sm:$0xff] }
 0x17c   : > { %4203 = vmatprep.subr.bf16.mxu1 %v4956_v13 }
 0x17e   : > { %4172 = vmatmul.mubr.bf16.gmra.mrb[12].mxu1 %v5763_v58  ;;  %v2744_v58 = vpack.c.bf16 %v2714_v46, %v2713_v42  ;;  %v4971_v42 = vld [vmem:[#allocation7 + $0x120] sm:$0xff]   ;;  %v2741_v46 = vld [vmem:[#allocation2 + $0x199] sm:$0xff] }
 0x17f   : > { %4175 = vmatprep.mubr.bf16.mxu1 %v5773_v4  ;;  %4204 = vmatpush3.bf16.msra.mxu1 %v4956_v13  ;;  %v2745_v4 = vpack.c.bf16 %v2716_v20, %v2715_v54  ;;  %v2736_v13 = vld [vmem:[#allocation2 + $0x159] sm:$0xff]  ;;  %v2742_v54 = vld [vmem:[#allocation2 + $0x1a1] sm:$0xff] }
 0x180   : > { %4380 = vmatmul.mubr.bf16.gmra.mrb[28].mxu0 %v5767_v63  ;;  %4205 = vmatprep.subr.bf16.mxu1 %v4958_v11  ;;  %v4957_v63 = vld [vmem:[#allocation7 + $0x210] sm:$0xff]   ;;  %v5908_v52 = vpack.c.bf16 %v2736_v13, %v2735_v7  ;;  %v2758_v20 = vpack.c.bf16 %v2742_v54, %v2741_v46 }
 0x181   : > { %4399 = vmatprep.mubr.bf16.mxu0 %v2743_v56  ;;  %v2738_v56 = vld [vmem:[#allocation2 + $0x171] sm:$0xff]  ;;  %v3046_v7 = vld [vmem:[#allocation2 + $0x19a] sm:$0xff]  ;;  %v3047_v13 = vld [vmem:[#allocation2 + $0x1a2] sm:$0xff] }
 0x183   : > { %4206 = vmatpush3.bf16.msra.mxu1 %v4958_v11  ;;  %v2737_v11 = vld [vmem:[#allocation2 + $0x169] sm:$0xff] }
 0x184   : > { %4479 = vmatprep.subr.bf16.mxu1 %v5878_v29 }
 0x186   : > { %4176 = vmatmul.mubr.bf16.gmra.mrb[16].mxu1 %v5775_v6  ;;  %v4959_v6 = vld [vmem:[#allocation7 + $0x218] sm:$0xff]  }
 0x187   : > { %4179 = vmatprep.mubr.bf16.mxu1 %v5787_v27  ;;  %v4960_v27 = vld [vmem:[#allocation7 + $0x220] sm:$0xff]  }
 0x188   : > { %4400 = vmatmul.mubr.bf16.vlgmr.msra.gmra.mrb[0].mxu0 %v2744_v58  ;;  %v3017_v58 = vld [vmem:[#allocation2 + $0x3a] sm:$0xff] }
 0x189   : > { %4432 = vmatpush3.bf16.msra.mxu0 %v4953_v60  ;;  %4403 = vmatprep.mubr.bf16.mxu0 %v2745_v4  ;;  %v2729_v60 = vld [vmem:[#allocation2 + $0x109] sm:$0xff] }
 0x18a   : > { %4433 = vmatprep.subr.bf16.mxu0 %v4955_v34  ;;  %v3018_v4 = vld [vmem:[#allocation2 + $0x4a] sm:$0xff] }
 0x18d   : > { %4434 = vmatpush3.bf16.msra.mxu0 %v4955_v34  ;;  %v4973_v34 = vld [vmem:[#allocation7 + $0x130] sm:$0xff]  }
 0x18e   : > { %4180 = vmatmul.mubr.bf16.gmra.mrb[20].mxu1 %v5792_v28  ;;  %4435 = vmatprep.subr.bf16.mxu0 %v4957_v63  ;;  %v4961_v28 = vld [vmem:[#allocation7 + $0x228] sm:$0xff]  }
 0x18f   : > { %4183 = vmatprep.mubr.bf16.mxu1 %v5801_v14  ;;  %v4962_v14 = vld [vmem:[#allocation7 + $0x230] sm:$0xff]  }
 0x190   : > { %4404 = vmatmul.mubr.bf16.gmra.mrb[4].mxu0 %v2746_v12  ;;  %v3025_v12 = vld [vmem:[#allocation2 + $0x9a] sm:$0xff] }
 0x191   : > { %4407 = vmatprep.mubr.bf16.mxu0 %v2747_v17  ;;  %4436 = vmatpush3.bf16.msra.mxu0 %v4957_v63  ;;  %v3020_v63 = vld [vmem:[#allocation2 + $0x62] sm:$0xff]  ;;  %v3052_v17 = vpack.c.bf16 %v3025_v12, %v3024_v8 }
 0x192   : > { %4437 = vmatprep.subr.bf16.mxu0 %v4959_v6  ;;  %v3050_v38 = vpack.c.bf16 %v3021_v35, %v3020_v63 }
 0x195   : > { %4438 = vmatpush3.bf16.msra.mxu0 %v4959_v6 }
 0x196   : > { %4184 = vmatmul.mubr.bf16.gmra.mrb[24].mxu1 %v5804_v18  ;;  %4439 = vmatprep.subr.bf16.mxu0 %v4960_v27  ;;  %v4963_v18 = vld [vmem:[#allocation7 + $0x238] sm:$0xff]  }
 0x197   : > { %4187 = vmatprep.mubr.bf16.mxu1 %v5813_v37  ;;  %v5891_v37 = vpack.c.bf16 %v2728_v41, %v2727_v33  ;;  %v3058_v33 = vpack.c.bf16 %v3037_v31, %v3036_v25  ;;  %v3038_v41 = vld [vmem:[#allocation2 + $0x13a] sm:$0xff] }
 0x198   : > { %4408 = vmatmul.mubr.bf16.gmra.mrb[8].mxu0 %v2748_v50  ;;  %v3032_v50 = vld [vmem:[#allocation2 + $0xf2] sm:$0xff] }
 0x199   : > { %4411 = vmatprep.mubr.bf16.mxu0 %v2749_v51  ;;  %4440 = vmatpush3.bf16.msra.mxu0 %v4960_v27  ;;  %v3026_v27 = vld [vmem:[#allocation2 + $0xaa] sm:$0xff] }
 0x19a   : > { %4441 = vmatprep.subr.bf16.mxu0 %v4961_v28 }
 0x19d   : > { %4442 = vmatpush3.bf16.msra.mxu0 %v4961_v28  ;;  %v3033_v28 = vld [vmem:[#allocation2 + $0xfa] sm:$0xff] }
 0x19e   : > { %4188 = vmatmul.mubr.bf16.gmra.mrb[28].mxu1 %v5816_v40  ;;  %4443 = vmatprep.subr.bf16.mxu0 %v4962_v14  ;;  %v5896_v40 = vpack.c.bf16 %v2730_v61, %v2729_v60  ;;  %v3056_v51 = vpack.c.bf16 %v3033_v28, %v3032_v50  ;;  %v3041_v60 = vld [vmem:[#allocation2 + $0x15a] sm:$0xff] }
 0x19f   : > { %4207 = vmatprep.mubr.bf16.mxu1 %v5782_v15  ;;  %v5900_v15 = vpack.c.bf16 %v2732_v0, %v2731_v62  ;;  %v3042_v62 = vld [vmem:[#allocation2 + $0x16a] sm:$0xff]  ;;  %v3044_v0 = vld [vmem:[#allocation2 + $0x182] sm:$0xff] }
 0x1a0   : > { %4412 = vmatmul.mubr.bf16.gmra.mrb[12].mxu0 %v5888_v59 }
 0x1a1   : > { %4415 = vmatprep.mubr.bf16.mxu0 %v5891_v37  ;;  %4444 = vmatpush3.bf16.msra.mxu0 %v4962_v14  ;;  %v3034_v14 = vld [vmem:[#allocation2 + $0x10a] sm:$0xff] }
 0x1a2   : > { %4445 = vmatprep.subr.bf16.mxu0 %v4963_v18 }
 0x1a5   : > { %4446 = vmatpush3.bf16.msra.mxu0 %v4963_v18  ;;  %v3040_v18 = vld [vmem:[#allocation2 + $0x152] sm:$0xff] }
 0x1a6   : > { %4208 = vmatmul.mubr.bf16.vlgmr.msra.gmra.mrb[0].mxu1 %v5784_v26  ;;  %v4969_v26 = vld [vmem:[#allocation7 + $0x110] sm:$0xff]   ;;  %v3060_v61 = vpack.c.bf16 %v3041_v60, %v3040_v18 }
 0x1a7   : > { %4211 = vmatprep.mubr.bf16.mxu1 %v5796_v43  ;;  %4487 = vmatpush3.bf16.msra.mxu1 %v5878_v29  ;;  %v5905_v43 = vpack.c.bf16 %v2734_v3, %v2733_v32  ;;  %v3016_v29 = vld [vmem:[#allocation2 + $0x32] sm:$0xff]  ;;  %v1825_v3 = vld [vmem:[#allocation2 + $0x181] sm:$0xff] }
 0x1a8   : > { %4416 = vmatmul.mubr.bf16.gmra.mrb[16].mxu0 %v5896_v40  ;;  %4480 = vmatprep.subr.bf16.mxu1 %v4968_v45 }
 0x1a9   : > { %4419 = vmatprep.mubr.bf16.mxu0 %v5900_v15 }
 0x1ab   : > { %4488 = vmatpush3.bf16.msra.mxu1 %v4968_v45  ;;  %v3045_v45 = vld [vmem:[#allocation2 + $0x18a] sm:$0xff] }
 0x1ac   : > { %4481 = vmatprep.subr.bf16.mxu1 %v4969_v26  ;;  %v3062_v32 = vpack.c.bf16 %v3045_v45, %v3044_v0 }
 0x1ae   : > { %4212 = vmatmul.mubr.bf16.gmra.mrb[4].mxu1 %v5798_v21  ;;  %v5913_v21 = vpack.c.bf16 %v2738_v56, %v2737_v11 }
 0x1af   : > { %4215 = vmatprep.mubr.bf16.mxu1 %v5808_v53  ;;  %4489 = vmatpush3.bf16.msra.mxu1 %v4969_v26  ;;  %v4972_v53 = vld [vmem:[#allocation7 + $0x128] sm:$0xff]  }
 0x1b0   : > { %4420 = vmatmul.mubr.bf16.gmra.mrb[20].mxu0 %v5905_v43  ;;  %4482 = vmatprep.subr.bf16.mxu1 %v4970_v10 }
 0x1b1   : > { %4423 = vmatprep.mubr.bf16.mxu0 %v5908_v52 }
 0x1b3   : > { %4490 = vmatpush3.bf16.msra.mxu1 %v4970_v10 }
 0x1b4   : > { %4483 = vmatprep.subr.bf16.mxu1 %v4971_v42 }
 0x1b6   : > { %4216 = vmatmul.mubr.bf16.gmra.mrb[8].mxu1 %v5810_v22  ;;  %v3048_v22 = vpack.c.bf16 %v3017_v58, %v3016_v29 }
 0x1b7   : > { %4219 = vmatprep.mubr.bf16.mxu1 %v5820_v2  ;;  %4491 = vmatpush3.bf16.msra.mxu1 %v4971_v42  ;;  %v4974_v2 = vld [vmem:[#allocation7 + $0x138] sm:$0xff]  }
 0x1b8   : > { %4424 = vmatmul.mubr.bf16.gmra.mrb[24].mxu0 %v5913_v21  ;;  %4484 = vmatprep.subr.bf16.mxu1 %v4972_v53 }
 0x1b9   : > { %4427 = vmatprep.mubr.bf16.mxu0 %v5737_v47  ;;  %v3019_v47 = vld [vmem:[#allocation2 + $0x52] sm:$0xff] }
 0x1ba   : > { %v3049_v36 = vpack.c.bf16 %v3019_v47, %v3018_v4  ;;  %v3321_v47 = vld [vmem:[#allocation9] sm:$0x1] }
 0x1bb   : > { %4492 = vmatpush3.bf16.msra.mxu1 %v4972_v53 }
 0x1bc   : > { %4485 = vmatprep.subr.bf16.mxu1 %v4973_v34 }
 0x1be   : > { %4220 = vmatmul.mubr.bf16.gmra.mrb[12].mxu1 %v5822_v5  ;;  %v3022_v5 = vld [vmem:[#allocation2 + $0x7a] sm:$0xff] }
 0x1bf   : > { %4223 = vmatprep.mubr.bf16.mxu1 %v5829_v16  ;;  %4493 = vmatpush3.bf16.msra.mxu1 %v4973_v34  ;;  %v3023_v16 = vld [vmem:[#allocation2 + $0x82] sm:$0xff]  ;;  %v3325_v34 = vlaneseq }
 0x1c0   : > { %4428 = vmatmul.mubr.bf16.gmra.mrb[28].mxu0 %v2758_v20  ;;  %4486 = vmatprep.subr.bf16.mxu1 %v4974_v2  ;;  %v3051_v6 = vpack.c.bf16 %v3023_v16, %v3022_v5 }
 0x1c1   : > { %4447 = vmatprep.mubr.bf16.mxu0 %v3048_v22 }
 0x1c3   : > { %4494 = vmatpush3.bf16.msra.mxu1 %v4974_v2  ;;  %v3326_v2 = vshrl.u32 %v3325_v34, 7 }
 0x1c6   : > { %4224 = vmatmul.mubr.bf16.gmra.mrb[16].mxu1 %v5832_v19  ;;  %v3027_v19 = vld [vmem:[#allocation2 + $0xb2] sm:$0xff] }
 0x1c7   : > { %4227 = vmatprep.mubr.bf16.mxu1 %v5839_v39  ;;  %v3053_v39 = vpack.c.bf16 %v3027_v19, %v3026_v27 }
 0x1c8   : > { %4448 = vmatmul.mubr.bf16.vlgmr.msra.gmra.mrb[0].mxu0 %v3049_v36  ;;  %v3323_v36 = vmul.f32 %v3321_v47, %v338_v1 }
 0x1c9   : > { %4451 = vmatprep.mubr.bf16.mxu0 %v3050_v38  ;;  %v3327_v38 = vsub.s32 0, %v3326_v2 }
 0x1cb   : > { %v5950_v5 = vrot.slane %v3323_v36, %v3327_v38 }
 0x1ce   : > { %4228 = vmatmul.mubr.bf16.gmra.mrb[20].mxu1 %v5841_v23  ;;  %v3031_v23 = vld [vmem:[#allocation2 + $0xe2] sm:$0xff] }
 0x1cf   : > { %4231 = vmatprep.mubr.bf16.mxu1 %v5847_v44  ;;  %v3055_v44 = vpack.c.bf16 %v3031_v23, %v3030_v49 }
 0x1d0   : > { %4452 = vmatmul.mubr.bf16.gmra.mrb[4].mxu0 %v3051_v6  ;;  %v5952_v6 = vld [vmem:[#allocation10] ss:$0 sm:$0xff] }
 0x1d1   : > { %4455 = vmatprep.mubr.bf16.mxu0 %v3052_v17 }
 0x1d6   : > { %4232 = vmatmul.mubr.bf16.gmra.mrb[24].mxu1 %v5849_v48  ;;  %v3035_v48 = vld [vmem:[#allocation2 + $0x112] sm:$0xff] }
 0x1d7   : > { %4235 = vmatprep.mubr.bf16.mxu1 %v5855_v57  ;;  %v3057_v57 = vpack.c.bf16 %v3035_v48, %v3034_v14 }
 0x1d8   : > { %4456 = vmatmul.mubr.bf16.gmra.mrb[8].mxu0 %v3053_v39 }
 0x1d9   : > { %4459 = vmatprep.mubr.bf16.mxu0 %v3054_v30 }
 0x1de   : > { %4236 = vmatmul.mubr.bf16.gmra.mrb[28].mxu1 %v5871_v9  ;;  %v3039_v9 = vld [vmem:[#allocation2 + $0x142] sm:$0xff] }
 0x1df   : > { %4271 = vmatprep.mubr.bf16.mxu1 %v5888_v59  ;;  %v3059_v59 = vpack.c.bf16 %v3039_v9, %v3038_v41 }
 0x1e0   : > { %4460 = vmatmul.mubr.bf16.gmra.mrb[12].mxu0 %v3055_v44 }
 0x1e1   : > { %4463 = vmatprep.mubr.bf16.mxu0 %v3056_v51 }
 0x1e6   : > { %4272 = vmatmul.mubr.bf16.vlgmr.msra.gmra.mrb[16].mxu1 %v5891_v37  ;;  %v3043_v37 = vld [vmem:[#allocation2 + $0x172] sm:$0xff] }
 0x1e7   : > { %4275 = vmatprep.mubr.bf16.mxu1 %v5896_v40  ;;  %v3061_v40 = vpack.c.bf16 %v3043_v37, %v3042_v62 }
 0x1e8   : > { %4464 = vmatmul.mubr.bf16.gmra.mrb[16].mxu0 %v3057_v57 }
 0x1e9   : > { %4467 = vmatprep.mubr.bf16.mxu0 %v3058_v33 }
 0x1ee   : > { %4276 = vmatmul.mubr.bf16.gmra.mrb[20].mxu1 %v5900_v15  ;;  %v1826_v15 = vld [vmem:[#allocation2 + $0x189] sm:$0xff] }
 0x1ef   : > { %4279 = vmatprep.mubr.bf16.mxu1 %v5905_v43  ;;  %v1842_v26 = vpack.c.bf16 %v1826_v15, %v1825_v3  ;;  %v3063_v43 = vpack.c.bf16 %v3047_v13, %v3046_v7 }
 0x1f0   : > { %4468 = vmatmul.mubr.bf16.gmra.mrb[20].mxu0 %v3059_v59 }
 0x1f1   : > { %4471 = vmatprep.mubr.bf16.mxu0 %v3060_v61 }
 0x1f6   : > { %4280 = vmatmul.mubr.bf16.gmra.mrb[24].mxu1 %v5908_v52 }
 0x1f7   : > { %4283 = vmatprep.mubr.bf16.mxu1 %v5913_v21 }
 0x1f8   : > { %4472 = vmatmul.mubr.bf16.gmra.mrb[24].mxu0 %v3061_v40 }
 0x1f9   : > { %4475 = vmatprep.mubr.bf16.mxu0 %v3062_v32 }
 0x1fe   : > { %4284 = vmatmul.mubr.bf16.gmra.mrb[28].mxu1 %v1842_v26 }
 0x200   : > { %4476 = vmatmul.mubr.bf16.gmra.mrb[28].mxu0 %v3063_v43 }
 0x279   : > { %v4209_v10 = vpop.f32.mrb[0].mxu1 }
 0x27a   : > { %v1636_v11 = vpop.f32.mrb[1].mxu1 }
 0x27b   : > { %v4210_v56 = vpop.f32.mrb[2].mxu1 }
 0x27c   : > { %v1639_v42 = vpop.f32.mrb[3].mxu1 }
 0x281   : > { %v4213_v52 = vpop.f32.mrb[4].mxu1 }
 0x282   : > { %v1652_v53 = vpop.f32.mrb[5].mxu1 }
 0x283   : > { %v4214_v46 = vpop.f32.mrb[6].mxu1 }
 0x284   : > { %v1655_v21 = vpop.f32.mrb[7].mxu1 }
 0x289   : > { %v4217_v54 = vpop.f32.mrb[8].mxu1 }
 0x28a   : > { %v5934_v20 = vpop.f32.mrb[9].mxu1 }
 0x28b   : > { %v5936_v29 = vpop.f32.mrb[10].mxu1 }
 0x28c   : > { %v5938_v58 = vpop.f32.mrb[11].mxu1 }
 0x291   : > { %v5940_v22 = vpop.f32.mrb[12].mxu1 }
 0x292   : > { %v5942_v4 = vpop.f32.mrb[13].mxu1 }
 0x293   : > { %v5944_v63 = vpop.f32.mrb[14].mxu1 }
 0x294   : > { %v5946_v35 = vpop.f32.mrb[15].mxu1 }
 0x29b   : > { %v4449_v16 = vpop.f32.mrb[0].mxu0 }
 0x29c   : > { %v4495_v8 = vadd.f32 %v4449_v16, %v4209_v10  ;;  %v3162_v12 = vpop.f32.mrb[1].mxu0 }
 0x29d   : > { %v4496_v17 = vadd.f32 %v3162_v12, %v1636_v11  ;;  %v4450_v27 = vpop.f32.mrb[2].mxu0 }
 0x29e   : > { %v3332_v19 = vmul.f32 %v4495_v8, %v5950_v5  ;;  %v4497_v55 = vadd.f32 %v4450_v27, %v4210_v56  ;;  %v3165_v24 = vpop.f32.mrb[3].mxu0 }
 0x29f   : > { %v3330_v39 = vmul.f32 %v4496_v17, %v5950_v5  ;;  %v4498_v30 = vadd.f32 %v3165_v24, %v1639_v42 }
 0x2a0   : > { %v3371_v1 = vadd.f32 %v5952_v6, %v3332_v19  ;;  %v3333_v49 = vmul.f32 %v4497_v55, %v5950_v5 }
 0x2a1   : > { %v3369_v23 = vadd.f32 %v5952_v6, %v3330_v39  ;;  %v3331_v50 = vmul.f32 %v4498_v30, %v5950_v5 }
 0x2a2   : > { %v3403_v28 = vmax.f32 %v3371_v1, 0.0  ;;  %v3372_v44 = vadd.f32 %v5952_v6, %v3333_v49 }
 0x2a3   : > { %v3401_v51 = vmax.f32 %v3369_v23, 0.0  ;;  %v3370_v14 = vadd.f32 %v5952_v6, %v3331_v50  ;;  %v4453_v48 = vpop.f32.mrb[4].mxu0 }
 0x2a4   : > { %3517 = vst [vmem:[%s5964_s8 + $0x10] sm:$0xff] %v3403_v28  ;;  %v3404_v25 = vmax.f32 %v3372_v44, 0.0  ;;  %v4499_v31 = vadd.f32 %v4453_v48, %v4213_v52  ;;  %v3178_v57 = vpop.f32.mrb[5].mxu0 }
 0x2a5   : > { %3515 = vst [vmem:[%s5964_s8] sm:$0xff] %v3401_v51  ;;  %v3402_v33 = vmax.f32 %v3370_v14, 0.0  ;;  %v4500_v41 = vadd.f32 %v3178_v57, %v1652_v53  ;;  %v4454_v9 = vpop.f32.mrb[6].mxu0 }
 0x2a6   : > { %3518 = vst [vmem:[%s5964_s8 + $0x18] sm:$0xff] %v3404_v25  ;;  %v3336_v18 = vmul.f32 %v4499_v31, %v5950_v5  ;;  %v4501_v60 = vadd.f32 %v4454_v9, %v4214_v46  ;;  %v3181_v59 = vpop.f32.mrb[7].mxu0 }
 0x2a7   : > { %3516 = vst [vmem:[%s5964_s8 + $0x8] sm:$0xff] %v3402_v33  ;;  %v3334_v61 = vmul.f32 %v4500_v41, %v5950_v5  ;;  %v4502_v62 = vadd.f32 %v3181_v59, %v1655_v21 }
 0x2a8   : > { %v3375_v37 = vadd.f32 %v5952_v6, %v3336_v18  ;;  %v3337_v0 = vmul.f32 %v4501_v60, %v5950_v5 }
 0x2a9   : > { %v3373_v45 = vadd.f32 %v5952_v6, %v3334_v61  ;;  %v3335_v40 = vmul.f32 %v4502_v62, %v5950_v5 }
 0x2aa   : > { %v3407_v32 = vmax.f32 %v3375_v37, 0.0  ;;  %v3376_v3 = vadd.f32 %v5952_v6, %v3337_v0 }
 0x2ab   : > { %v3405_v15 = vmax.f32 %v3373_v45, 0.0  ;;  %v3374_v7 = vadd.f32 %v5952_v6, %v3335_v40  ;;  %v4457_v13 = vpop.f32.mrb[8].mxu0 }
 0x2ac   : > { %3521 = vst [vmem:[%s5964_s8 + $0x30] sm:$0xff] %v3407_v32  ;;  %v3408_v26 = vmax.f32 %v3376_v3, 0.0  ;;  %v4503_v43 = vadd.f32 %v4457_v13, %v4217_v54  ;;  %v3194_v10 = vpop.f32.mrb[9].mxu0  ;;  %5190 = vmaxabs.init.f32.vacc0 %v3403_v28, %v3407_v32 }
 0x2ad   : > { %3519 = vst [vmem:[%s5964_s8 + $0x20] sm:$0xff] %v3405_v15  ;;  %v3406_v11 = vmax.f32 %v3374_v7, 0.0  ;;  %v4504_v56 = vadd.f32 %v3194_v10, %v5934_v20  ;;  %v4458_v42 = vpop.f32.mrb[10].mxu0 }
 0x2ae   : > { %3522 = vst [vmem:[%s5964_s8 + $0x38] sm:$0xff] %v3408_v26  ;;  %v3340_v52 = vmul.f32 %v4503_v43, %v5950_v5  ;;  %v4505_v53 = vadd.f32 %v4458_v42, %v5936_v29  ;;  %v3197_v46 = vpop.f32.mrb[11].mxu0  ;;  %5191 = vmaxabs.f32.vacc0 %v3401_v51, %v3405_v15 }
 0x2af   : > { %3520 = vst [vmem:[%s5964_s8 + $0x28] sm:$0xff] %v3406_v11  ;;  %v3338_v21 = vmul.f32 %v4504_v56, %v5950_v5  ;;  %v4506_v54 = vadd.f32 %v3197_v46, %v5938_v58 }
 0x2b0   : > { %5192 = vmaxabs.f32.vacc0 %v3404_v25, %v3408_v26  ;;  %v3379_v34 = vadd.f32 %v5952_v6, %v3340_v52  ;;  %v3341_v20 = vmul.f32 %v4505_v53, %v5950_v5 }
 0x2b1   : > { %v3377_v2 = vadd.f32 %v5952_v6, %v3338_v21  ;;  %v3339_v29 = vmul.f32 %v4506_v54, %v5950_v5 }
 0x2b2   : > { %5193 = vmaxabs.f32.vacc0 %v3402_v33, %v3406_v11  ;;  %v3411_v47 = vmax.f32 %v3379_v34, 0.0  ;;  %v3380_v36 = vadd.f32 %v5952_v6, %v3341_v20 }
 0x2b3   : > { %v3409_v38 = vmax.f32 %v3377_v2, 0.0  ;;  %v3378_v16 = vadd.f32 %v5952_v6, %v3339_v29  ;;  %v4461_v58 = vpop.f32.mrb[12].mxu0 }
 0x2b4   : > { %3525 = vst [vmem:[%s5964_s8 + $0x50] sm:$0xff] %v3411_v47  ;;  %v3412_v8 = vmax.f32 %v3380_v36, 0.0  ;;  %v4507_v12 = vadd.f32 %v4461_v58, %v5940_v22  ;;  %v3210_v17 = vpop.f32.mrb[13].mxu0 }
 0x2b5   : > { %3523 = vst [vmem:[%s5964_s8 + $0x40] sm:$0xff] %v3409_v38  ;;  %v3410_v27 = vmax.f32 %v3378_v16, 0.0  ;;  %v4508_v19 = vadd.f32 %v3210_v17, %v5942_v4  ;;  %v4462_v55 = vpop.f32.mrb[14].mxu0  ;;  %5194 = vmaxabs.f32.vacc0 %v3411_v47, %v3409_v38 }
 0x2b6   : > { %3526 = vst [vmem:[%s5964_s8 + $0x58] sm:$0xff] %v3412_v8  ;;  %v3344_v24 = vmul.f32 %v4507_v12, %v5950_v5  ;;  %v4509_v39 = vadd.f32 %v4462_v55, %v5944_v63  ;;  %v3213_v30 = vpop.f32.mrb[15].mxu0 }
 0x2b7   : > { %3524 = vst [vmem:[%s5964_s8 + $0x48] sm:$0xff] %v3410_v27  ;;  %v3342_v1 = vmul.f32 %v4508_v19, %v5950_v5  ;;  %v4510_v49 = vadd.f32 %v3213_v30, %v5946_v35  ;;  %5195 = vmaxabs.f32.vacc0 %v3412_v8, %v3410_v27 }
 0x2b8   : > { %v3383_v22 = vadd.f32 %v5952_v6, %v3344_v24  ;;  %v3345_v23 = vmul.f32 %v4509_v39, %v5950_v5 }
 0x2b9   : > { %v3381_v4 = vadd.f32 %v5952_v6, %v3342_v1  ;;  %v3343_v50 = vmul.f32 %v4510_v49, %v5950_v5  ;;  %v4273_v28 = vpop.f32.mrb[16].mxu1 }
 0x2ba   : > { %v3415_v63 = vmax.f32 %v3383_v22, 0.0  ;;  %v3384_v44 = vadd.f32 %v5952_v6, %v3345_v23  ;;  %v2005_v51 = vpop.f32.mrb[17].mxu1 }
 0x2bb   : > { %v3413_v14 = vmax.f32 %v3381_v4, 0.0  ;;  %v3382_v48 = vadd.f32 %v5952_v6, %v3343_v50  ;;  %v4465_v35 = vpop.f32.mrb[16].mxu0  ;;  %v4274_v25 = vpop.f32.mrb[18].mxu1 }
 0x2bc   : > { %3529 = vst [vmem:[%s5964_s8 + $0x70] sm:$0xff] %v3415_v63  ;;  %v3416_v31 = vmax.f32 %v3384_v44, 0.0  ;;  %v4511_v57 = vadd.f32 %v4465_v35, %v4273_v28  ;;  %v3226_v33 = vpop.f32.mrb[17].mxu0  ;;  %v2008_v41 = vpop.f32.mrb[19].mxu1 }
 0x2bd   : > { %3527 = vst [vmem:[%s5964_s8 + $0x60] sm:$0xff] %v3413_v14  ;;  %v3414_v9 = vmax.f32 %v3382_v48, 0.0  ;;  %v4512_v18 = vadd.f32 %v3226_v33, %v2005_v51  ;;  %v4466_v60 = vpop.f32.mrb[18].mxu0  ;;  %5196 = vmaxabs.f32.vacc0 %v3415_v63, %v3413_v14 }
 0x2be   : > { %3530 = vst [vmem:[%s5964_s8 + $0x78] sm:$0xff] %v3416_v31  ;;  %v3348_v59 = vmul.f32 %v4511_v57, %v5950_v5  ;;  %v4513_v61 = vadd.f32 %v4466_v60, %v4274_v25  ;;  %v3229_v62 = vpop.f32.mrb[19].mxu0 }
 0x2bf   : > { %3528 = vst [vmem:[%s5964_s8 + $0x68] sm:$0xff] %v3414_v9  ;;  %v3346_v37 = vmul.f32 %v4512_v18, %v5950_v5  ;;  %v4514_v0 = vadd.f32 %v3229_v62, %v2008_v41  ;;  %5197 = vmaxabs.f32.vacc0 %v3416_v31, %v3414_v9 }
 0x2c0   : > { %v3387_v45 = vadd.f32 %v5952_v6, %v3348_v59  ;;  %v3349_v40 = vmul.f32 %v4513_v61, %v5950_v5 }
 0x2c1   : > { %v3385_v32 = vadd.f32 %v5952_v6, %v3346_v37  ;;  %v3347_v3 = vmul.f32 %v4514_v0, %v5950_v5  ;;  %v4277_v15 = vpop.f32.mrb[20].mxu1 }
 0x2c2   : > { %v3419_v7 = vmax.f32 %v3387_v45, 0.0  ;;  %v3388_v13 = vadd.f32 %v5952_v6, %v3349_v40  ;;  %v2021_v26 = vpop.f32.mrb[21].mxu1 }
 0x2c3   : > { %v3417_v43 = vmax.f32 %v3385_v32, 0.0  ;;  %v3386_v10 = vadd.f32 %v5952_v6, %v3347_v3  ;;  %v4469_v11 = vpop.f32.mrb[20].mxu0  ;;  %v4278_v56 = vpop.f32.mrb[22].mxu1 }
 0x2c4   : > { %3533 = vst [vmem:[%s5964_s8 + $0x90] sm:$0xff] %v3419_v7  ;;  %v3420_v42 = vmax.f32 %v3388_v13, 0.0  ;;  %v4515_v52 = vadd.f32 %v4469_v11, %v4277_v15  ;;  %v3242_v53 = vpop.f32.mrb[21].mxu0  ;;  %v2024_v46 = vpop.f32.mrb[23].mxu1 }
 0x2c5   : > { %3531 = vst [vmem:[%s5964_s8 + $0x80] sm:$0xff] %v3417_v43  ;;  %v3418_v21 = vmax.f32 %v3386_v10, 0.0  ;;  %v4516_v54 = vadd.f32 %v3242_v53, %v2021_v26  ;;  %v4470_v34 = vpop.f32.mrb[22].mxu0  ;;  %5198 = vmaxabs.f32.vacc0 %v3419_v7, %v3417_v43 }
 0x2c6   : > { %3534 = vst [vmem:[%s5964_s8 + $0x98] sm:$0xff] %v3420_v42  ;;  %v3352_v20 = vmul.f32 %v4515_v52, %v5950_v5  ;;  %v4517_v2 = vadd.f32 %v4470_v34, %v4278_v56  ;;  %v3245_v29 = vpop.f32.mrb[23].mxu0 }
 0x2c7   : > { %3532 = vst [vmem:[%s5964_s8 + $0x88] sm:$0xff] %v3418_v21  ;;  %v3350_v47 = vmul.f32 %v4516_v54, %v5950_v5  ;;  %v4518_v36 = vadd.f32 %v3245_v29, %v2024_v46  ;;  %5199 = vmaxabs.f32.vacc0 %v3420_v42, %v3418_v21 }
 0x2c8   : > { %v3391_v38 = vadd.f32 %v5952_v6, %v3352_v20  ;;  %v3353_v16 = vmul.f32 %v4517_v2, %v5950_v5  ;;  %v4975_v2 = vld [vmem:[#allocation2] sm:$0xff] }
 0x2c9   : > { %v3389_v58 = vadd.f32 %v5952_v6, %v3350_v47  ;;  %v3351_v8 = vmul.f32 %v4518_v36, %v5950_v5  ;;  %v4281_v12 = vpop.f32.mrb[24].mxu1  ;;  %3437 = vst.msk [vmem:[%s6062_s7] sm:$0x1] %vm3436_vm0, %v4975_v2 }
 0x2ca   : > { %v3423_v17 = vmax.f32 %v3391_v38, 0.0  ;;  %v3392_v27 = vadd.f32 %v5952_v6, %v3353_v16  ;;  %v2037_v19 = vpop.f32.mrb[25].mxu1 }
 0x2cb   : > { %v3421_v55 = vmax.f32 %v3389_v58, 0.0  ;;  %v3390_v24 = vadd.f32 %v5952_v6, %v3351_v8  ;;  %v4473_v39 = vpop.f32.mrb[24].mxu0  ;;  %v4282_v30 = vpop.f32.mrb[26].mxu1 }
 0x2cc   : > { %3537 = vst [vmem:[%s5964_s8 + $0xb0] sm:$0xff] %v3423_v17  ;;  %v3424_v1 = vmax.f32 %v3392_v27, 0.0  ;;  %v4519_v49 = vadd.f32 %v4473_v39, %v4281_v12  ;;  %v3258_v22 = vpop.f32.mrb[25].mxu0  ;;  %v2040_v23 = vpop.f32.mrb[27].mxu1 }
 0x2cd   : > { %3535 = vst [vmem:[%s5964_s8 + $0xa0] sm:$0xff] %v3421_v55  ;;  %v3422_v4 = vmax.f32 %v3390_v24, 0.0  ;;  %v4520_v50 = vadd.f32 %v3258_v22, %v2037_v19  ;;  %v4474_v28 = vpop.f32.mrb[26].mxu0  ;;  %5200 = vmaxabs.f32.vacc0 %v3423_v17, %v3421_v55 }
 0x2ce   : > { %3538 = vst [vmem:[%s5964_s8 + $0xb8] sm:$0xff] %v3424_v1  ;;  %v3356_v63 = vmul.f32 %v4519_v49, %v5950_v5  ;;  %v4521_v44 = vadd.f32 %v4474_v28, %v4282_v30  ;;  %v3261_v51 = vpop.f32.mrb[27].mxu0 }
 0x2cf   : > { %3536 = vst [vmem:[%s5964_s8 + $0xa8] sm:$0xff] %v3422_v4  ;;  %v3354_v14 = vmul.f32 %v4520_v50, %v5950_v5  ;;  %v4522_v48 = vadd.f32 %v3261_v51, %v2040_v23  ;;  %5201 = vmaxabs.f32.vacc0 %v3424_v1, %v3422_v4 }
 0x2d0   : > { %v3395_v35 = vadd.f32 %v5952_v6, %v3356_v63  ;;  %v3357_v25 = vmul.f32 %v4521_v44, %v5950_v5 }
 0x2d1   : > { %v3393_v31 = vadd.f32 %v5952_v6, %v3354_v14  ;;  %v3355_v57 = vmul.f32 %v4522_v48, %v5950_v5  ;;  %v4285_v33 = vpop.f32.mrb[28].mxu1 }
 0x2d2   : > { %v3427_v41 = vmax.f32 %v3395_v35, 0.0  ;;  %v3396_v9 = vadd.f32 %v5952_v6, %v3357_v25  ;;  %v2053_v18 = vpop.f32.mrb[29].mxu1 }
 0x2d3   : > { %v3425_v60 = vmax.f32 %v3393_v31, 0.0  ;;  %v3394_v59 = vadd.f32 %v5952_v6, %v3355_v57  ;;  %v4477_v61 = vpop.f32.mrb[28].mxu0  ;;  %v4286_v62 = vpop.f32.mrb[30].mxu1 }
 0x2d4   : > { %3541 = vst [vmem:[%s5964_s8 + $0xd0] sm:$0xff] %v3427_v41  ;;  %v3428_v37 = vmax.f32 %v3396_v9, 0.0  ;;  %v4523_v0 = vadd.f32 %v4477_v61, %v4285_v33  ;;  %v3274_v45 = vpop.f32.mrb[29].mxu0  ;;  %v2056_v40 = vpop.f32.mrb[31].mxu1 }
 0x2d5   : > { %3539 = vst [vmem:[%s5964_s8 + $0xc0] sm:$0xff] %v3425_v60  ;;  %v3426_v32 = vmax.f32 %v3394_v59, 0.0  ;;  %v4524_v3 = vadd.f32 %v3274_v45, %v2053_v18  ;;  %v4478_v15 = vpop.f32.mrb[30].mxu0  ;;  %5202 = vmaxabs.f32.vacc0 %v3427_v41, %v3425_v60 }
 0x2d6   : > { %3542 = vst [vmem:[%s5964_s8 + $0xd8] sm:$0xff] %v3428_v37  ;;  %v3360_v7 = vmul.f32 %v4523_v0, %v5950_v5  ;;  %v4525_v13 = vadd.f32 %v4478_v15, %v4286_v62  ;;  %v3277_v26 = vpop.f32.mrb[31].mxu0 }
 0x2d7   : > { %3540 = vst [vmem:[%s5964_s8 + $0xc8] sm:$0xff] %v3426_v32  ;;  %v3358_v43 = vmul.f32 %v4524_v3, %v5950_v5  ;;  %v4526_v10 = vadd.f32 %v3277_v26, %v2056_v40  ;;  %5203 = vmaxabs.f32.vacc0 %v3428_v37, %v3426_v32 }
 0x2d8   : > { %v3399_v11 = vadd.f32 %v5952_v6, %v3360_v7  ;;  %v3361_v56 = vmul.f32 %v4525_v13, %v5950_v5 }
 0x2d9   : > { %v3397_v42 = vadd.f32 %v5952_v6, %v3358_v43  ;;  %v3359_v52 = vmul.f32 %v4526_v10, %v5950_v5 }
 0x2da   : > { %v3431_v53 = vmax.f32 %v3399_v11, 0.0  ;;  %v3400_v46 = vadd.f32 %v5952_v6, %v3361_v56 }
 0x2db   : > { %v3429_v21 = vmax.f32 %v3397_v42, 0.0  ;;  %v3398_v54 = vadd.f32 %v5952_v6, %v3359_v52 }
 0x2dc   : > { %3545 = vst [vmem:[%s5964_s8 + $0xf0] sm:$0xff] %v3431_v53  ;;  %v3432_v34 = vmax.f32 %v3400_v46, 0.0 }
 0x2dd   : > { %3543 = vst [vmem:[%s5964_s8 + $0xe0] sm:$0xff] %v3429_v21  ;;  %v3430_v20 = vmax.f32 %v3398_v54, 0.0  ;;  %5204 = vmaxabs.f32.vacc0 %v3431_v53, %v3429_v21 }
 0x2de   : > { %3546 = vst [vmem:[%s5964_s8 + $0xf8] sm:$0xff] %v3432_v34 }
 0x2df   : > { %3544 = vst [vmem:[%s5964_s8 + $0xe8] sm:$0xff] %v3430_v20  ;;  %5205 = vmaxabs.f32.vacc0 %v3432_v34, %v3430_v20 }
 0x2e1   : > { %v5206_v5 = vmovacc.low.even.vacc0 }
 0x2e3   : > { %3502 = vmax.xlane.f32.xlu0 %v5206_v5 }
 0x2e4   : > { %5103 = shalt.err (!%p5100_p0)
}
 0x2e5   : > { %s5104_s17 = scalar_lea.hbm %s6070_s16, 4096  ;;  %s5108_s30 = scalar_lea.hbm %s6161_s5, 8192 }
 0x2e6   : > { %p5105_p4 = scmp.ne.s32.totalorder %s6070_s16, %s5104_s17  ;;  %p5109_p12 = scmp.lt.u32.totalorder %s6070_s16, %s6161_s5 }
 0x2e7   : > { %p5110_p1 = scmp.lt.u32.totalorder %s5108_s30, %s5104_s17  ;;  %p5112_p13 = scmp.lt.u32.totalorder %s5104_s17, %s6070_s16 }
 0x2e8   : > { %p5106_p2 = pnand %p5105_p4, %p5434_p10 }
 0x2e9   : > { %p5111_p11 = por %p5110_p1, %p5109_p12 }
 0x2ea   : > { %p5107_p8 = pneg %p5106_p2 }
 0x2eb   : > { %p5113_p6 = por %p5112_p13, %p5111_p11 }
 0x2ed   : > { %p5114_p3 = pnand %p5113_p6, %p5107_p8 }
 0x2ef   : > { %5117 = shalt.err (!%p5114_p3)
}
 0x2f0   : > { %s5241_s14 = smov 128   ;;  %s5242_s15 = smov 8   ;;  %v3438_v8 = vld [vmem:[%s6062_s7] sm:$0x1] }
 0x2f1   : > { %4801 = dma.vmem_to_hbm [thread:$0]  (%p5434_p10), %s6073_s21, 4096, %s6070_s16, %s3548_s22, %s5241_s14, %s5241_s14, %s5242_s15  }
 0x2f2   : > { %s3826_s29 = sshll.u32 %s5221_s26, 4  ;;  %s3584_s12 = sshll.u32 %s6062_s7, 4  ;;  %s6107_s12 = int_to_ptr.vmem [resolvable:$true] %s3584_s12 }
 0x2f3   : > { %s6105_s16 = scalar_lea.hbm %s6162_s6, %s3826_s29  ;;  %s3553_s21 = scalar_lea.sflag [#allocation14], %s5492_s0 }
 0x2f4   : > { %s5118_s22 = scalar_lea.vmem %s6107_s12, 16  ;;  %s5243_s26 = smov [#allocation13]  }
 0x2f5   : > { %p5119_p5 = scmp.ne.s32.totalorder %s6107_s12, %s5118_s22  ;;  %s5122_s19 = sshll.u32 %s5243_s26, 4  ;;  %s5123_s19 = int_to_ptr.vmem [resolvable:$false] %s5122_s19 }
 0x2f6   : > { %s5124_s10 = scalar_lea.vmem %s5123_s19, 32  ;;  %p5125_p0 = scmp.lt.s32.totalorder %s6107_s12, %s5123_s19 }
 0x2f7   : > { %p5120_p7 = pnand %p5119_p5, %p5434_p10  ;;  %p5126_p4 = scmp.lt.s32.totalorder %s5124_s10, %s5118_s22 }
 0x2f9   : > { %p5121_p9 = pneg %p5120_p7  ;;  %p5127_p2 = por %p5126_p4, %p5125_p0 }
 0x2fb   : > { %p5128_p8 = pnand %p5127_p2, %p5121_p9 }
 0x370   : > { %v3503_v6 = vpop.xlane.xlu0 %3502 }
 0x371   : > { %v3504_v29 = vrot.slane %v3503_v6, 4 }
 0x373   : > { %v3505_v47 = vmax.f32 %v3503_v6, %v3504_v29 }
 0x375   : > { %v3506_v36 = vrot.slane %v3505_v47, 2 }
 0x377   : > { %v3507_v38 = vmax.f32 %v3505_v47, %v3506_v36 }
 0x379   : > { %v3508_v16 = vrot.slane %v3507_v38, 1 }
 0x37b   : > { %v3509_v58 = vmax.f32 %v3507_v38, %v3508_v16 }
 0x37d   : > { %4785 = vpush %v3509_v58 }
 0x3ae   : > { %s4786_s9 = spop %4785 }
 0x3af   : > { %v3511_v12 = vstv %s4786_s9 }
 0x3b0   : > { %v3512_v17 = vmax.f32 %v3438_v8, %v3511_v12 }
 0x3b2   : > { %3514 = vst.msk [vmem:[%s6062_s7] sm:$0x1] %vm3436_vm0, %v3512_v17 }
 0x3b3   : > { %5131 = shalt.err (!%p5128_p8)
}
 0x3b4   : > { %s5132_s0 = scalar_lea.hbm %s6105_s16, 16  ;;  %s5136_s8 = scalar_lea.hbm %s6162_s6, 32 }
 0x3b5   : > { %p5133_p12 = scmp.ne.s32.totalorder %s6105_s16, %s5132_s0  ;;  %p5137_p13 = scmp.lt.u32.totalorder %s6105_s16, %s6162_s6 }
 0x3b6   : > { %p5138_p6 = scmp.lt.u32.totalorder %s5136_s8, %s5132_s0  ;;  %p5140_p5 = scmp.lt.u32.totalorder %s5132_s0, %s6105_s16 }
 0x3b7   : > { %p5134_p1 = pnand %p5133_p12, %p5434_p10 }
 0x3b8   : > { %p5139_p3 = por %p5138_p6, %p5137_p13 }
 0x3b9   : > { %p5135_p11 = pneg %p5134_p1 }
 0x3ba   : > { %p5141_p7 = por %p5140_p5, %p5139_p3 }
 0x3bc   : > { %p5142_p9 = pnand %p5141_p7, %p5135_p11 }
 0x3be   : > { %5145 = shalt.err (!%p5142_p9)
}
 0x3bf   : > { %4802 = dma.vmem_to_hbm [thread:$0]  (%p5434_p10), %s6107_s12, 16, %s6105_s16, %s3553_s21  }
 0x3c0 PF: > { %s6184_s15 = sld [smem:[#allocation20_spill]]  ;;  %s6185_s29 = sld [smem:[#allocation21_spill]] }
 0x3c1   : > { %p6187_p4 = scmp.ge.s32.totalorder %s5229_s28, 2 }
 0x3c6   : > { %s3596_s9 = sand.u32 1, %s6184_s15   ;;  %p6186_p0 = scmp.ne.s32.totalorder %s6185_s29, 0 }
 0x3c7   : > { %s3597_s18 = scalar_lea.sflag [#allocation6], %s3596_s9 }
 0x3c8   : > { %p4820_p2 = pnand %p6187_p4, %p6186_p0 }
 0x3ca   : > { %5183 = dma.done.wait (!%p4820_p2), %s3597_s18, 4096  }
 0x3cb   : > { %5185 = vsyncadd (!%p4820_p2), %s3597_s18, 4294963200  ;;  %s3606_s17 = scalar_lea.sflag [#allocation14], %s3596_s9 }
 0x3cc   : > { %5187 = dma.done.wait (!%p4820_p2), %s3606_s17, 16  }
 0x3cd   : > { %5189 = vsyncadd (!%p4820_p2), %s3606_s17, 4294967280  ;;  %s29_s28 = sadd.s32 1, %s5229_s28   ;;  %s6188_s13 = smov %s6195_s23 }
 0x3ce   : > { %p26_p8 = scmp.ge.s32.totalorder %s29_s28, 4   ;;  %s6189_s23 = smov %s5213_s24 }
 0x3cf   : > { %s6190_s24 = smov %s5217_s25  ;;  %s6191_s25 = smov %s5446_s20 }
 0x3d0   : > { %s6192_s26 = smov %s5225_s27  ;;  %s6193_s27 = smov %s6188_s13 }
 0x3d1   :  { %28 = sbr.rel (!%p26_p8) target bundleno = 12 (0xc), region = 137 }
 0x3d8   :  { %3610 = vsyncpa [#allocation5], 1 }
 0x3d9   :  { %3612 = vsyncpa [#allocation5 + $0x1], 1 }
 0x3da   :  { %3613 = vsyncpa [#allocation8], 1 }
 0x3db   :  { %3614 = vsyncpa [#allocation11], 1 }
 0x3dc   :  { %3615 = vsyncpa [#allocation6], 1 }
 0x3dd   :  { %3617 = vsyncpa [#allocation6 + $0x1], 1 }
 0x3de   :  { %3618 = vsyncpa [#allocation14], 1 }
 0x3df   :  { %3620 = vsyncpa [#allocation14 + $0x1], 1 }

// kernel: q_resblock_bn_daq_forward.4
= control target key start
LH: loop header
LB: loop body
LE: loop exit
PB: predicated region body
PF: predicated region fallthrough
CT: control target
= control target key end

     0   :  { %s6401_s0 = inlined_call_operand.<no memory space> [shape: f32[1], index: 0, kind: input, shape index: {}]   ;;  %s6402_s1 = inlined_call_operand.hbm [shape: f32[2,16,16,128], index: 1, kind: input, shape index: {}]   ;;  %s6403_s2 = inlined_call_operand.hbm [shape: bf16[1152,128], index: 2, kind: input, shape index: {}]   ;;  %s6404_s3 = inlined_call_operand.hbm [shape: f32[1,128], index: 3, kind: input, shape index: {}]   ;;  %s6405_s4 = inlined_call_operand.hbm [shape: f32[1,128], index: 4, kind: input, shape index: {}]   ;;  %s6406_s5 = inlined_call_operand.hbm [shape: f32[2,16,16,128], index: 5, kind: input, shape index: {}]   ;;  %s6407_s6 = inlined_call_operand.hbm [shape: f32[2,16,16,128], index: 6, kind: output, shape index: {0}]   ;;  %s6408_s7 = inlined_call_operand.hbm [shape: f32[2,1,1,1], index: 7, kind: output, shape index: {1}]  }
   0x1   :  { %6429 = sst [smem:[#allocation29_spill]] %s6402_s1 }
   0x2   :  { %6430 = sst [smem:[#allocation30_spill]] %s6403_s2 }
   0x3   :  { %6431 = sst [smem:[#allocation31_spill]] %s6407_s6 }
   0x4   :  { %6432 = sst [smem:[#allocation32_spill]] %s6408_s7 }
   0x5   :  { %13 = sst [smem:[#allocation3]] %s6401_s0 }
   0x6   :  { %14 = vsyncpa [#allocation5], 0 }
   0x7   :  { %16 = vsyncpa [#allocation5 + $0x1], 0 }
   0x8   :  { %17 = vsyncpa [#allocation8], 0 }
   0x9   :  { %18 = vsyncpa [#allocation11], 0 }
   0xa   :  { %19 = vsyncpa [#allocation6], 0 }
   0xb   :  { %21 = vsyncpa [#allocation6 + $0x1], 0 }
   0xc   :  { %22 = vsyncpa [#allocation15], 0 }
   0xd   :  { %24 = vsyncpa [#allocation15 + $0x1], 0  ;;  %s5457_s26 = smov 0   ;;  %s5459_s27 = smov 0  }
   0xe   :  { %s5461_s28 = smov 0   ;;  %s5463_s29 = smov 0  }
   0xf   :  { %s5465_s30 = smov 0   ;;  %s5467_s8 = smov 0  }
  0x10 LB: > { %6433 = sst [smem:[#allocation22_spill]] %s5378_s26  ;;  %s5488_s0 = sadd.s32 4294967295, %s5398_s8   ;;  %s5398_s8 = sphi %s5467_s8, %s30_s8   ;;  %s5394_s30 = sphi %s5465_s30, %s6478_s30   ;;  %s5390_s29 = sphi %s5463_s29, %s6477_s29   ;;  %s5386_s28 = sphi %s5461_s28, %s6473_s28   ;;  %s5382_s27 = sphi %s5459_s27, %s6476_s27   ;;  %s5378_s26 = sphi %s5457_s26, %s6475_s26  }
  0x11   : > { %6434 = sst [smem:[#allocation23_spill]] %s5386_s28  ;;  %s3856_s9 = sadd.s32 4294967294, %s5398_s8  }
  0x12   : > { %6435 = sst [smem:[#allocation24_spill]] %s5398_s8  ;;  %p83_p0 = scmp.ne.s32.totalorder %s5382_s27, %s5378_s26 }
  0x13   : > { %p6409_p1 = scmp.eq.s32.totalorder %s5488_s0, 0  ;;  %p206_p3 = scmp.eq.s32.totalorder %s3856_s9, 1 }
  0x14   : > { %p3857_p5 = scmp.ge.s32.totalorder %s5398_s8, 1  ;;  %p239_p7 = scmp.lt.s32.totalorder %s5398_s8, 3 }
  0x15   : > { %p5497_p4 = por %p6409_p1, %p83_p0  ;;  %p5502_p6 = por %p206_p3, %p83_p0 }
  0x16   : > { %p5507_p8 = pnand %p3857_p5, %p239_p7  ;;  %s5400_s13 = smov [#allocation7]  }
  0x17   : > { %s6436_s10 = scalar_select %p5497_p4, 1, 0 }
  0x18   : > { %s6437_s11 = scalar_select %p5502_p6, 1, 0 }
  0x19   : > { %s6439_s12 = scalar_select %p5507_p8, 1, 0 }
  0x1a   : > { %6438 = sst [smem:[#allocation25_spill]] %s6437_s11  ;;  %s254_s14 = sshll.u32 %s5400_s13, 4  ;;  %s255_s14 = int_to_ptr.vmem [resolvable:$true] %s254_s14 }
  0x1b   : > { %p4937_p9 = pneg %p5507_p8  ;;  %s42_s16 = sadd.s32 1, %s5394_s30 }
  0x1c   : > { %s6441_s2 = sld [smem:[#allocation30_spill]] }
  0x1d   : > { %p5516_p11 = pnand %p4937_p9, %p6409_p1 }
  0x1f   : > { %s6440_s15 = scalar_select %p5516_p11, 1, 0 }
  0x20   : > { %p5529_p13 = pneg %p5516_p11 }
  0x22   : > { %s5111_s19 = scalar_lea.hbm %s6441_s2, 9216 }
  0x23   : > { %p5112_p12 = scmp.ne.s32.totalorder %s6441_s2, %s5111_s19  ;;  %p5118_p5 = scmp.lt.u32.totalorder %s5111_s19, %s6441_s2 }
  0x25   : > { %p5114_p0 = pnand %p5529_p13, %p5112_p12 }
  0x27   : > { %p5115_p3 = pneg %p5114_p0 }
  0x29   : > { %p5120_p7 = pnand %p5118_p5, %p5115_p3 }
  0x2b   : > { %5123 = shalt.err (!%p5120_p7)
}
  0x2c   : > { %s5124_s25 = scalar_lea.vmem %s255_s14, 9216  ;;  %p5132_p2 = scmp.lt.s32.totalorder %s255_s14, %s255_s14 }
  0x2d   : > { %p5125_p9 = scmp.ne.s32.totalorder %s255_s14, %s5124_s25  ;;  %p5133_p6 = scmp.lt.s32.totalorder %s5124_s25, %s5124_s25 }
  0x2f   : > { %p5127_p10 = pnand %p5125_p9, %p5529_p13  ;;  %p5134_p4 = por %p5133_p6, %p5132_p2 }
  0x31   : > { %p5128_p1 = pneg %p5127_p10 }
  0x33   : > { %p5135_p8 = pnand %p5134_p4, %p5128_p1 }
  0x35   : > { %5138 = shalt.err (!%p5135_p8)
}
  0x36   : > { %s5401_s9 = smov 64   ;;  %s5402_s13 = smov 4  }
  0x37   : > { %4940 = dma.hbm_to_vmem [thread:$0]  (!%p5516_p11), %s6441_s2, 9216, %s255_s14, [#allocation8], %s5401_s9, %s5401_s9, %s5402_s13  }
  0x38   : > { %p44_p1 = scmp.ge.s32.totalorder %s42_s16, 2  ;;  %s70_s19 = sadd.s32 1, %s5386_s28 }
  0x39   : > { %p77_p2 = scmp.ne.s32.totalorder %s5386_s28, %s5382_s27  ;;  %p78_p4 = scmp.eq.s32.totalorder %s5398_s8, 0 }
  0x3a   : > { %s6480_s16 = smov (%p44_p1, %s42_s16), 0  ;;  %p6445_p8 = scmp.eq.s32.totalorder %s5488_s0, 1 }
  0x3b   : > { %6443 = sst [smem:[#allocation26_spill]] %s6480_s16  ;;  %p5551_p6 = por %p78_p4, %p77_p2 }
  0x3c   : > { %p5557_p10 = por %p6445_p8, %p77_p2  ;;  %s67_s23 = ssub.s32 %s5394_s30, %s6480_s16 }
  0x3d   : > { %p4964_p12 = scmp.lt.s32.totalorder %s5398_s8, 2  ;;  %p68_p0 = scmp.eq.s32.totalorder %s67_s23, 0 }
  0x3e   : > { %s6446_s21 = scalar_select %p5557_p10, 1, 0 }
  0x3f   : > { %s290_s14 = sand.u32 1, %s5398_s8   ;;  %s292_s24 = sand.u32 1, %s5386_s28  }
  0x40   : > { %6447 = sst [smem:[#allocation27_spill]] %s6446_s21  ;;  %s5569_s9 = sshll.u32 %s292_s24, 8 }
  0x41   : > { %s5567_s25 = scalar_select %p68_p0, %s5386_s28, %s70_s19  }
  0x42   : > { %s6413_s13 = sshll.u32 %s5394_s30, 12  ;;  %s6449_s1 = sld [smem:[#allocation29_spill]] }
  0x43   : > { %6448 = sst [smem:[#allocation28_spill]] %s5567_s25  ;;  %s294_s16 = scalar_lea.vmem [#allocation4], %s5569_s9 }
  0x44   : > { %s301_s23 = sshll.u32 %s294_s16, 4  ;;  %p5582_p3 = pnand %p4964_p12, %p5551_p6  ;;  %s5586_s23 = int_to_ptr.vmem [resolvable:$true] %s301_s23 }
  0x45   : > { %s5588_s24 = scalar_lea.sflag [#allocation5], %s290_s14 }
  0x46   : > { %s6450_s19 = scalar_select %p5582_p3, 1, 0 }
  0x47   : > { %p6426_p7 = pneg %p5582_p3 }
  0x48   : > { %s5577_s2 = scalar_lea.hbm %s6449_s1, %s6413_s13  ;;  %s5144_s18 = scalar_lea.hbm %s6449_s1, 8192 }
  0x49   : > { %s5139_s17 = scalar_lea.hbm %s5577_s2, 4096  ;;  %p5145_p2 = scmp.lt.u32.totalorder %s5577_s2, %s6449_s1 }
  0x4a   : > { %p5140_p5 = scmp.ne.s32.totalorder %s5577_s2, %s5139_s17  ;;  %p5146_p4 = scmp.lt.u32.totalorder %s5144_s18, %s5139_s17 }
  0x4b   : > { %p5148_p8 = scmp.lt.u32.totalorder %s5139_s17, %s5577_s2 }
  0x4c   : > { %p5142_p9 = pnand %p6426_p7, %p5140_p5  ;;  %p5147_p6 = por %p5146_p4, %p5145_p2 }
  0x4e   : > { %p5143_p1 = pneg %p5142_p9  ;;  %p5149_p12 = por %p5148_p8, %p5147_p6 }
  0x50   : > { %p5150_p0 = pnand %p5149_p12, %p5143_p1 }
  0x52   : > { %5153 = shalt.err (!%p5150_p0)
}
  0x53   : > { %s5154_s14 = scalar_lea.vmem %s5586_s23, 4096  ;;  %s5403_s16 = smov [#allocation4]  }
  0x54   : > { %p5155_p5 = scmp.ne.s32.totalorder %s5586_s23, %s5154_s14  ;;  %s5159_s20 = sshll.u32 %s5403_s16, 4  ;;  %s5160_s20 = int_to_ptr.vmem [resolvable:$false] %s5159_s20 }
  0x55   : > { %s5161_s25 = scalar_lea.vmem %s5160_s20, 8192  ;;  %p5162_p11 = scmp.lt.s32.totalorder %s5586_s23, %s5160_s20 }
  0x56   : > { %p5157_p9 = pnand %p5155_p5, %p6426_p7  ;;  %p5163_p2 = scmp.lt.s32.totalorder %s5161_s25, %s5154_s14 }
  0x58   : > { %p5158_p10 = pneg %p5157_p9  ;;  %p5164_p4 = por %p5163_p2, %p5162_p11 }
  0x5a   : > { %p5165_p6 = pnand %p5164_p4, %p5158_p10 }
  0x5c   : > { %5168 = shalt.err (!%p5165_p6)
}
  0x5d   : > { %s5404_s13 = smov 128   ;;  %s5405_s17 = smov 8  }
  0x5e   : > { %4950 = dma.hbm_to_vmem [thread:$0]  (!%p5582_p3), %s5577_s2, 4096, %s5586_s23, %s5588_s24, %s5404_s13, %s5404_s13, %s5405_s17  }
  0x5f   : > { %s6451_s18 = sshll.u32 %s5394_s30, 12  ;;  %s315_s25 = scalar_lea.vmem [#allocation12], %s5569_s9 }
  0x60   : > { %s5624_s20 = scalar_lea.hbm %s6406_s5, %s6451_s18  ;;  %s325_s1 = sshll.u32 %s315_s25, 4  ;;  %s5645_s1 = int_to_ptr.vmem [resolvable:$true] %s325_s1 }
  0x61   : > { %s5406_s28 = smov [#allocation9]   ;;  %s5169_s7 = scalar_lea.hbm %s6404_s3, 16 }
  0x62   : > { %s268_s8 = sshll.u32 %s5406_s28, 4  ;;  %p5170_p11 = scmp.ne.s32.totalorder %s6404_s3, %s5169_s7  ;;  %s269_s8 = int_to_ptr.vmem [resolvable:$true] %s268_s8 }
  0x63   : > { %p5176_p8 = scmp.lt.u32.totalorder %s5169_s7, %s6404_s3 }
  0x64   : > { %p5172_p10 = pnand %p5170_p11, %p5529_p13 }
  0x66   : > { %p5173_p1 = pneg %p5172_p10 }
  0x68   : > { %p5178_p12 = pnand %p5176_p8, %p5173_p1 }
  0x6a   : > { %5181 = shalt.err (!%p5178_p12)
}
  0x6b   : > { %s5182_s9 = scalar_lea.vmem %s269_s8, 16  ;;  %s5189_s26 = scalar_lea.vmem %s269_s8, 32 }
  0x6c   : > { %p5183_p0 = scmp.ne.s32.totalorder %s269_s8, %s5182_s9  ;;  %p5190_p2 = scmp.lt.s32.totalorder %s269_s8, %s269_s8 }
  0x6d   : > { %p5191_p4 = scmp.lt.s32.totalorder %s5189_s26, %s5182_s9 }
  0x6e   : > { %p5185_p5 = pnand %p5183_p0, %p5529_p13 }
  0x6f   : > { %p5192_p6 = por %p5191_p4, %p5190_p2 }
  0x70   : > { %p5186_p9 = pneg %p5185_p5 }
  0x72   : > { %p5193_p7 = pnand %p5192_p6, %p5186_p9 }
  0x74   : > { %5196 = shalt.err (!%p5193_p7)
}
  0x75   : > { %p6452_p11 = scmp.ne.s32.totalorder %s6440_s15, 0  ;;  %s5407_s7 = smov [#allocation10]  }
  0x76   : > { %s279_s11 = sshll.u32 %s5407_s7, 4  ;;  %s5197_s16 = scalar_lea.hbm %s6405_s4, 16  ;;  %s280_s11 = int_to_ptr.vmem [resolvable:$true] %s279_s11 }
  0x77   : > { %4943 = dma.hbm_to_vmem [thread:$0]  (!%p6452_p11), %s6404_s3, 16, %s269_s8, [#allocation8]  }
  0x78   : > { %p5198_p7 = scmp.ne.s32.totalorder %s6405_s4, %s5197_s16  ;;  %p5204_p8 = scmp.lt.u32.totalorder %s5197_s16, %s6405_s4 }
  0x7a   : > { %p5200_p10 = pnand %p5198_p7, %p5529_p13 }
  0x7c   : > { %p5201_p1 = pneg %p5200_p10 }
  0x7e   : > { %p5206_p12 = pnand %p5204_p8, %p5201_p1 }
  0x80   : > { %5209 = shalt.err (!%p5206_p12)
}
  0x81   : > { %s5210_s8 = scalar_lea.vmem %s280_s11, 16  ;;  %s5217_s9 = scalar_lea.vmem %s280_s11, 32 }
  0x82   : > { %p5211_p0 = scmp.ne.s32.totalorder %s280_s11, %s5210_s8  ;;  %p5218_p2 = scmp.lt.s32.totalorder %s280_s11, %s280_s11 }
  0x83   : > { %p5219_p4 = scmp.lt.s32.totalorder %s5217_s9, %s5210_s8 }
  0x84   : > { %p5213_p5 = pnand %p5211_p0, %p5529_p13 }
  0x85   : > { %p5220_p6 = por %p5219_p4, %p5218_p2 }
  0x86   : > { %p5214_p9 = pneg %p5213_p5 }
  0x88   : > { %p5221_p3 = pnand %p5220_p6, %p5214_p9 }
  0x8a   : > { %5224 = shalt.err (!%p5221_p3)
}
  0x8b   : > { %4946 = dma.hbm_to_vmem [thread:$0]  (!%p6452_p11), %s6405_s4, 16, %s280_s11, [#allocation11]  }
  0x8c   : > { %s5225_s22 = scalar_lea.hbm %s5624_s20, 4096  ;;  %p6453_p7 = scmp.ne.s32.totalorder %s6450_s19, 0 }
  0x8d   : > { %p5226_p13 = scmp.ne.s32.totalorder %s5624_s20, %s5225_s22  ;;  %s5230_s21 = scalar_lea.hbm %s6406_s5, 8192 }
  0x8e   : > { %p6454_p10 = pneg %p6453_p7  ;;  %p5231_p3 = scmp.lt.u32.totalorder %s5624_s20, %s6406_s5 }
  0x8f   : > { %p5232_p12 = scmp.lt.u32.totalorder %s5230_s21, %s5225_s22  ;;  %p5234_p5 = scmp.lt.u32.totalorder %s5225_s22, %s5624_s20 }
  0x90   : > { %p5228_p1 = pnand %p5226_p13, %p6454_p10 }
  0x91   : > { %p5233_p0 = por %p5232_p12, %p5231_p3 }
  0x92   : > { %p5229_p8 = pneg %p5228_p1 }
  0x93   : > { %p5235_p9 = por %p5234_p5, %p5233_p0 }
  0x95   : > { %p5236_p2 = pnand %p5235_p9, %p5229_p8 }
  0x97   : > { %5239 = shalt.err (!%p5236_p2)
}
  0x98   : > { %s5240_s11 = scalar_lea.vmem %s5645_s1, 4096  ;;  %p6455_p4 = pmov %p6454_p10 }
  0x99   : > { %p5241_p11 = scmp.ne.s32.totalorder %s5645_s1, %s5240_s11  ;;  %s5408_s16 = smov [#allocation12]  }
  0x9a   : > { %s5245_s14 = sshll.u32 %s5408_s16, 4  ;;  %s5246_s14 = int_to_ptr.vmem [resolvable:$false] %s5245_s14 }
  0x9b   : > { %p5243_p6 = pnand %p5241_p11, %p6455_p4  ;;  %s5247_s25 = scalar_lea.vmem %s5246_s14, 8192 }
  0x9c   : > { %p5248_p10 = scmp.lt.s32.totalorder %s5645_s1, %s5246_s14  ;;  %p5249_p1 = scmp.lt.s32.totalorder %s5247_s25, %s5240_s11 }
  0x9d   : > { %p5244_p13 = pneg %p5243_p6 }
  0x9e   : > { %p5250_p3 = por %p5249_p1, %p5248_p10 }
  0xa0   : > { %p5251_p12 = pnand %p5250_p3, %p5244_p13 }
  0xa2   : > { %5254 = shalt.err (!%p5251_p12)
}
  0xa3   : > { %4953 = dma.hbm_to_vmem [thread:$0]  (!%p6453_p7), %s5624_s20, 4096, %s5645_s1, %s5588_s24, %s5404_s13, %s5404_s13, %s5405_s17  }
  0xa4   : > { %p6456_p8 = scmp.ne.s32.totalorder %s6439_s12, 0 }
  0xa5   : > { %s339_s2 = sand.u32 (!%p6456_p8), 1, %s5488_s0   ;;  %s5696_s23 = sand.u32 (!%p6456_p8), 1, %s5382_s27  }
  0xa6   : > { %337 = sbr.rel (%p6456_p8) target bundleno = 1002 (0x3ea), region = 44  ;;  %s5699_s8 = sshll.u32 (!%p6456_p8), %s5696_s23, 8 }
  0xa7   : > { %s340_s19 = scalar_lea.sflag (!%p6456_p8), [#allocation5], %s339_s2  ;;  %s5702_s9 = scalar_lea.vmem (!%p6456_p8), [#allocation4], %s5699_s8 }
  0xa8   : > { %p6457_p0 = scmp.ne.s32.totalorder (!%p6456_p8), %s6436_s10, 0 }
  0xad   : > { %5336 = dma.done.wait (%p6457_p0), %s340_s19, 4096  }
  0xae   : > { %5338 = vsyncadd (%p6457_p0), %s340_s19, 4294963200  ;;  %p6458_p7 = scmp.eq.s32.totalorder %s5488_s0, 0 }
  0xb0   : > { %5340 = dma.done.wait (%p6458_p7), [#allocation8], 9232   ;;  %p6459_p5 = pmov %p6458_p7 }
  0xb2   : > { %5342 = vsyncadd (%p6459_p5), [#allocation8], 4294958064  ;;  %p6460_p9 = pmov %p6459_p5 }
  0xb3   : > { %p6461_p2 = pmov %p6459_p5 }
  0xb4   : > { %5344 = dma.done.wait (%p6460_p9), [#allocation11], 16  }
  0xb5   : > { %5346 = vsyncadd (%p6461_p2), [#allocation11], 4294967280  ;;  %s5717_s1 = scalar_lea.vmem [#allocation12], %s5699_s8 }
  0xb6   : > { %5348 = dma.done.wait (%p6457_p0), %s340_s19, 4096  }
  0xb7   : > { %5350 = vsyncadd (%p6457_p0), %s340_s19, 4294963200  ;;  %s5723_s12 = sld [smem:[#allocation3]]  ;;  %v5409_v0 = vmov 0.0   ;;  %v5027_v2 = vld [vmem:[#allocation7 + $0x40] sm:$0xff]   ;;  %v5029_v4 = vld [vmem:[#allocation7 + $0x48] sm:$0xff]   ;;  %s6180_s10 = scalar_lea.vmem [#allocation13], %s5699_s8 }
  0xb8   : > { %416 = vst [vmem:[#allocation2] sm:$0xff] %v5409_v0  ;;  %417 = vst [vmem:[#allocation2 + $0x8] sm:$0xff] %v5409_v0  ;;  %v5028_v3 = vld [vmem:[#allocation7 + $0x100] sm:$0xff]   ;;  %4177 = vmatprep.subr.bf16.mxu1 %v5027_v2  ;;  %v5030_v5 = vld [vmem:[#allocation7 + $0x108] sm:$0xff]   ;;  %s6462_s24 = sld [smem:[#allocation27_spill]]  ;;  %vm3538_vm0 = vcmask 0  }
  0xb9   : > { %418 = vst [vmem:[#allocation2 + $0x10] sm:$0x3] %v5409_v0  ;;  %419 = vst [vmem:[#allocation2 + $0x18] sm:$0xff] %v5409_v0  ;;  %4369 = vmatprep.subr.bf16.mxu0 %v5028_v3  ;;  %4178 = vmatpush3.bf16.msra.mxu1 %v5027_v2  ;;  %v5031_v6 = vld [vmem:[#allocation7 + $0x50] sm:$0xff]   ;;  %v5033_v8 = vld [vmem:[#allocation7 + $0x58] sm:$0xff]   ;;  %s6307_s13 = scalar_lea.vmem [#allocation14], %s5696_s23 }
  0xba   : > { %420 = vst [vmem:[#allocation2 + $0x20] sm:$0xff] %v5409_v0  ;;  %421 = vst [vmem:[#allocation2 + $0x28] sm:$0x3] %v5409_v0  ;;  %4370 = vmatpush3.bf16.msra.mxu0 %v5028_v3  ;;  %4179 = vmatprep.subr.bf16.mxu1 %v5029_v4  ;;  %v5032_v7 = vld [vmem:[#allocation7 + $0x110] sm:$0xff]   ;;  %v5034_v9 = vld [vmem:[#allocation7 + $0x118] sm:$0xff]   ;;  %s3960_s17 = sshll.u32 %s5390_s29, 12 }
  0xbb   : > { %422 = vst [vmem:[#allocation2 + $0x30] sm:$0xff] %v5409_v0  ;;  %423 = vst [vmem:[#allocation2 + $0x38] sm:$0xff] %v5409_v0  ;;  %4371 = vmatprep.subr.bf16.mxu0 %v5030_v5  ;;  %v5035_v11 = vld [vmem:[#allocation7 + $0x60] sm:$0xff]   ;;  %v5037_v15 = vld [vmem:[#allocation7 + $0x68] sm:$0xff]   ;;  %s6463_s6 = sld [smem:[#allocation31_spill]]  ;;  %s3670_s28 = sshll.u32 %s6180_s10, 4  ;;  %s6318_s28 = int_to_ptr.vmem [resolvable:$true] %s3670_s28 }
  0xbc   : > { %424 = vst [vmem:[#allocation2 + $0x40] sm:$0x3] %v5409_v0  ;;  %425 = vst [vmem:[#allocation2 + $0x48] sm:$0xff] %v5409_v0  ;;  %v5036_v12 = vld [vmem:[#allocation7 + $0x120] sm:$0xff]   ;;  %v5038_v17 = vld [vmem:[#allocation7 + $0x128] sm:$0xff]   ;;  %s3650_s7 = scalar_lea.sflag [#allocation6], %s5696_s23 }
  0xbd   : > { %426 = vst [vmem:[#allocation2 + $0x50] sm:$0xff] %v5409_v0  ;;  %427 = vst [vmem:[#allocation2 + $0x58] sm:$0x3] %v5409_v0  ;;  %v408_v1 = vstv %s5723_s12  ;;  %4180 = vmatpush3.bf16.msra.mxu1 %v5029_v4  ;;  %v5039_v18 = vld [vmem:[#allocation7 + $0x70] sm:$0xff]   ;;  %v5041_v20 = vld [vmem:[#allocation7 + $0x78] sm:$0xff]   ;;  %s5255_s21 = scalar_lea.vmem %s6318_s28, 4096 }
  0xbe   : > { %428 = vst [vmem:[#allocation2 + $0x60] sm:$0xff] %v5409_v0  ;;  %429 = vst [vmem:[#allocation2 + $0x68] sm:$0xff] %v5409_v0  ;;  %5099 = vrcp.f32 %v408_v1  ;;  %4372 = vmatpush3.bf16.msra.mxu0 %v5030_v5  ;;  %4181 = vmatprep.subr.bf16.mxu1 %v5031_v6  ;;  %v5040_v19 = vld [vmem:[#allocation7 + $0x130] sm:$0xff]   ;;  %v5042_v21 = vld [vmem:[#allocation7 + $0x138] sm:$0xff]   ;;  %p5256_p11 = scmp.ne.s32.totalorder %s6318_s28, %s5255_s21  ;;  %p6464_p4 = scmp.ne.s32.totalorder %s6462_s24, 0 }
  0xbf   : > { %430 = vst [vmem:[#allocation2 + $0x70] sm:$0x3] %v5409_v0  ;;  %431 = vst [vmem:[#allocation2 + $0x78] sm:$0xff] %v5409_v0  ;;  %4373 = vmatprep.subr.bf16.mxu0 %v5032_v7  ;;  %v773_v13 = vld [vmem:[#allocation2 + $0x1] sm:$0xff]  ;;  %v5728_v22 = vld [vmem:[#allocation7] sm:$0xff]   ;;  %s5410_s15 = smov [#allocation13]  }
  0xc0   : > { %432 = vst [vmem:[#allocation2 + $0x80] sm:$0xff] %v5409_v0  ;;  %433 = vst [vmem:[#allocation2 + $0x88] sm:$0x3] %v5409_v0  ;;  %v774_v14 = vld [vmem:[#allocation2 + $0x9] sm:$0xff]  ;;  %v477_v25 = vld [vmem:[%s5702_s9 + $0x8] sm:$0xff]  ;;  %p5257_p6 = pnand %p5256_p11, %p6464_p4  ;;  %s5259_s18 = sshll.u32 %s5410_s15, 4  ;;  %s5260_s18 = int_to_ptr.vmem [resolvable:$false] %s5259_s18 }
  0xc1   : > { %434 = vst [vmem:[#allocation2 + $0x90] sm:$0xff] %v5409_v0  ;;  %435 = vst [vmem:[#allocation2 + $0x98] sm:$0xff] %v5409_v0  ;;  %4182 = vmatpush3.bf16.msra.mxu1 %v5031_v6  ;;  %v805_v16 = vpack.c.bf16 %v774_v14, %v773_v13  ;;  %v5730_v23 = vld [vmem:[#allocation7 + $0x140] sm:$0xff]   ;;  %v478_v26 = vld [vmem:[%s5702_s9 + $0x10] sm:$0xff]  ;;  %s6315_s22 = scalar_lea.hbm %s6463_s6, %s3960_s17  ;;  %s5261_s11 = scalar_lea.vmem %s5260_s18, 8192 }
  0xc2   : > { %436 = vst [vmem:[#allocation2 + $0xa0] sm:$0x3] %v5409_v0  ;;  %437 = vst [vmem:[#allocation2 + $0xa8] sm:$0xff] %v5409_v0  ;;  %4374 = vmatpush3.bf16.msra.mxu0 %v5032_v7  ;;  %4183 = vmatprep.subr.bf16.mxu1 %v5033_v8  ;;  %v476_v24 = vld [vmem:[%s5702_s9] sm:$0xff]  ;;  %v479_v27 = vld [vmem:[%s5702_s9 + $0x18] sm:$0xff]  ;;  %p5258_p13 = pneg %p5257_p6  ;;  %p5262_p10 = scmp.lt.s32.totalorder %s6318_s28, %s5260_s18 }
  0xc3   : > { %438 = vst [vmem:[#allocation2 + $0xb0] sm:$0xff] %v5409_v0  ;;  %439 = vst [vmem:[#allocation2 + $0xb8] sm:$0x3] %v5409_v0  ;;  %4375 = vmatprep.subr.bf16.mxu0 %v5034_v9  ;;  %4193 = vmatprep.mubr.bf16.mxu1 %v805_v16  ;;  %v480_v28 = vld [vmem:[%s5702_s9 + $0x20] sm:$0xff]  ;;  %v481_v29 = vld [vmem:[%s5702_s9 + $0x28] sm:$0xff]  ;;  %p5263_p1 = scmp.lt.s32.totalorder %s5261_s11, %s5255_s21 }
  0xc4   : > { %440 = vst [vmem:[#allocation2 + $0xc0] sm:$0xff] %v5409_v0  ;;  %441 = vst [vmem:[#allocation2 + $0xc8] sm:$0xff] %v5409_v0  ;;  %v482_v30 = vld [vmem:[%s5702_s9 + $0x30] sm:$0xff]  ;;  %v483_v31 = vld [vmem:[%s5702_s9 + $0x38] sm:$0xff] }
  0xc5   : > { %442 = vst [vmem:[#allocation2 + $0xd0] sm:$0x3] %v5409_v0  ;;  %443 = vst [vmem:[#allocation2 + $0xd8] sm:$0xff] %v5409_v0  ;;  %4184 = vmatpush3.bf16.msra.mxu1 %v5033_v8  ;;  %v484_v49 = vld [vmem:[%s5702_s9 + $0x40] sm:$0xff]  ;;  %v485_v50 = vld [vmem:[%s5702_s9 + $0x48] sm:$0xff]  ;;  %p5264_p3 = por %p5263_p1, %p5262_p10 }
  0xc6   : > { %444 = vst [vmem:[#allocation2 + $0xe0] sm:$0xff] %v5409_v0  ;;  %445 = vst [vmem:[#allocation2 + $0xe8] sm:$0x3] %v5409_v0  ;;  %4376 = vmatpush3.bf16.msra.mxu0 %v5034_v9  ;;  %4185 = vmatprep.subr.bf16.mxu1 %v5035_v11  ;;  %v486_v55 = vld [vmem:[%s5702_s9 + $0x50] sm:$0xff]  ;;  %v487_v56 = vld [vmem:[%s5702_s9 + $0x58] sm:$0xff] }
  0xc7   : > { %446 = vst [vmem:[#allocation2 + $0xf0] sm:$0xff] %v5409_v0  ;;  %447 = vst [vmem:[#allocation2 + $0xf8] sm:$0xff] %v5409_v0  ;;  %4377 = vmatprep.subr.bf16.mxu0 %v5036_v12  ;;  %v488_v61 = vld [vmem:[%s5702_s9 + $0x60] sm:$0xff]  ;;  %v489_v62 = vld [vmem:[%s5702_s9 + $0x68] sm:$0xff]  ;;  %p5265_p12 = pnand %p5264_p3, %p5258_p13 }
  0xc8   : > { %448 = vst [vmem:[#allocation2 + $0x100] sm:$0x3] %v5409_v0  ;;  %449 = vst [vmem:[#allocation2 + $0x108] sm:$0xff] %v5409_v0  ;;  %v5100_v10 = vpop.eup %5099  ;;  %v5046_v4 = vld [vmem:[#allocation7 + $0x8] sm:$0xff]   ;;  %v490_v5 = vld [vmem:[%s5702_s9 + $0x70] sm:$0xff] }
  0xc9   : > { %450 = vst [vmem:[#allocation2 + $0x110] sm:$0xff] %v5409_v0  ;;  %451 = vst [vmem:[#allocation2 + $0x118] sm:$0x3] %v5409_v0  ;;  %4186 = vmatpush3.bf16.msra.mxu1 %v5035_v11  ;;  %v491_v6 = vld [vmem:[%s5702_s9 + $0x78] sm:$0xff] }
  0xca   : > { %452 = vst [vmem:[#allocation2 + $0x120] sm:$0xff] %v5409_v0  ;;  %453 = vst [vmem:[#allocation2 + $0x128] sm:$0xff] %v5409_v0  ;;  %4378 = vmatpush3.bf16.msra.mxu0 %v5036_v12  ;;  %4187 = vmatprep.subr.bf16.mxu1 %v5037_v15 }
  0xcb   : > { %454 = vst [vmem:[#allocation2 + $0x130] sm:$0x3] %v5409_v0  ;;  %455 = vst [vmem:[#allocation2 + $0x138] sm:$0xff] %v5409_v0  ;;  %4379 = vmatprep.subr.bf16.mxu0 %v5038_v17 }
  0xcc   : > { %456 = vst [vmem:[#allocation2 + $0x140] sm:$0xff] %v5409_v0  ;;  %457 = vst [vmem:[#allocation2 + $0x148] sm:$0x3] %v5409_v0 }
  0xcd   : > { %458 = vst [vmem:[#allocation2 + $0x150] sm:$0xff] %v5409_v0  ;;  %459 = vst [vmem:[#allocation2 + $0x158] sm:$0xff] %v5409_v0  ;;  %4188 = vmatpush3.bf16.msra.mxu1 %v5037_v15 }
  0xce   : > { %460 = vst [vmem:[#allocation2 + $0x160] sm:$0x3] %v5409_v0  ;;  %461 = vst [vmem:[#allocation2 + $0x168] sm:$0xff] %v5409_v0  ;;  %4380 = vmatpush3.bf16.msra.mxu0 %v5038_v17  ;;  %4189 = vmatprep.subr.bf16.mxu1 %v5039_v18 }
  0xcf   : > { %462 = vst [vmem:[#allocation2 + $0x170] sm:$0xff] %v5409_v0  ;;  %463 = vst [vmem:[#allocation2 + $0x178] sm:$0x3] %v5409_v0  ;;  %4381 = vmatprep.subr.bf16.mxu0 %v5040_v19 }
  0xd0   : > { %464 = vst [vmem:[#allocation2 + $0x180] sm:$0xff] %v5409_v0  ;;  %465 = vst [vmem:[#allocation2 + $0x188] sm:$0xff] %v5409_v0 }
  0xd1   : > { %466 = vst [vmem:[#allocation2 + $0x190] sm:$0x3] %v5409_v0  ;;  %469 = vst [vmem:[#allocation2 + $0x1a8] sm:$0x3] %v5409_v0  ;;  %4190 = vmatpush3.bf16.msra.mxu1 %v5039_v18  ;;  %v5045_v18 = vld [vmem:[#allocation7 + $0x148] sm:$0xff]  }
  0xd2   : > { %471 = vst [vmem:[#allocation2 + $0x198] sm:$0xff] %v5409_v0  ;;  %472 = vst [vmem:[#allocation2 + $0x1a0] sm:$0xff] %v5409_v0  ;;  %4382 = vmatpush3.bf16.msra.mxu0 %v5040_v19  ;;  %4191 = vmatprep.subr.bf16.mxu1 %v5041_v20 }
  0xd3   : > { %473 = vst [vmem:[#allocation2 + $0x1a8] sm:$0x3] %v5409_v0  ;;  %4881 = vpush %v5100_v10  ;;  %4383 = vmatprep.subr.bf16.mxu0 %v5042_v21 }
  0xd5   : > { %4192 = vmatpush3.bf16.msra.mxu1 %v5041_v20 }
  0xd6   : > { %4384 = vmatpush3.bf16.msra.mxu0 %v5042_v21  ;;  %4225 = vmatprep.subr.bf16.mxu1 %v5728_v22  ;;  %v5049_v21 = vld [vmem:[#allocation7 + $0x10] sm:$0xff]  }
  0xd7   : > { %4417 = vmatprep.subr.bf16.mxu0 %v5730_v23 }
 0x104   : > { %s4882_s0 = spop %4881 }
 0x105   : > { %v5742_v32 = vstv %s4882_s0 }
 0x106   : > { %v509_v33 = vmul.f32 %v5742_v32, %v476_v24  ;;  %v510_v34 = vmul.f32 %v5742_v32, %v477_v25  ;;  %v511_v35 = vmul.f32 %v5742_v32, %v478_v26  ;;  %v512_v36 = vmul.f32 %v5742_v32, %v479_v27 }
 0x107   : > { %v513_v37 = vmul.f32 %v5742_v32, %v480_v28  ;;  %v514_v38 = vmul.f32 %v5742_v32, %v481_v29  ;;  %v515_v39 = vmul.f32 %v5742_v32, %v482_v30  ;;  %v516_v40 = vmul.f32 %v5742_v32, %v483_v31  ;;  %v5047_v30 = vld [vmem:[#allocation7 + $0x150] sm:$0xff]  }
 0x108   : > { %v4883_v41 = vround.rtne.f32 %v509_v33  ;;  %v4884_v42 = vround.rtne.f32 %v510_v34  ;;  %v4885_v43 = vround.rtne.f32 %v511_v35  ;;  %v4886_v44 = vround.rtne.f32 %v512_v36  ;;  %v492_v36 = vld [vmem:[%s5702_s9 + $0x80] sm:$0xff] }
 0x109   : > { %v4887_v45 = vround.rtne.f32 %v513_v37  ;;  %v4888_v46 = vround.rtne.f32 %v514_v38  ;;  %v4889_v47 = vround.rtne.f32 %v515_v39  ;;  %v4890_v48 = vround.rtne.f32 %v516_v40 }
 0x10a   : > { %v573_v51 = vmax.f32 %v4883_v41, -128.0  ;;  %v574_v52 = vmax.f32 %v4884_v42, -128.0  ;;  %v575_v53 = vmax.f32 %v4885_v43, -128.0  ;;  %v576_v54 = vmax.f32 %v4886_v44, -128.0 }
 0x10b   : > { %v577_v57 = vmax.f32 %v4887_v45, -128.0  ;;  %v578_v58 = vmax.f32 %v4888_v46, -128.0  ;;  %v5756_v59 = vmax.f32 %v4889_v47, -128.0  ;;  %v5758_v60 = vmax.f32 %v4890_v48, -128.0  ;;  %v493_v47 = vld [vmem:[%s5702_s9 + $0x88] sm:$0xff]  ;;  %v494_v48 = vld [vmem:[%s5702_s9 + $0x90] sm:$0xff] }
 0x10c   : > { %v605_v63 = vmin.f32 %v573_v51, 127.0  ;;  %v606_v0 = vmin.f32 %v574_v52, 127.0  ;;  %v607_v2 = vmin.f32 %v575_v53, 127.0  ;;  %v608_v3 = vmin.f32 %v576_v54, 127.0  ;;  %v5052_v51 = vld [vmem:[#allocation7 + $0x18] sm:$0xff]  }
 0x10d   : > { %v609_v7 = vmin.f32 %v577_v57, 127.0  ;;  %v610_v8 = vmin.f32 %v578_v58, 127.0  ;;  %v611_v9 = vmin.f32 %v5756_v59, 127.0  ;;  %v612_v10 = vmin.f32 %v5758_v60, 127.0  ;;  %v495_v52 = vld [vmem:[%s5702_s9 + $0x98] sm:$0xff]  ;;  %v496_v57 = vld [vmem:[%s5702_s9 + $0xa0] sm:$0xff] }
 0x10e   : > { %638 = vst [vmem:[#allocation2 + $0x19] sm:$0xff] %v605_v63  ;;  %639 = vst [vmem:[#allocation2 + $0x21] sm:$0xff] %v606_v0  ;;  %v806_v11 = vpack.c.bf16 %v606_v0, %v605_v63  ;;  %v807_v12 = vpack.c.bf16 %v608_v3, %v607_v2  ;;  %v517_v13 = vmul.f32 %v5742_v32, %v484_v49  ;;  %v5048_v58 = vld [vmem:[#allocation7 + $0x158] sm:$0xff]  }
 0x10f   : > { %640 = vst [vmem:[#allocation2 + $0x31] sm:$0xff] %v607_v2  ;;  %641 = vst [vmem:[#allocation2 + $0x39] sm:$0xff] %v608_v3  ;;  %v518_v14 = vmul.f32 %v5742_v32, %v485_v50  ;;  %v1899_v15 = vpack.c.bf16 %v610_v8, %v609_v7  ;;  %v519_v16 = vmul.f32 %v5742_v32, %v486_v55  ;;  %v499_v3 = vld [vmem:[%s5702_s9 + $0xb8] sm:$0xff] }
 0x110   : > { %642 = vst [vmem:[#allocation2 + $0x49] sm:$0xff] %v609_v7  ;;  %643 = vst [vmem:[#allocation2 + $0x51] sm:$0xff] %v610_v8  ;;  %v520_v17 = vmul.f32 %v5742_v32, %v487_v56  ;;  %4194 = vmatmul.mubr.bf16.vlgmr.msra.gmra.mrb[0].mxu1 %v806_v11  ;;  %4385 = vmatprep.mubr.bf16.mxu0 %v806_v11  ;;  %v4891_v19 = vround.rtne.f32 %v517_v13  ;;  %v521_v24 = vmul.f32 %v5742_v32, %v488_v61  ;;  %v497_v61 = vld [vmem:[%s5702_s9 + $0xa8] sm:$0xff] }
 0x111   : > { %644 = vst [vmem:[#allocation2 + $0x61] sm:$0xff] %v611_v9  ;;  %645 = vst [vmem:[#allocation2 + $0x69] sm:$0xff] %v612_v10  ;;  %v4892_v20 = vround.rtne.f32 %v518_v14  ;;  %v522_v25 = vmul.f32 %v5742_v32, %v489_v62  ;;  %4197 = vmatprep.mubr.bf16.mxu1 %v807_v12  ;;  %4226 = vmatpush3.bf16.msra.mxu1 %v5728_v22  ;;  %v4893_v26 = vround.rtne.f32 %v519_v16  ;;  %v498_v62 = vld [vmem:[%s5702_s9 + $0xb0] sm:$0xff] }
 0x112   : > { %v4894_v27 = vround.rtne.f32 %v520_v17  ;;  %v523_v28 = vmul.f32 %v5742_v32, %v490_v5  ;;  %v524_v29 = vmul.f32 %v5742_v32, %v491_v6  ;;  %4386 = vmatmul.mubr.bf16.vlgmr.msra.gmra.mrb[0].mxu0 %v807_v12  ;;  %4227 = vmatprep.subr.bf16.mxu1 %v5046_v4  ;;  %v581_v31 = vmax.f32 %v4891_v19, -128.0  ;;  %v5055_v5 = vld [vmem:[#allocation7 + $0x20] sm:$0xff]  }
 0x113   : > { %v582_v33 = vmax.f32 %v4892_v20, -128.0  ;;  %v4895_v34 = vround.rtne.f32 %v521_v24  ;;  %v4896_v35 = vround.rtne.f32 %v522_v25  ;;  %4418 = vmatpush3.bf16.msra.mxu0 %v5730_v23  ;;  %4389 = vmatprep.mubr.bf16.mxu0 %v1899_v15  ;;  %v5781_v22 = vmax.f32 %v4893_v26, -128.0  ;;  %v5050_v12 = vld [vmem:[#allocation7 + $0x160] sm:$0xff]   ;;  %v5057_v26 = vld [vmem:[#allocation7 + $0x28] sm:$0xff]  }
 0x114   : > { %v5783_v37 = vmax.f32 %v4894_v27, -128.0  ;;  %v4897_v38 = vround.rtne.f32 %v523_v28  ;;  %v4898_v39 = vround.rtne.f32 %v524_v29  ;;  %4419 = vmatprep.subr.bf16.mxu0 %v5045_v18  ;;  %v613_v40 = vmin.f32 %v581_v31, 127.0  ;;  %v500_v28 = vld [vmem:[%s5702_s9 + $0xc0] sm:$0xff] }
 0x115   : > { %v614_v41 = vmin.f32 %v582_v33, 127.0  ;;  %v5785_v42 = vmax.f32 %v4895_v34, -128.0  ;;  %v5787_v43 = vmax.f32 %v4896_v35, -128.0  ;;  %4228 = vmatpush3.bf16.msra.mxu1 %v5046_v4  ;;  %v615_v23 = vmin.f32 %v5781_v22, 127.0  ;;  %v501_v34 = vld [vmem:[%s5702_s9 + $0xc8] sm:$0xff]  ;;  %v502_v35 = vld [vmem:[%s5702_s9 + $0xd0] sm:$0xff] }
 0x116   : > { %v616_v44 = vmin.f32 %v5783_v37, 127.0  ;;  %v5791_v45 = vmax.f32 %v4897_v38, -128.0  ;;  %v5793_v46 = vmax.f32 %v4898_v39, -128.0  ;;  %646 = vst [vmem:[#allocation2 + $0x79] sm:$0xff] %v613_v40  ;;  %4229 = vmatprep.subr.bf16.mxu1 %v5049_v21  ;;  %v809_v53 = vpack.c.bf16 %v612_v10, %v611_v9  ;;  %v5051_v38 = vld [vmem:[#allocation7 + $0x168] sm:$0xff]  }
 0x117   : > { %647 = vst [vmem:[#allocation2 + $0x81] sm:$0xff] %v614_v41  ;;  %v617_v49 = vmin.f32 %v5785_v42, 127.0  ;;  %v618_v50 = vmin.f32 %v5787_v43, 127.0  ;;  %4420 = vmatpush3.bf16.msra.mxu0 %v5045_v18  ;;  %648 = vst [vmem:[#allocation2 + $0x91] sm:$0xff] %v615_v23  ;;  %v525_v56 = vmul.f32 %v5742_v32, %v492_v36  ;;  %v526_v59 = vmul.f32 %v5742_v32, %v493_v47  ;;  %v503_v36 = vld [vmem:[%s5702_s9 + $0xd8] sm:$0xff] }
 0x118   : > { %649 = vst [vmem:[#allocation2 + $0x99] sm:$0xff] %v616_v44  ;;  %v619_v54 = vmin.f32 %v5791_v45, 127.0  ;;  %v620_v55 = vmin.f32 %v5793_v46, 127.0  ;;  %4198 = vmatmul.mubr.bf16.gmra.mrb[4].mxu1 %v1899_v15  ;;  %4421 = vmatprep.subr.bf16.mxu0 %v5047_v30  ;;  %v527_v60 = vmul.f32 %v5742_v32, %v494_v48  ;;  %v1901_v63 = vpack.c.bf16 %v614_v41, %v613_v40 }
 0x119   : > { %650 = vst [vmem:[#allocation2 + $0xa9] sm:$0xff] %v617_v49  ;;  %651 = vst [vmem:[#allocation2 + $0xb1] sm:$0xff] %v618_v50  ;;  %4201 = vmatprep.mubr.bf16.mxu1 %v809_v53  ;;  %4230 = vmatpush3.bf16.msra.mxu1 %v5049_v21  ;;  %v4899_v0 = vround.rtne.f32 %v525_v56  ;;  %v528_v2 = vmul.f32 %v5742_v32, %v495_v52  ;;  %v4900_v4 = vround.rtne.f32 %v526_v59  ;;  %v5053_v52 = vld [vmem:[#allocation7 + $0x170] sm:$0xff]  }
 0x11a   : > { %652 = vst [vmem:[#allocation2 + $0xc1] sm:$0xff] %v619_v54  ;;  %653 = vst [vmem:[#allocation2 + $0xc9] sm:$0xff] %v620_v55  ;;  %4390 = vmatmul.mubr.bf16.gmra.mrb[4].mxu0 %v809_v53  ;;  %4231 = vmatprep.subr.bf16.mxu1 %v5052_v51  ;;  %v4901_v6 = vround.rtne.f32 %v527_v60  ;;  %v529_v7 = vmul.f32 %v5742_v32, %v496_v57  ;;  %v530_v10 = vmul.f32 %v5742_v32, %v497_v61 }
 0x11b   : > { %4422 = vmatpush3.bf16.msra.mxu0 %v5047_v30  ;;  %4393 = vmatprep.mubr.bf16.mxu0 %v1901_v63  ;;  %v5827_v8 = vmax.f32 %v4899_v0, -128.0  ;;  %v4902_v9 = vround.rtne.f32 %v528_v2  ;;  %v531_v11 = vmul.f32 %v5742_v32, %v498_v62  ;;  %v5831_v13 = vmax.f32 %v4900_v4, -128.0  ;;  %v5061_v62 = vld [vmem:[#allocation7 + $0x38] sm:$0xff]  }
 0x11c   : > { %4423 = vmatprep.subr.bf16.mxu0 %v5048_v58  ;;  %v5833_v14 = vmax.f32 %v4901_v6, -128.0  ;;  %v4903_v15 = vround.rtne.f32 %v529_v7  ;;  %v532_v16 = vmul.f32 %v5742_v32, %v499_v3  ;;  %v4904_v19 = vround.rtne.f32 %v530_v10 }
 0x11d   : > { %4232 = vmatpush3.bf16.msra.mxu1 %v5052_v51  ;;  %v621_v17 = vmin.f32 %v5827_v8, 127.0  ;;  %v5837_v18 = vmax.f32 %v4902_v9, -128.0  ;;  %v4905_v20 = vround.rtne.f32 %v531_v11  ;;  %v622_v21 = vmin.f32 %v5831_v13, 127.0  ;;  %v5054_v9 = vld [vmem:[#allocation7 + $0x178] sm:$0xff]   ;;  %v5058_v8 = vld [vmem:[#allocation7 + $0x188] sm:$0xff]  }
 0x11e   : > { %4233 = vmatprep.subr.bf16.mxu1 %v5055_v5  ;;  %v623_v24 = vmin.f32 %v5833_v14, 127.0  ;;  %v5841_v25 = vmax.f32 %v4903_v15, -128.0  ;;  %v4906_v27 = vround.rtne.f32 %v532_v16  ;;  %v811_v29 = vpack.c.bf16 %v616_v44, %v615_v23  ;;  %v5059_v44 = vld [vmem:[#allocation7 + $0x30] sm:$0xff]   ;;  %v507_v16 = vld [vmem:[%s5702_s9 + $0xf8] sm:$0xff] }
 0x11f   : > { %4424 = vmatpush3.bf16.msra.mxu0 %v5048_v58  ;;  %654 = vst [vmem:[#allocation2 + $0xd9] sm:$0xff] %v621_v17  ;;  %v624_v30 = vmin.f32 %v5837_v18, 127.0  ;;  %v5851_v31 = vmax.f32 %v4904_v19, -128.0  ;;  %v5853_v33 = vmax.f32 %v4905_v20, -128.0  ;;  %655 = vst [vmem:[#allocation2 + $0xe1] sm:$0xff] %v622_v21  ;;  %v1903_v39 = vpack.c.bf16 %v618_v50, %v617_v49  ;;  %v504_v49 = vld [vmem:[%s5702_s9 + $0xe0] sm:$0xff] }
 0x120   : > { %4202 = vmatmul.mubr.bf16.gmra.mrb[8].mxu1 %v1901_v63  ;;  %4425 = vmatprep.subr.bf16.mxu0 %v5050_v12  ;;  %656 = vst [vmem:[#allocation2 + $0xf1] sm:$0xff] %v623_v24  ;;  %v625_v22 = vmin.f32 %v5841_v25, 127.0  ;;  %v5863_v37 = vmax.f32 %v4906_v27, -128.0  ;;  %v533_v23 = vmul.f32 %v5742_v32, %v500_v28  ;;  %v534_v43 = vmul.f32 %v5742_v32, %v501_v34  ;;  %v505_v50 = vld [vmem:[%s5702_s9 + $0xe8] sm:$0xff]  ;;  %v2171_v63 = vld [vmem:[#allocation2 + $0x22] sm:$0xff]  ;;  %v5064_v25 = vld [vmem:[#allocation7 + $0x1a0] sm:$0xff]  }
 0x121   : > { %4205 = vmatprep.mubr.bf16.mxu1 %v811_v29  ;;  %657 = vst [vmem:[#allocation2 + $0xf9] sm:$0xff] %v624_v30  ;;  %4234 = vmatpush3.bf16.msra.mxu1 %v5055_v5  ;;  %v626_v40 = vmin.f32 %v5851_v31, 127.0  ;;  %v627_v41 = vmin.f32 %v5853_v33, 127.0  ;;  %v535_v47 = vmul.f32 %v5742_v32, %v502_v35  ;;  %v536_v48 = vmul.f32 %v5742_v32, %v503_v36  ;;  %v2170_v58 = vld [vmem:[#allocation2 + $0x1a] sm:$0xff]  ;;  %v2172_v27 = vld [vmem:[#allocation2 + $0x32] sm:$0xff]  ;;  %v2174_v36 = vld [vmem:[#allocation2 + $0x4a] sm:$0xff] }
 0x122   : > { %4394 = vmatmul.mubr.bf16.gmra.mrb[8].mxu0 %v811_v29  ;;  %658 = vst [vmem:[#allocation2 + $0x109] sm:$0xff] %v625_v22  ;;  %4235 = vmatprep.subr.bf16.mxu1 %v5057_v26  ;;  %v628_v42 = vmin.f32 %v5863_v37, 127.0  ;;  %v4907_v51 = vround.rtne.f32 %v533_v23  ;;  %v4908_v53 = vround.rtne.f32 %v534_v43  ;;  %v537_v60 = vmul.f32 %v5742_v32, %v504_v49  ;;  %v506_v15 = vld [vmem:[%s5702_s9 + $0xf0] sm:$0xff]  ;;  %v2180_v31 = vld [vmem:[#allocation2 + $0x92] sm:$0xff]  ;;  %v2182_v37 = vld [vmem:[#allocation2 + $0xaa] sm:$0xff] }
 0x123   : > { %4426 = vmatpush3.bf16.msra.mxu0 %v5050_v12  ;;  %4397 = vmatprep.mubr.bf16.mxu0 %v1903_v39  ;;  %659 = vst [vmem:[#allocation2 + $0x111] sm:$0xff] %v626_v40  ;;  %660 = vst [vmem:[#allocation2 + $0x121] sm:$0xff] %v627_v41  ;;  %v4909_v56 = vround.rtne.f32 %v535_v47  ;;  %v4910_v57 = vround.rtne.f32 %v536_v48  ;;  %v538_v61 = vmul.f32 %v5742_v32, %v505_v50  ;;  %v2173_v28 = vld [vmem:[#allocation2 + $0x3a] sm:$0xff]  ;;  %v2179_v50 = vld [vmem:[#allocation2 + $0x82] sm:$0xff] }
 0x124   : > { %4427 = vmatprep.subr.bf16.mxu0 %v5051_v38  ;;  %661 = vst [vmem:[#allocation2 + $0x129] sm:$0xff] %v628_v42  ;;  %v5888_v59 = vmax.f32 %v4907_v51, -128.0  ;;  %v5892_v0 = vmax.f32 %v4908_v53, -128.0  ;;  %v813_v4 = vpack.c.bf16 %v620_v55, %v619_v54  ;;  %v4911_v6 = vround.rtne.f32 %v537_v60  ;;  %v5920_v55 = vld [vmem:[#allocation7 + $0x80] sm:$0xff]   ;;  %v2178_v49 = vld [vmem:[#allocation2 + $0x7a] sm:$0xff]  ;;  %v5062_v53 = vld [vmem:[#allocation7 + $0x198] sm:$0xff]  }
 0x125   : > { %4236 = vmatpush3.bf16.msra.mxu1 %v5057_v26  ;;  %v5894_v2 = vmax.f32 %v4909_v56, -128.0  ;;  %v5896_v3 = vmax.f32 %v4910_v57, -128.0  ;;  %v4912_v7 = vround.rtne.f32 %v538_v61  ;;  %v5906_v45 = vpack.c.bf16 %v2171_v63, %v2170_v58  ;;  %v5056_v26 = vld [vmem:[#allocation7 + $0x180] sm:$0xff]   ;;  %v2181_v33 = vld [vmem:[#allocation2 + $0x9a] sm:$0xff]  ;;  %v2184_v60 = vld [vmem:[#allocation2 + $0xc2] sm:$0xff] }
 0x126   : > { %4237 = vmatprep.subr.bf16.mxu1 %v5059_v44  ;;  %v629_v5 = vmin.f32 %v5888_v59, 127.0  ;;  %v630_v10 = vmin.f32 %v5892_v0, 127.0  ;;  %v5910_v46 = vmax.f32 %v4911_v6, -128.0  ;;  %v539_v29 = vmul.f32 %v5742_v32, %v506_v15  ;;  %v5066_v57 = vld [vmem:[#allocation7 + $0x1a8] sm:$0xff]   ;;  %v5068_v59 = vld [vmem:[#allocation7 + $0x1b0] sm:$0xff]   ;;  %v2185_v61 = vld [vmem:[#allocation2 + $0xca] sm:$0xff] }
 0x127   : > { %4428 = vmatpush3.bf16.msra.mxu0 %v5051_v38  ;;  %v631_v11 = vmin.f32 %v5894_v2, 127.0  ;;  %v632_v12 = vmin.f32 %v5896_v3, 127.0  ;;  %v5912_v54 = vmax.f32 %v4912_v7, -128.0  ;;  %v540_v34 = vmul.f32 %v5742_v32, %v507_v16  ;;  %v2175_v38 = vld [vmem:[#allocation2 + $0x52] sm:$0xff]  ;;  %v2186_v2 = vld [vmem:[#allocation2 + $0xda] sm:$0xff]  ;;  %v2187_v3 = vld [vmem:[#allocation2 + $0xe2] sm:$0xff] }
 0x128   : > { %4206 = vmatmul.mubr.bf16.gmra.mrb[12].mxu1 %v1903_v39  ;;  %4429 = vmatprep.subr.bf16.mxu0 %v5053_v52  ;;  %662 = vst [vmem:[#allocation2 + $0x139] sm:$0xff] %v629_v5  ;;  %663 = vst [vmem:[#allocation2 + $0x141] sm:$0xff] %v630_v10  ;;  %v633_v19 = vmin.f32 %v5910_v46, 127.0  ;;  %v814_v35 = vpack.c.bf16 %v622_v21, %v621_v17  ;;  %v815_v39 = vpack.c.bf16 %v624_v30, %v623_v24  ;;  %v5060_v24 = vld [vmem:[#allocation7 + $0x190] sm:$0xff]   ;;  %v711_v7 = vld [vmem:[#allocation2 + $0x18] sm:$0xff] }
 0x129   : > { %4209 = vmatprep.mubr.bf16.mxu1 %v813_v4  ;;  %4238 = vmatpush3.bf16.msra.mxu1 %v5059_v44  ;;  %664 = vst [vmem:[#allocation2 + $0x151] sm:$0xff] %v631_v11  ;;  %665 = vst [vmem:[#allocation2 + $0x159] sm:$0xff] %v632_v12  ;;  %v634_v20 = vmin.f32 %v5912_v54, 127.0  ;;  %v4913_v23 = vround.rtne.f32 %v539_v29  ;;  %v4914_v43 = vround.rtne.f32 %v540_v34  ;;  %v5942_v32 = vpack.c.bf16 %v2173_v28, %v2172_v27  ;;  %v2176_v30 = vld [vmem:[#allocation2 + $0x62] sm:$0xff]  ;;  %v2177_v44 = vld [vmem:[#allocation2 + $0x6a] sm:$0xff] }
 0x12a   : > { %4398 = vmatmul.mubr.bf16.gmra.mrb[12].mxu0 %v813_v4  ;;  %4239 = vmatprep.subr.bf16.mxu1 %v5061_v62  ;;  %666 = vst [vmem:[#allocation2 + $0x169] sm:$0xff] %v633_v19  ;;  %v5944_v13 = vpack.c.bf16 %v2175_v38, %v2174_v36  ;;  %v816_v48 = vpack.c.bf16 %v626_v40, %v625_v22  ;;  %v2183_v40 = vld [vmem:[#allocation2 + $0xb2] sm:$0xff]  ;;  %v2189_v54 = vld [vmem:[#allocation2 + $0xfa] sm:$0xff]  ;;  %v2190_v16 = vld [vmem:[#allocation2 + $0x10a] sm:$0xff] }
 0x12b   : > { %4430 = vmatpush3.bf16.msra.mxu0 %v5053_v52  ;;  %4433 = vmatprep.mubr.bf16.mxu0 %v5906_v45  ;;  %667 = vst [vmem:[#allocation2 + $0x171] sm:$0xff] %v634_v20  ;;  %v603_v17 = vmax.f32 %v4913_v23, -128.0  ;;  %v604_v21 = vmax.f32 %v4914_v43, -128.0  ;;  %v817_v51 = vpack.c.bf16 %v628_v42, %v627_v41  ;;  %v5958_v52 = vpack.c.bf16 %v2177_v44, %v2176_v30  ;;  %v2188_v46 = vld [vmem:[#allocation2 + $0xf2] sm:$0xff]  ;;  %v5067_v29 = vld [vmem:[#allocation7 + $0x90] sm:$0xff]   ;;  %v715_v34 = vld [vmem:[#allocation2 + $0x48] sm:$0xff] }
 0x12c   : > { %4431 = vmatprep.subr.bf16.mxu0 %v5054_v9  ;;  %v5960_v56 = vpack.c.bf16 %v2179_v50, %v2178_v49  ;;  %v818_v22 = vpack.c.bf16 %v630_v10, %v629_v5  ;;  %v819_v41 = vpack.c.bf16 %v632_v12, %v631_v11  ;;  %v5972_v42 = vpack.c.bf16 %v2181_v33, %v2180_v31  ;;  %v5070_v5 = vld [vmem:[#allocation7 + $0x1b8] sm:$0xff]   ;;  %v713_v10 = vld [vmem:[#allocation2 + $0x30] sm:$0xff]  ;;  %v714_v11 = vld [vmem:[#allocation2 + $0x38] sm:$0xff] }
 0x12d   : > { %4240 = vmatpush3.bf16.msra.mxu1 %v5061_v62  ;;  %v635_v14 = vmin.f32 %v603_v17, 127.0  ;;  %v636_v18 = vmin.f32 %v604_v21, 127.0  ;;  %v5974_v58 = vpack.c.bf16 %v2183_v40, %v2182_v37  ;;  %v5101_v62 = vld [vmem:[#allocation2] sm:$0xff]  ;;  %v820_v0 = vpack.c.bf16 %v634_v20, %v633_v19  ;;  %v5991_v12 = vld [vmem:[#allocation7 + $0x1c0] sm:$0xff]   ;;  %v5065_v20 = vld [vmem:[#allocation7 + $0x88] sm:$0xff]  }
 0x12e   : > { %4273 = vmatprep.subr.bf16.mxu1 %v5920_v55  ;;  %v5978_v63 = vpack.c.bf16 %v5101_v62, %v5101_v62  ;;  %v5984_v4 = vpack.c.bf16 %v2185_v61, %v2184_v60  ;;  %v5986_v6 = vpack.c.bf16 %v2187_v3, %v2186_v2  ;;  %v2191_v19 = vld [vmem:[#allocation2 + $0x112] sm:$0xff]  ;;  %v5998_v27 = vpack.c.bf16 %v2189_v54, %v2188_v46  ;;  %v717_v36 = vld [vmem:[#allocation2 + $0x60] sm:$0xff]  ;;  %v718_v38 = vld [vmem:[#allocation2 + $0x68] sm:$0xff] }
 0x12f   : > { %4432 = vmatpush3.bf16.msra.mxu0 %v5054_v9  ;;  %668 = vst [vmem:[#allocation2 + $0x181] sm:$0xff] %v635_v14  ;;  %669 = vst [vmem:[#allocation2 + $0x189] sm:$0xff] %v636_v18  ;;  %v5948_v47 = vpack.c.bf16 %v636_v18, %v635_v14  ;;  %v712_v9 = vld [vmem:[#allocation2 + $0x20] sm:$0xff]  ;;  %v6003_v28 = vpack.c.bf16 %v2191_v19, %v2190_v16  ;;  %v2193_v23 = vld [vmem:[#allocation2 + $0x12a] sm:$0xff]  ;;  %v6009_v21 = vpack.c.bf16 %v718_v38, %v717_v36 }
 0x130   : > { %4210 = vmatmul.mubr.bf16.gmra.mrb[16].mxu1 %v814_v35  ;;  %4465 = vmatprep.subr.bf16.mxu0 %v5056_v26  ;;  %v5993_v15 = vpack.c.bf16 %v712_v9, %v711_v7  ;;  %v716_v35 = vld [vmem:[#allocation2 + $0x50] sm:$0xff]  ;;  %v2195_v17 = vld [vmem:[#allocation2 + $0x142] sm:$0xff]  ;;  %v719_v30 = vld [vmem:[#allocation2 + $0x78] sm:$0xff] }
 0x131   : > { %4213 = vmatprep.mubr.bf16.mxu1 %v815_v39  ;;  %v2192_v39 = vld [vmem:[#allocation2 + $0x122] sm:$0xff]  ;;  %v6007_v43 = vpack.c.bf16 %v716_v35, %v715_v34  ;;  %v722_v49 = vld [vmem:[#allocation2 + $0x98] sm:$0xff]  ;;  %v6037_v9 = vld [vmem:[#allocation7 + $0xc0] sm:$0xff]  }
 0x132   : > { %4434 = vmatmul.mubr.bf16.vlgmr.msra.gmra.mrb[0].mxu0 %v5942_v32  ;;  %v6012_v14 = vpack.c.bf16 %v2193_v23, %v2192_v39  ;;  %v720_v44 = vld [vmem:[#allocation2 + $0x80] sm:$0xff]  ;;  %v2196_v50 = vld [vmem:[#allocation2 + $0x152] sm:$0xff]  ;;  %v726_v61 = vld [vmem:[#allocation2 + $0xc8] sm:$0xff] }
 0x133   : > { %4466 = vmatpush3.bf16.msra.mxu0 %v5056_v26  ;;  %4437 = vmatprep.mubr.bf16.mxu0 %v5944_v13  ;;  %v5995_v26 = vpack.c.bf16 %v714_v11, %v713_v10  ;;  %v2199_v31 = vld [vmem:[#allocation2 + $0x172] sm:$0xff]  ;;  %v725_v60 = vld [vmem:[#allocation2 + $0xc0] sm:$0xff]  ;;  %v5077_v3 = vld [vmem:[#allocation7 + $0xb8] sm:$0xff]  }
 0x134   : > { %4467 = vmatprep.subr.bf16.mxu0 %v5058_v8  ;;  %v5073_v33 = vld [vmem:[#allocation7 + $0xa8] sm:$0xff]   ;;  %v728_v11 = vld [vmem:[#allocation2 + $0xe0] sm:$0xff]  ;;  %v729_v46 = vld [vmem:[#allocation2 + $0xf0] sm:$0xff] }
 0x135   : > { %v727_v10 = vld [vmem:[#allocation2 + $0xd8] sm:$0xff]  ;;  %v732_v34 = vld [vmem:[#allocation2 + $0x110] sm:$0xff]  ;;  %v733_v35 = vld [vmem:[#allocation2 + $0x120] sm:$0xff] }
 0x136   : > { %v2200_v62 = vld [vmem:[#allocation2 + $0x182] sm:$0xff]  ;;  %v730_v54 = vld [vmem:[#allocation2 + $0xf8] sm:$0xff]  ;;  %v6040_v16 = vpack.c.bf16 %v728_v11, %v727_v10 }
 0x137   : > { %4468 = vmatpush3.bf16.msra.mxu0 %v5058_v8  ;;  %v2194_v8 = vld [vmem:[#allocation2 + $0x13a] sm:$0xff]  ;;  %v6043_v19 = vpack.c.bf16 %v730_v54, %v729_v46  ;;  %v734_v36 = vld [vmem:[#allocation2 + $0x128] sm:$0xff]  ;;  %v2784_v46 = vld [vmem:[#allocation2 + $0x51] sm:$0xff] }
 0x138   : > { %4214 = vmatmul.mubr.bf16.gmra.mrb[20].mxu1 %v816_v48  ;;  %4469 = vmatprep.subr.bf16.mxu0 %v5060_v24  ;;  %v6015_v18 = vpack.c.bf16 %v2195_v17, %v2194_v8  ;;  %v721_v48 = vld [vmem:[#allocation2 + $0x90] sm:$0xff]  ;;  %v5076_v38 = vld [vmem:[#allocation7 + $0x1d0] sm:$0xff]   ;;  %v6052_v23 = vpack.c.bf16 %v734_v36, %v733_v35  ;;  %v5078_v8 = vld [vmem:[#allocation7 + $0x1d8] sm:$0xff]  }
 0x139   : > { %4217 = vmatprep.mubr.bf16.mxu1 %v817_v51  ;;  %v2197_v51 = vld [vmem:[#allocation2 + $0x15a] sm:$0xff]  ;;  %v5093_v11 = vld [vmem:[#allocation7 + $0xf8] sm:$0xff]  }
 0x13a   : > { %4438 = vmatmul.mubr.bf16.gmra.mrb[4].mxu0 %v5958_v52  ;;  %v6024_v37 = vpack.c.bf16 %v2197_v51, %v2196_v50  ;;  %v736_v17 = vld [vmem:[#allocation2 + $0x140] sm:$0xff]  ;;  %v1256_v51 = vld [vmem:[#allocation2 + $0xa] sm:$0xff] }
 0x13b   : > { %4441 = vmatprep.mubr.bf16.mxu0 %v5960_v56  ;;  %4470 = vmatpush3.bf16.msra.mxu0 %v5060_v24  ;;  %v5071_v24 = vld [vmem:[#allocation7 + $0xa0] sm:$0xff]   ;;  %v1255_v50 = vld [vmem:[#allocation2 + $0x2] sm:$0xff]  ;;  %v2782_v10 = vld [vmem:[#allocation2 + $0x39] sm:$0xff] }
 0x13c   : > { %4471 = vmatprep.subr.bf16.mxu0 %v5062_v53  ;;  %v2785_v54 = vld [vmem:[#allocation2 + $0x61] sm:$0xff]  ;;  %v2787_v35 = vld [vmem:[#allocation2 + $0x79] sm:$0xff] }
 0x13d   : > { %v2788_v36 = vld [vmem:[#allocation2 + $0x81] sm:$0xff] }
 0x13f   : > { %4472 = vmatpush3.bf16.msra.mxu0 %v5062_v53  ;;  %v6019_v53 = vpack.c.bf16 %v720_v44, %v719_v30  ;;  %v5080_v30 = vld [vmem:[#allocation7 + $0x1e0] sm:$0xff]  }
 0x140   : > { %4218 = vmatmul.mubr.bf16.gmra.mrb[24].mxu1 %v818_v22  ;;  %4473 = vmatprep.subr.bf16.mxu0 %v5064_v25  ;;  %v6021_v22 = vpack.c.bf16 %v722_v49, %v721_v48  ;;  %v5082_v49 = vld [vmem:[#allocation7 + $0x1e8] sm:$0xff]  }
 0x141   : > { %4221 = vmatprep.mubr.bf16.mxu1 %v819_v41  ;;  %v5075_v41 = vld [vmem:[#allocation7 + $0xb0] sm:$0xff]  }
 0x142   : > { %4442 = vmatmul.mubr.bf16.gmra.mrb[8].mxu0 %v5972_v42 }
 0x143   : > { %4445 = vmatprep.mubr.bf16.mxu0 %v5974_v58  ;;  %4474 = vmatpush3.bf16.msra.mxu0 %v5064_v25  ;;  %v2198_v25 = vld [vmem:[#allocation2 + $0x16a] sm:$0xff] }
 0x144   : > { %4475 = vmatprep.subr.bf16.mxu0 %v5066_v57  ;;  %v6027_v40 = vpack.c.bf16 %v2199_v31, %v2198_v25  ;;  %v739_v25 = vld [vmem:[#allocation2 + $0x168] sm:$0xff]  ;;  %v740_v31 = vld [vmem:[#allocation2 + $0x170] sm:$0xff] }
 0x147   : > { %4476 = vmatpush3.bf16.msra.mxu0 %v5066_v57  ;;  %v723_v57 = vld [vmem:[#allocation2 + $0xa8] sm:$0xff] }
 0x148   : > { %4222 = vmatmul.mubr.bf16.gmra.mrb[28].mxu1 %v820_v0  ;;  %4477 = vmatprep.subr.bf16.mxu0 %v5068_v59  ;;  %v2201_v0 = vld [vmem:[#allocation2 + $0x18a] sm:$0xff] }
 0x149   : > { %4241 = vmatprep.mubr.bf16.mxu1 %v5978_v63  ;;  %v2217_v7 = vpack.c.bf16 %v2201_v0, %v2200_v62  ;;  %v5083_v62 = vld [vmem:[#allocation7 + $0xd0] sm:$0xff]   ;;  %v5085_v0 = vld [vmem:[#allocation7 + $0xd8] sm:$0xff]  }
 0x14a   : > { %4446 = vmatmul.mubr.bf16.gmra.mrb[12].mxu0 %v5984_v4 }
 0x14b   : > { %4449 = vmatprep.mubr.bf16.mxu0 %v5986_v6  ;;  %4478 = vmatpush3.bf16.msra.mxu0 %v5068_v59  ;;  %v724_v59 = vld [vmem:[#allocation2 + $0xb0] sm:$0xff] }
 0x14c   : > { %4479 = vmatprep.subr.bf16.mxu0 %v5070_v5  ;;  %v6031_v2 = vpack.c.bf16 %v724_v59, %v723_v57  ;;  %v6066_v57 = vpack.c.bf16 %v740_v31, %v739_v25  ;;  %v5086_v59 = vld [vmem:[#allocation7 + $0x1f8] sm:$0xff]   ;;  %v2795_v25 = vld [vmem:[#allocation2 + $0xd9] sm:$0xff] }
 0x14d   : > { %v2796_v31 = vld [vmem:[#allocation2 + $0xe1] sm:$0xff] }
 0x14f   : > { %4480 = vmatpush3.bf16.msra.mxu0 %v5070_v5  ;;  %v6033_v5 = vpack.c.bf16 %v726_v61, %v725_v60  ;;  %v5088_v60 = vld [vmem:[#allocation7 + $0x200] sm:$0xff]   ;;  %v5081_v61 = vld [vmem:[#allocation7 + $0xc8] sm:$0xff]  }
 0x150   : > { %4242 = vmatmul.mubr.bf16.vlgmr.msra.gmra.mrb[0].mxu1 %v5993_v15  ;;  %4513 = vmatprep.subr.bf16.mxu0 %v5991_v12 }
 0x151   : > { %4245 = vmatprep.mubr.bf16.mxu1 %v5995_v26  ;;  %4274 = vmatpush3.bf16.msra.mxu1 %v5920_v55  ;;  %v5069_v55 = vld [vmem:[#allocation7 + $0x98] sm:$0xff]  }
 0x152   : > { %4450 = vmatmul.mubr.bf16.gmra.mrb[16].mxu0 %v5998_v27  ;;  %4275 = vmatprep.subr.bf16.mxu1 %v5065_v20 }
 0x153   : > { %4453 = vmatprep.mubr.bf16.mxu0 %v6003_v28 }
 0x155   : > { %4276 = vmatpush3.bf16.msra.mxu1 %v5065_v20  ;;  %v5074_v20 = vld [vmem:[#allocation7 + $0x1c8] sm:$0xff]  }
 0x156   : > { %4277 = vmatprep.subr.bf16.mxu1 %v5067_v29 }
 0x158   : > { %4246 = vmatmul.mubr.bf16.gmra.mrb[4].mxu1 %v6007_v43 }
 0x159   : > { %4249 = vmatprep.mubr.bf16.mxu1 %v6009_v21  ;;  %4278 = vmatpush3.bf16.msra.mxu1 %v5067_v29  ;;  %v731_v29 = vld [vmem:[#allocation2 + $0x108] sm:$0xff] }
 0x15a   : > { %4454 = vmatmul.mubr.bf16.gmra.mrb[20].mxu0 %v6012_v14  ;;  %4279 = vmatprep.subr.bf16.mxu1 %v5069_v55  ;;  %v6050_v39 = vpack.c.bf16 %v732_v34, %v731_v29  ;;  %v6089_v29 = vld [vmem:[#allocation7 + $0x100] sm:$0xff]   ;;  %v5090_v34 = vld [vmem:[#allocation7 + $0x208] sm:$0xff]  }
 0x15b   : > { %4457 = vmatprep.mubr.bf16.mxu0 %v6015_v18 }
 0x15d   : > { %4280 = vmatpush3.bf16.msra.mxu1 %v5069_v55  ;;  %v737_v55 = vld [vmem:[#allocation2 + $0x150] sm:$0xff] }
 0x15e   : > { %4281 = vmatprep.subr.bf16.mxu1 %v5071_v24 }
 0x160   : > { %4250 = vmatmul.mubr.bf16.gmra.mrb[8].mxu1 %v6019_v53 }
 0x161   : > { %4253 = vmatprep.mubr.bf16.mxu1 %v6021_v22  ;;  %4282 = vmatpush3.bf16.msra.mxu1 %v5071_v24  ;;  %v738_v24 = vld [vmem:[#allocation2 + $0x158] sm:$0xff] }
 0x162   : > { %4458 = vmatmul.mubr.bf16.gmra.mrb[24].mxu0 %v6024_v37  ;;  %4283 = vmatprep.subr.bf16.mxu1 %v5073_v33  ;;  %v6060_v48 = vpack.c.bf16 %v738_v24, %v737_v55  ;;  %v2791_v55 = vld [vmem:[#allocation2 + $0xa9] sm:$0xff]  ;;  %v2792_v24 = vld [vmem:[#allocation2 + $0xb1] sm:$0xff] }
 0x163   : > { %4461 = vmatprep.mubr.bf16.mxu0 %v6027_v40 }
 0x165   : > { %4284 = vmatpush3.bf16.msra.mxu1 %v5073_v33  ;;  %v5084_v33 = vld [vmem:[#allocation7 + $0x1f0] sm:$0xff]  }
 0x166   : > { %4285 = vmatprep.subr.bf16.mxu1 %v5075_v41 }
 0x168   : > { %4254 = vmatmul.mubr.bf16.gmra.mrb[12].mxu1 %v6031_v2 }
 0x169   : > { %4257 = vmatprep.mubr.bf16.mxu1 %v6033_v5  ;;  %4286 = vmatpush3.bf16.msra.mxu1 %v5075_v41  ;;  %v1287_v41 = vpack.c.bf16 %v1256_v51, %v1255_v50  ;;  %v2818_v50 = vpack.c.bf16 %v2792_v24, %v2791_v55  ;;  %v3098_v55 = vld [vmem:[#allocation2 + $0xc2] sm:$0xff]  ;;  %v3099_v24 = vld [vmem:[#allocation2 + $0xca] sm:$0xff] }
 0x16a   : > { %4462 = vmatmul.mubr.bf16.gmra.mrb[28].mxu0 %v2217_v7  ;;  %4287 = vmatprep.subr.bf16.mxu1 %v5077_v3  ;;  %v5089_v7 = vld [vmem:[#allocation7 + $0xe8] sm:$0xff]  }
 0x16b   : > { %4481 = vmatprep.mubr.bf16.mxu0 %v5995_v26 }
 0x16d   : > { %4288 = vmatpush3.bf16.msra.mxu1 %v5077_v3  ;;  %v2505_v3 = vld [vmem:[#allocation2 + $0x188] sm:$0xff] }
 0x16e   : > { %4321 = vmatprep.subr.bf16.mxu1 %v6037_v9 }
 0x170   : > { %4258 = vmatmul.mubr.bf16.gmra.mrb[16].mxu1 %v6040_v16 }
 0x171   : > { %4261 = vmatprep.mubr.bf16.mxu1 %v6043_v19 }
 0x172   : > { %4482 = vmatmul.mubr.bf16.vlgmr.msra.gmra.mrb[0].mxu0 %v6007_v43 }
 0x173   : > { %4514 = vmatpush3.bf16.msra.mxu0 %v5991_v12  ;;  %4485 = vmatprep.mubr.bf16.mxu0 %v6009_v21  ;;  %v735_v12 = vld [vmem:[#allocation2 + $0x138] sm:$0xff] }
 0x174   : > { %4515 = vmatprep.subr.bf16.mxu0 %v5074_v20  ;;  %v6058_v44 = vpack.c.bf16 %v736_v17, %v735_v12  ;;  %v2816_v12 = vpack.c.bf16 %v2788_v36, %v2787_v35  ;;  %v3091_v35 = vld [vmem:[#allocation2 + $0x6a] sm:$0xff] }
 0x177   : > { %4516 = vmatpush3.bf16.msra.mxu0 %v5074_v20  ;;  %v2786_v20 = vld [vmem:[#allocation2 + $0x69] sm:$0xff] }
 0x178   : > { %4262 = vmatmul.mubr.bf16.gmra.mrb[20].mxu1 %v6050_v39  ;;  %4517 = vmatprep.subr.bf16.mxu0 %v5076_v38 }
 0x179   : > { %4265 = vmatprep.mubr.bf16.mxu1 %v6052_v23 }
 0x17a   : > { %4486 = vmatmul.mubr.bf16.gmra.mrb[4].mxu0 %v6019_v53 }
 0x17b   : > { %4489 = vmatprep.mubr.bf16.mxu0 %v6021_v22  ;;  %4518 = vmatpush3.bf16.msra.mxu0 %v5076_v38  ;;  %v2789_v38 = vld [vmem:[#allocation2 + $0x91] sm:$0xff] }
 0x17c   : > { %4519 = vmatprep.subr.bf16.mxu0 %v5078_v8 }
 0x17f   : > { %4520 = vmatpush3.bf16.msra.mxu0 %v5078_v8  ;;  %v2790_v8 = vld [vmem:[#allocation2 + $0x99] sm:$0xff] }
 0x180   : > { %4266 = vmatmul.mubr.bf16.gmra.mrb[24].mxu1 %v6058_v44  ;;  %4521 = vmatprep.subr.bf16.mxu0 %v5080_v30  ;;  %v2817_v17 = vpack.c.bf16 %v2790_v8, %v2789_v38  ;;  %v3094_v8 = vld [vmem:[#allocation2 + $0x92] sm:$0xff] }
 0x181   : > { %4269 = vmatprep.mubr.bf16.mxu1 %v6060_v48 }
 0x182   : > { %4490 = vmatmul.mubr.bf16.gmra.mrb[8].mxu0 %v6031_v2 }
 0x183   : > { %4493 = vmatprep.mubr.bf16.mxu0 %v6033_v5  ;;  %4522 = vmatpush3.bf16.msra.mxu0 %v5080_v30  ;;  %v2793_v30 = vld [vmem:[#allocation2 + $0xc1] sm:$0xff] }
 0x184   : > { %4523 = vmatprep.subr.bf16.mxu0 %v5082_v49 }
 0x187   : > { %4524 = vmatpush3.bf16.msra.mxu0 %v5082_v49  ;;  %v2794_v49 = vld [vmem:[#allocation2 + $0xc9] sm:$0xff] }
 0x188   : > { %4270 = vmatmul.mubr.bf16.gmra.mrb[28].mxu1 %v6066_v57  ;;  %4525 = vmatprep.subr.bf16.mxu0 %v5084_v33  ;;  %v2819_v51 = vpack.c.bf16 %v2794_v49, %v2793_v30  ;;  %v3124_v30 = vpack.c.bf16 %v3099_v24, %v3098_v55  ;;  %v3100_v49 = vld [vmem:[#allocation2 + $0xda] sm:$0xff] }
 0x189   : > { %4289 = vmatprep.mubr.bf16.mxu1 %v1287_v41  ;;  %v2798_v41 = vld [vmem:[#allocation2 + $0xf9] sm:$0xff] }
 0x18a   : > { %4494 = vmatmul.mubr.bf16.gmra.mrb[12].mxu0 %v6040_v16 }
 0x18b   : > { %4497 = vmatprep.mubr.bf16.mxu0 %v6043_v19  ;;  %4526 = vmatpush3.bf16.msra.mxu0 %v5084_v33  ;;  %v2797_v33 = vld [vmem:[#allocation2 + $0xf1] sm:$0xff] }
 0x18c   : > { %4527 = vmatprep.subr.bf16.mxu0 %v5086_v59 }
 0x18f   : > { %4528 = vmatpush3.bf16.msra.mxu0 %v5086_v59  ;;  %v6099_v59 = vpack.c.bf16 %v2796_v31, %v2795_v25  ;;  %v3106_v25 = vld [vmem:[#allocation2 + $0x122] sm:$0xff]  ;;  %v3107_v31 = vld [vmem:[#allocation2 + $0x12a] sm:$0xff] }
 0x190   : > { %4290 = vmatmul.mubr.bf16.vlgmr.msra.gmra.mrb[0].mxu1 %v5906_v45  ;;  %4561 = vmatprep.subr.bf16.mxu0 %v5088_v60  ;;  %v5087_v45 = vld [vmem:[#allocation7 + $0xe0] sm:$0xff]  }
 0x191   : > { %4293 = vmatprep.mubr.bf16.mxu1 %v5942_v32  ;;  %4322 = vmatpush3.bf16.msra.mxu1 %v6037_v9  ;;  %v2504_v32 = vld [vmem:[#allocation2 + $0x180] sm:$0xff] }
 0x192   : > { %4498 = vmatmul.mubr.bf16.gmra.mrb[16].mxu0 %v6050_v39  ;;  %4323 = vmatprep.subr.bf16.mxu1 %v5081_v61  ;;  %v6082_v9 = vpack.c.bf16 %v2505_v3, %v2504_v32  ;;  %v2803_v32 = vld [vmem:[#allocation2 + $0x139] sm:$0xff]  ;;  %v2804_v3 = vld [vmem:[#allocation2 + $0x141] sm:$0xff] }
 0x193   : > { %4501 = vmatprep.mubr.bf16.mxu0 %v6052_v23 }
 0x195   : > { %4324 = vmatpush3.bf16.msra.mxu1 %v5081_v61  ;;  %v2800_v61 = vld [vmem:[#allocation2 + $0x111] sm:$0xff] }
 0x196   : > { %4325 = vmatprep.subr.bf16.mxu1 %v5083_v62 }
 0x198   : > { %4294 = vmatmul.mubr.bf16.gmra.mrb[4].mxu1 %v5944_v13  ;;  %v5091_v13 = vld [vmem:[#allocation7 + $0xf0] sm:$0xff]  }
 0x199   : > { %4297 = vmatprep.mubr.bf16.mxu1 %v5958_v52  ;;  %4326 = vmatpush3.bf16.msra.mxu1 %v5083_v62  ;;  %v2781_v52 = vld [vmem:[#allocation2 + $0x31] sm:$0xff]  ;;  %v2801_v62 = vld [vmem:[#allocation2 + $0x121] sm:$0xff] }
 0x19a   : > { %4502 = vmatmul.mubr.bf16.gmra.mrb[20].mxu0 %v6058_v44  ;;  %4327 = vmatprep.subr.bf16.mxu1 %v5085_v0 }
 0x19b   : > { %4505 = vmatprep.mubr.bf16.mxu0 %v6060_v48 }
 0x19d   : > { %4328 = vmatpush3.bf16.msra.mxu1 %v5085_v0  ;;  %v2802_v0 = vld [vmem:[#allocation2 + $0x129] sm:$0xff] }
 0x19e   : > { %4329 = vmatprep.subr.bf16.mxu1 %v5087_v45 }
 0x1a0   : > { %4298 = vmatmul.mubr.bf16.gmra.mrb[8].mxu1 %v5960_v56  ;;  %v2813_v56 = vpack.c.bf16 %v2782_v10, %v2781_v52  ;;  %v5105_v10 = vld [vmem:[#allocation7 + $0x118] sm:$0xff]  }
 0x1a1   : > { %4301 = vmatprep.mubr.bf16.mxu1 %v5972_v42  ;;  %4330 = vmatpush3.bf16.msra.mxu1 %v5087_v45  ;;  %v2783_v42 = vld [vmem:[#allocation2 + $0x49] sm:$0xff]  ;;  %v5103_v45 = vld [vmem:[#allocation7 + $0x108] sm:$0xff]  }
 0x1a2   : > { %4506 = vmatmul.mubr.bf16.gmra.mrb[24].mxu0 %v6066_v57  ;;  %4331 = vmatprep.subr.bf16.mxu1 %v5089_v7 }
 0x1a3   : > { %4509 = vmatprep.mubr.bf16.mxu0 %v6082_v9 }
 0x1a5   : > { %4332 = vmatpush3.bf16.msra.mxu1 %v5089_v7  ;;  %v2805_v7 = vld [vmem:[#allocation2 + $0x151] sm:$0xff] }
 0x1a6   : > { %4333 = vmatprep.subr.bf16.mxu1 %v5091_v13 }
 0x1a8   : > { %4302 = vmatmul.mubr.bf16.gmra.mrb[12].mxu1 %v5974_v58  ;;  %v2814_v58 = vpack.c.bf16 %v2784_v46, %v2783_v42  ;;  %v5106_v42 = vld [vmem:[#allocation7 + $0x120] sm:$0xff]   ;;  %v2811_v46 = vld [vmem:[#allocation2 + $0x199] sm:$0xff] }
 0x1a9   : > { %4305 = vmatprep.mubr.bf16.mxu1 %v5984_v4  ;;  %4334 = vmatpush3.bf16.msra.mxu1 %v5091_v13  ;;  %v2815_v4 = vpack.c.bf16 %v2786_v20, %v2785_v54  ;;  %v2806_v13 = vld [vmem:[#allocation2 + $0x159] sm:$0xff]  ;;  %v2812_v54 = vld [vmem:[#allocation2 + $0x1a1] sm:$0xff] }
 0x1aa   : > { %4510 = vmatmul.mubr.bf16.gmra.mrb[28].mxu0 %v5978_v63  ;;  %4335 = vmatprep.subr.bf16.mxu1 %v5093_v11  ;;  %v5092_v63 = vld [vmem:[#allocation7 + $0x210] sm:$0xff]   ;;  %v6119_v52 = vpack.c.bf16 %v2806_v13, %v2805_v7  ;;  %v2828_v20 = vpack.c.bf16 %v2812_v54, %v2811_v46 }
 0x1ab   : > { %4529 = vmatprep.mubr.bf16.mxu0 %v2813_v56  ;;  %v2808_v56 = vld [vmem:[#allocation2 + $0x171] sm:$0xff]  ;;  %v3116_v7 = vld [vmem:[#allocation2 + $0x19a] sm:$0xff]  ;;  %v3117_v13 = vld [vmem:[#allocation2 + $0x1a2] sm:$0xff] }
 0x1ad   : > { %4336 = vmatpush3.bf16.msra.mxu1 %v5093_v11  ;;  %v2807_v11 = vld [vmem:[#allocation2 + $0x169] sm:$0xff] }
 0x1ae   : > { %4609 = vmatprep.subr.bf16.mxu1 %v6089_v29 }
 0x1b0   : > { %4306 = vmatmul.mubr.bf16.gmra.mrb[16].mxu1 %v5986_v6  ;;  %v5094_v6 = vld [vmem:[#allocation7 + $0x218] sm:$0xff]  }
 0x1b1   : > { %4309 = vmatprep.mubr.bf16.mxu1 %v5998_v27  ;;  %v5095_v27 = vld [vmem:[#allocation7 + $0x220] sm:$0xff]  }
 0x1b2   : > { %4530 = vmatmul.mubr.bf16.vlgmr.msra.gmra.mrb[0].mxu0 %v2814_v58  ;;  %v3087_v58 = vld [vmem:[#allocation2 + $0x3a] sm:$0xff] }
 0x1b3   : > { %4562 = vmatpush3.bf16.msra.mxu0 %v5088_v60  ;;  %4533 = vmatprep.mubr.bf16.mxu0 %v2815_v4  ;;  %v2799_v60 = vld [vmem:[#allocation2 + $0x109] sm:$0xff] }
 0x1b4   : > { %4563 = vmatprep.subr.bf16.mxu0 %v5090_v34  ;;  %v3088_v4 = vld [vmem:[#allocation2 + $0x4a] sm:$0xff] }
 0x1b7   : > { %4564 = vmatpush3.bf16.msra.mxu0 %v5090_v34  ;;  %v5108_v34 = vld [vmem:[#allocation7 + $0x130] sm:$0xff]  }
 0x1b8   : > { %4310 = vmatmul.mubr.bf16.gmra.mrb[20].mxu1 %v6003_v28  ;;  %4565 = vmatprep.subr.bf16.mxu0 %v5092_v63  ;;  %v5096_v28 = vld [vmem:[#allocation7 + $0x228] sm:$0xff]  }
 0x1b9   : > { %4313 = vmatprep.mubr.bf16.mxu1 %v6012_v14  ;;  %v5097_v14 = vld [vmem:[#allocation7 + $0x230] sm:$0xff]  }
 0x1ba   : > { %4534 = vmatmul.mubr.bf16.gmra.mrb[4].mxu0 %v2816_v12  ;;  %v3095_v12 = vld [vmem:[#allocation2 + $0x9a] sm:$0xff] }
 0x1bb   : > { %4537 = vmatprep.mubr.bf16.mxu0 %v2817_v17  ;;  %4566 = vmatpush3.bf16.msra.mxu0 %v5092_v63  ;;  %v3090_v63 = vld [vmem:[#allocation2 + $0x62] sm:$0xff]  ;;  %v3122_v17 = vpack.c.bf16 %v3095_v12, %v3094_v8 }
 0x1bc   : > { %4567 = vmatprep.subr.bf16.mxu0 %v5094_v6  ;;  %v3120_v38 = vpack.c.bf16 %v3091_v35, %v3090_v63 }
 0x1bf   : > { %4568 = vmatpush3.bf16.msra.mxu0 %v5094_v6 }
 0x1c0   : > { %4314 = vmatmul.mubr.bf16.gmra.mrb[24].mxu1 %v6015_v18  ;;  %4569 = vmatprep.subr.bf16.mxu0 %v5095_v27  ;;  %v5098_v18 = vld [vmem:[#allocation7 + $0x238] sm:$0xff]  }
 0x1c1   : > { %4317 = vmatprep.mubr.bf16.mxu1 %v6024_v37  ;;  %v6102_v37 = vpack.c.bf16 %v2798_v41, %v2797_v33  ;;  %v3128_v33 = vpack.c.bf16 %v3107_v31, %v3106_v25  ;;  %v3108_v41 = vld [vmem:[#allocation2 + $0x13a] sm:$0xff] }
 0x1c2   : > { %4538 = vmatmul.mubr.bf16.gmra.mrb[8].mxu0 %v2818_v50  ;;  %v3102_v50 = vld [vmem:[#allocation2 + $0xf2] sm:$0xff]  ;;  %v3472_v25 = vld [vmem:[%s5717_s1 + $0x8] sm:$0xff] }
 0x1c3   : > { %4541 = vmatprep.mubr.bf16.mxu0 %v2819_v51  ;;  %4570 = vmatpush3.bf16.msra.mxu0 %v5095_v27  ;;  %v3096_v27 = vld [vmem:[#allocation2 + $0xaa] sm:$0xff] }
 0x1c4   : > { %4571 = vmatprep.subr.bf16.mxu0 %v5096_v28 }
 0x1c7   : > { %4572 = vmatpush3.bf16.msra.mxu0 %v5096_v28  ;;  %v3103_v28 = vld [vmem:[#allocation2 + $0xfa] sm:$0xff] }
 0x1c8   : > { %4318 = vmatmul.mubr.bf16.gmra.mrb[28].mxu1 %v6027_v40  ;;  %4573 = vmatprep.subr.bf16.mxu0 %v5097_v14  ;;  %v6107_v40 = vpack.c.bf16 %v2800_v61, %v2799_v60  ;;  %v3126_v51 = vpack.c.bf16 %v3103_v28, %v3102_v50  ;;  %v3111_v60 = vld [vmem:[#allocation2 + $0x15a] sm:$0xff] }
 0x1c9   : > { %4337 = vmatprep.mubr.bf16.mxu1 %v5993_v15  ;;  %v6111_v15 = vpack.c.bf16 %v2802_v0, %v2801_v62  ;;  %v3112_v62 = vld [vmem:[#allocation2 + $0x16a] sm:$0xff]  ;;  %v3114_v0 = vld [vmem:[#allocation2 + $0x182] sm:$0xff] }
 0x1ca   : > { %4542 = vmatmul.mubr.bf16.gmra.mrb[12].mxu0 %v6099_v59 }
 0x1cb   : > { %4545 = vmatprep.mubr.bf16.mxu0 %v6102_v37  ;;  %4574 = vmatpush3.bf16.msra.mxu0 %v5097_v14  ;;  %v3104_v14 = vld [vmem:[#allocation2 + $0x10a] sm:$0xff] }
 0x1cc   : > { %4575 = vmatprep.subr.bf16.mxu0 %v5098_v18 }
 0x1cf   : > { %4576 = vmatpush3.bf16.msra.mxu0 %v5098_v18  ;;  %v3110_v18 = vld [vmem:[#allocation2 + $0x152] sm:$0xff] }
 0x1d0   : > { %4338 = vmatmul.mubr.bf16.vlgmr.msra.gmra.mrb[0].mxu1 %v5995_v26  ;;  %v5104_v26 = vld [vmem:[#allocation7 + $0x110] sm:$0xff]   ;;  %v3130_v61 = vpack.c.bf16 %v3111_v60, %v3110_v18 }
 0x1d1   : > { %4341 = vmatprep.mubr.bf16.mxu1 %v6007_v43  ;;  %4617 = vmatpush3.bf16.msra.mxu1 %v6089_v29  ;;  %v6116_v43 = vpack.c.bf16 %v2804_v3, %v2803_v32  ;;  %v3086_v29 = vld [vmem:[#allocation2 + $0x32] sm:$0xff]  ;;  %v1895_v3 = vld [vmem:[#allocation2 + $0x181] sm:$0xff] }
 0x1d2   : > { %4546 = vmatmul.mubr.bf16.gmra.mrb[16].mxu0 %v6107_v40  ;;  %4610 = vmatprep.subr.bf16.mxu1 %v5103_v45 }
 0x1d3   : > { %4549 = vmatprep.mubr.bf16.mxu0 %v6111_v15 }
 0x1d5   : > { %4618 = vmatpush3.bf16.msra.mxu1 %v5103_v45  ;;  %v3115_v45 = vld [vmem:[#allocation2 + $0x18a] sm:$0xff] }
 0x1d6   : > { %4611 = vmatprep.subr.bf16.mxu1 %v5104_v26  ;;  %v3132_v32 = vpack.c.bf16 %v3115_v45, %v3114_v0  ;;  %v3477_v45 = vld [vmem:[%s5717_s1 + $0x30] sm:$0xff] }
 0x1d8   : > { %4342 = vmatmul.mubr.bf16.gmra.mrb[4].mxu1 %v6009_v21  ;;  %v6124_v21 = vpack.c.bf16 %v2808_v56, %v2807_v11 }
 0x1d9   : > { %4345 = vmatprep.mubr.bf16.mxu1 %v6019_v53  ;;  %4619 = vmatpush3.bf16.msra.mxu1 %v5104_v26  ;;  %v5107_v53 = vld [vmem:[#allocation7 + $0x128] sm:$0xff]  }
 0x1da   : > { %4550 = vmatmul.mubr.bf16.gmra.mrb[20].mxu0 %v6116_v43  ;;  %4612 = vmatprep.subr.bf16.mxu1 %v5105_v10 }
 0x1db   : > { %4553 = vmatprep.mubr.bf16.mxu0 %v6119_v52 }
 0x1dd   : > { %4620 = vmatpush3.bf16.msra.mxu1 %v5105_v10 }
 0x1de   : > { %4613 = vmatprep.subr.bf16.mxu1 %v5106_v42 }
 0x1e0   : > { %4346 = vmatmul.mubr.bf16.gmra.mrb[8].mxu1 %v6021_v22  ;;  %v3118_v22 = vpack.c.bf16 %v3087_v58, %v3086_v29 }
 0x1e1   : > { %4349 = vmatprep.mubr.bf16.mxu1 %v6031_v2  ;;  %4621 = vmatpush3.bf16.msra.mxu1 %v5106_v42  ;;  %v5109_v2 = vld [vmem:[#allocation7 + $0x138] sm:$0xff]  }
 0x1e2   : > { %4554 = vmatmul.mubr.bf16.gmra.mrb[24].mxu0 %v6124_v21  ;;  %4614 = vmatprep.subr.bf16.mxu1 %v5107_v53 }
 0x1e3   : > { %4557 = vmatprep.mubr.bf16.mxu0 %v5948_v47  ;;  %v3089_v47 = vld [vmem:[#allocation2 + $0x52] sm:$0xff] }
 0x1e4   : > { %v3119_v36 = vpack.c.bf16 %v3089_v47, %v3088_v4  ;;  %v3391_v47 = vld [vmem:[#allocation9] sm:$0x1] }
 0x1e5   : > { %4622 = vmatpush3.bf16.msra.mxu1 %v5107_v53 }
 0x1e6   : > { %4615 = vmatprep.subr.bf16.mxu1 %v5108_v34 }
 0x1e8   : > { %4350 = vmatmul.mubr.bf16.gmra.mrb[12].mxu1 %v6033_v5  ;;  %v3092_v5 = vld [vmem:[#allocation2 + $0x7a] sm:$0xff] }
 0x1e9   : > { %4353 = vmatprep.mubr.bf16.mxu1 %v6040_v16  ;;  %4623 = vmatpush3.bf16.msra.mxu1 %v5108_v34  ;;  %v3093_v16 = vld [vmem:[#allocation2 + $0x82] sm:$0xff]  ;;  %v3395_v34 = vlaneseq }
 0x1ea   : > { %4558 = vmatmul.mubr.bf16.gmra.mrb[28].mxu0 %v2828_v20  ;;  %4616 = vmatprep.subr.bf16.mxu1 %v5109_v2  ;;  %v3121_v6 = vpack.c.bf16 %v3093_v16, %v3092_v5 }
 0x1eb   : > { %4577 = vmatprep.mubr.bf16.mxu0 %v3118_v22 }
 0x1ed   : > { %4624 = vmatpush3.bf16.msra.mxu1 %v5109_v2  ;;  %v3396_v2 = vshrl.u32 %v3395_v34, 7 }
 0x1f0   : > { %4354 = vmatmul.mubr.bf16.gmra.mrb[16].mxu1 %v6043_v19  ;;  %v3097_v19 = vld [vmem:[#allocation2 + $0xb2] sm:$0xff] }
 0x1f1   : > { %4357 = vmatprep.mubr.bf16.mxu1 %v6050_v39  ;;  %v3123_v39 = vpack.c.bf16 %v3097_v19, %v3096_v27 }
 0x1f2   : > { %4578 = vmatmul.mubr.bf16.vlgmr.msra.gmra.mrb[0].mxu0 %v3119_v36  ;;  %v3393_v36 = vmul.f32 %v3391_v47, %v408_v1 }
 0x1f3   : > { %4581 = vmatprep.mubr.bf16.mxu0 %v3120_v38  ;;  %v3397_v38 = vsub.s32 0, %v3396_v2 }
 0x1f5   : > { %v6163_v5 = vrot.slane %v3393_v36, %v3397_v38 }
 0x1f8   : > { %4358 = vmatmul.mubr.bf16.gmra.mrb[20].mxu1 %v6052_v23  ;;  %v3101_v23 = vld [vmem:[#allocation2 + $0xe2] sm:$0xff] }
 0x1f9   : > { %4361 = vmatprep.mubr.bf16.mxu1 %v6058_v44  ;;  %v3125_v44 = vpack.c.bf16 %v3101_v23, %v3100_v49  ;;  %v3471_v23 = vld [vmem:[%s5717_s1] sm:$0xff] }
 0x1fa   : > { %4582 = vmatmul.mubr.bf16.gmra.mrb[4].mxu0 %v3121_v6  ;;  %v6165_v6 = vld [vmem:[#allocation10] ss:$0 sm:$0xff] }
 0x1fb   : > { %4585 = vmatprep.mubr.bf16.mxu0 %v3122_v17 }
 0x200   : > { %4362 = vmatmul.mubr.bf16.gmra.mrb[24].mxu1 %v6060_v48  ;;  %v3105_v48 = vld [vmem:[#allocation2 + $0x112] sm:$0xff] }
 0x201   : > { %4365 = vmatprep.mubr.bf16.mxu1 %v6066_v57  ;;  %v3127_v57 = vpack.c.bf16 %v3105_v48, %v3104_v14 }
 0x202   : > { %4586 = vmatmul.mubr.bf16.gmra.mrb[8].mxu0 %v3123_v39  ;;  %v3473_v39 = vld [vmem:[%s5717_s1 + $0x10] sm:$0xff] }
 0x203   : > { %4589 = vmatprep.mubr.bf16.mxu0 %v3124_v30 }
 0x208   : > { %4366 = vmatmul.mubr.bf16.gmra.mrb[28].mxu1 %v6082_v9  ;;  %v3109_v9 = vld [vmem:[#allocation2 + $0x142] sm:$0xff] }
 0x209   : > { %4401 = vmatprep.mubr.bf16.mxu1 %v6099_v59  ;;  %v3129_v59 = vpack.c.bf16 %v3109_v9, %v3108_v41 }
 0x20a   : > { %4590 = vmatmul.mubr.bf16.gmra.mrb[12].mxu0 %v3125_v44  ;;  %v3474_v44 = vld [vmem:[%s5717_s1 + $0x18] sm:$0xff] }
 0x20b   : > { %4593 = vmatprep.mubr.bf16.mxu0 %v3126_v51 }
 0x210   : > { %4402 = vmatmul.mubr.bf16.vlgmr.msra.gmra.mrb[16].mxu1 %v6102_v37  ;;  %v3113_v37 = vld [vmem:[#allocation2 + $0x172] sm:$0xff] }
 0x211   : > { %4405 = vmatprep.mubr.bf16.mxu1 %v6107_v40  ;;  %v3131_v40 = vpack.c.bf16 %v3113_v37, %v3112_v62 }
 0x212   : > { %4594 = vmatmul.mubr.bf16.gmra.mrb[16].mxu0 %v3127_v57 }
 0x213   : > { %4597 = vmatprep.mubr.bf16.mxu0 %v3128_v33 }
 0x218   : > { %4406 = vmatmul.mubr.bf16.gmra.mrb[20].mxu1 %v6111_v15  ;;  %v1896_v15 = vld [vmem:[#allocation2 + $0x189] sm:$0xff] }
 0x219   : > { %4409 = vmatprep.mubr.bf16.mxu1 %v6116_v43  ;;  %v1912_v26 = vpack.c.bf16 %v1896_v15, %v1895_v3  ;;  %v3133_v43 = vpack.c.bf16 %v3117_v13, %v3116_v7  ;;  %v3475_v15 = vld [vmem:[%s5717_s1 + $0x20] sm:$0xff] }
 0x21a   : > { %4598 = vmatmul.mubr.bf16.gmra.mrb[20].mxu0 %v3129_v59 }
 0x21b   : > { %4601 = vmatprep.mubr.bf16.mxu0 %v3130_v61 }
 0x220   : > { %4410 = vmatmul.mubr.bf16.gmra.mrb[24].mxu1 %v6119_v52 }
 0x221   : > { %4413 = vmatprep.mubr.bf16.mxu1 %v6124_v21 }
 0x222   : > { %4602 = vmatmul.mubr.bf16.gmra.mrb[24].mxu0 %v3131_v40 }
 0x223   : > { %4605 = vmatprep.mubr.bf16.mxu0 %v3132_v32 }
 0x228   : > { %4414 = vmatmul.mubr.bf16.gmra.mrb[28].mxu1 %v1912_v26  ;;  %v3478_v26 = vld [vmem:[%s5717_s1 + $0x38] sm:$0xff] }
 0x22a   : > { %4606 = vmatmul.mubr.bf16.gmra.mrb[28].mxu0 %v3133_v43 }
 0x2a3   : > { %v4339_v10 = vpop.f32.mrb[0].mxu1 }
 0x2a4   : > { %v1706_v11 = vpop.f32.mrb[1].mxu1 }
 0x2a5   : > { %v4340_v56 = vpop.f32.mrb[2].mxu1 }
 0x2a6   : > { %v1709_v42 = vpop.f32.mrb[3].mxu1 }
 0x2ab   : > { %v4343_v52 = vpop.f32.mrb[4].mxu1 }
 0x2ac   : > { %v1722_v53 = vpop.f32.mrb[5].mxu1 }
 0x2ad   : > { %v4344_v46 = vpop.f32.mrb[6].mxu1 }
 0x2ae   : > { %v1725_v21 = vpop.f32.mrb[7].mxu1 }
 0x2b3   : > { %v6145_v54 = vpop.f32.mrb[8].mxu1 }
 0x2b4   : > { %v6147_v20 = vpop.f32.mrb[9].mxu1 }
 0x2b5   : > { %v6149_v29 = vpop.f32.mrb[10].mxu1 }
 0x2b6   : > { %v6151_v58 = vpop.f32.mrb[11].mxu1 }
 0x2bb   : > { %v6153_v22 = vpop.f32.mrb[12].mxu1 }
 0x2bc   : > { %v6155_v4 = vpop.f32.mrb[13].mxu1 }
 0x2bd   : > { %v6157_v63 = vpop.f32.mrb[14].mxu1 }
 0x2be   : > { %v6159_v35 = vpop.f32.mrb[15].mxu1 }
 0x2c5   : > { %v4579_v16 = vpop.f32.mrb[0].mxu0 }
 0x2c6   : > { %v4625_v8 = vadd.f32 %v4579_v16, %v4339_v10  ;;  %v3232_v12 = vpop.f32.mrb[1].mxu0 }
 0x2c7   : > { %v4626_v17 = vadd.f32 %v3232_v12, %v1706_v11  ;;  %v4580_v27 = vpop.f32.mrb[2].mxu0  ;;  %v3481_v12 = vld [vmem:[%s5717_s1 + $0x50] sm:$0xff] }
 0x2c8   : > { %v3402_v19 = vmul.f32 %v4625_v8, %v6163_v5  ;;  %v4627_v55 = vadd.f32 %v4580_v27, %v4340_v56  ;;  %v3235_v24 = vpop.f32.mrb[3].mxu0  ;;  %v3476_v56 = vld [vmem:[%s5717_s1 + $0x28] sm:$0xff]  ;;  %v3479_v27 = vld [vmem:[%s5717_s1 + $0x40] sm:$0xff] }
 0x2c9   : > { %v3400_v1 = vmul.f32 %v4626_v17, %v6163_v5  ;;  %v4628_v30 = vadd.f32 %v3235_v24, %v1709_v42 }
 0x2ca   : > { %v3441_v49 = vadd.f32 %v6165_v6, %v3402_v19  ;;  %v3403_v50 = vmul.f32 %v4627_v55, %v6163_v5  ;;  %v3482_v55 = vld [vmem:[%s5717_s1 + $0x58] sm:$0xff] }
 0x2cb   : > { %v3439_v28 = vadd.f32 %v6165_v6, %v3400_v1  ;;  %v3401_v51 = vmul.f32 %v4628_v30, %v6163_v5  ;;  %v3480_v30 = vld [vmem:[%s5717_s1 + $0x48] sm:$0xff] }
 0x2cc   : > { %v3505_v14 = vadd.f32 %v3473_v39, %v3441_v49  ;;  %v3442_v48 = vadd.f32 %v6165_v6, %v3403_v50 }
 0x2cd   : > { %v3503_v31 = vadd.f32 %v3471_v23, %v3439_v28  ;;  %v3440_v57 = vadd.f32 %v6165_v6, %v3401_v51  ;;  %v4583_v33 = vpop.f32.mrb[4].mxu0 }
 0x2ce   : > { %3619 = vst [vmem:[%s6180_s10 + $0x10] sm:$0xff] %v3505_v14  ;;  %v3506_v41 = vadd.f32 %v3474_v44, %v3442_v48  ;;  %v4629_v9 = vadd.f32 %v4583_v33, %v4343_v52  ;;  %v3248_v18 = vpop.f32.mrb[5].mxu0  ;;  %v3485_v33 = vld [vmem:[%s5717_s1 + $0x70] sm:$0xff] }
 0x2cf   : > { %3617 = vst [vmem:[%s6180_s10] sm:$0xff] %v3503_v31  ;;  %v3504_v60 = vadd.f32 %v3472_v25, %v3440_v57  ;;  %v4630_v59 = vadd.f32 %v3248_v18, %v1722_v53  ;;  %v4584_v61 = vpop.f32.mrb[6].mxu0 }
 0x2d0   : > { %3620 = vst [vmem:[%s6180_s10 + $0x18] sm:$0xff] %v3506_v41  ;;  %v3406_v62 = vmul.f32 %v4629_v9, %v6163_v5  ;;  %v4631_v37 = vadd.f32 %v4584_v61, %v4344_v46  ;;  %v3251_v0 = vpop.f32.mrb[7].mxu0 }
 0x2d1   : > { %3618 = vst [vmem:[%s6180_s10 + $0x8] sm:$0xff] %v3504_v60  ;;  %v3404_v40 = vmul.f32 %v4630_v59, %v6163_v5  ;;  %v4632_v32 = vadd.f32 %v3251_v0, %v1725_v21  ;;  %v3486_v59 = vld [vmem:[%s5717_s1 + $0x78] sm:$0xff]  ;;  %v3484_v0 = vld [vmem:[%s5717_s1 + $0x68] sm:$0xff] }
 0x2d2   : > { %v3445_v3 = vadd.f32 %v6165_v6, %v3406_v62  ;;  %v3407_v7 = vmul.f32 %v4631_v37, %v6163_v5 }
 0x2d3   : > { %v3443_v13 = vadd.f32 %v6165_v6, %v3404_v40  ;;  %v3405_v43 = vmul.f32 %v4632_v32, %v6163_v5 }
 0x2d4   : > { %v3509_v10 = vadd.f32 %v3477_v45, %v3445_v3  ;;  %v3446_v11 = vadd.f32 %v6165_v6, %v3407_v7 }
 0x2d5   : > { %v3507_v42 = vadd.f32 %v3475_v15, %v3443_v13  ;;  %v3444_v52 = vadd.f32 %v6165_v6, %v3405_v43  ;;  %v4587_v53 = vpop.f32.mrb[8].mxu0 }
 0x2d6   : > { %3623 = vst [vmem:[%s6180_s10 + $0x30] sm:$0xff] %v3509_v10  ;;  %v3510_v46 = vadd.f32 %v3478_v26, %v3446_v11  ;;  %v4633_v21 = vadd.f32 %v4587_v53, %v6145_v54  ;;  %v3264_v34 = vpop.f32.mrb[9].mxu0  ;;  %5359 = vmaxabs.init.f32.vacc0 %v3505_v14, %v3509_v10  ;;  %v3489_v53 = vld [vmem:[%s5717_s1 + $0x90] sm:$0xff] }
 0x2d7   : > { %3621 = vst [vmem:[%s6180_s10 + $0x20] sm:$0xff] %v3507_v42  ;;  %v3508_v2 = vadd.f32 %v3476_v56, %v3444_v52  ;;  %v4634_v47 = vadd.f32 %v3264_v34, %v6147_v20  ;;  %v4588_v36 = vpop.f32.mrb[10].mxu0 }
 0x2d8   : > { %3624 = vst [vmem:[%s6180_s10 + $0x38] sm:$0xff] %v3510_v46  ;;  %v3410_v38 = vmul.f32 %v4633_v21, %v6163_v5  ;;  %v4635_v16 = vadd.f32 %v4588_v36, %v6149_v29  ;;  %v3267_v8 = vpop.f32.mrb[11].mxu0  ;;  %5360 = vmaxabs.f32.vacc0 %v3503_v31, %v3507_v42 }
 0x2d9   : > { %3622 = vst [vmem:[%s6180_s10 + $0x28] sm:$0xff] %v3508_v2  ;;  %v3408_v54 = vmul.f32 %v4634_v47, %v6163_v5  ;;  %v4636_v17 = vadd.f32 %v3267_v8, %v6151_v58 }
 0x2da   : > { %5361 = vmaxabs.f32.vacc0 %v3506_v41, %v3510_v46  ;;  %v3449_v20 = vadd.f32 %v6165_v6, %v3410_v38  ;;  %v3411_v19 = vmul.f32 %v4635_v16, %v6163_v5  ;;  %v3490_v38 = vld [vmem:[%s5717_s1 + $0x98] sm:$0xff] }
 0x2db   : > { %v3447_v29 = vadd.f32 %v6165_v6, %v3408_v54  ;;  %v3409_v24 = vmul.f32 %v4636_v17, %v6163_v5  ;;  %v3488_v17 = vld [vmem:[%s5717_s1 + $0x88] sm:$0xff] }
 0x2dc   : > { %5362 = vmaxabs.f32.vacc0 %v3504_v60, %v3508_v2  ;;  %v3513_v39 = vadd.f32 %v3481_v12, %v3449_v20  ;;  %v3450_v1 = vadd.f32 %v6165_v6, %v3411_v19  ;;  %v3487_v2 = vld [vmem:[%s5717_s1 + $0x80] sm:$0xff] }
 0x2dd   : > { %v3511_v49 = vadd.f32 %v3479_v27, %v3447_v29  ;;  %v3448_v58 = vadd.f32 %v6165_v6, %v3409_v24  ;;  %v4591_v23 = vpop.f32.mrb[12].mxu0 }
 0x2de   : > { %3627 = vst [vmem:[%s6180_s10 + $0x50] sm:$0xff] %v3513_v39  ;;  %v3514_v50 = vadd.f32 %v3482_v55, %v3450_v1  ;;  %v4637_v28 = vadd.f32 %v4591_v23, %v6153_v22  ;;  %v3280_v44 = vpop.f32.mrb[13].mxu0 }
 0x2df   : > { %3625 = vst [vmem:[%s6180_s10 + $0x40] sm:$0xff] %v3511_v49  ;;  %v3512_v51 = vadd.f32 %v3480_v30, %v3448_v58  ;;  %v4638_v14 = vadd.f32 %v3280_v44, %v6155_v4  ;;  %v4592_v48 = vpop.f32.mrb[14].mxu0  ;;  %5363 = vmaxabs.f32.vacc0 %v3513_v39, %v3511_v49  ;;  %v3483_v4 = vld [vmem:[%s5717_s1 + $0x60] sm:$0xff] }
 0x2e0   : > { %3628 = vst [vmem:[%s6180_s10 + $0x58] sm:$0xff] %v3514_v50  ;;  %v3414_v25 = vmul.f32 %v4637_v28, %v6163_v5  ;;  %v4639_v31 = vadd.f32 %v4592_v48, %v6157_v63  ;;  %v3283_v57 = vpop.f32.mrb[15].mxu0 }
 0x2e1   : > { %3626 = vst [vmem:[%s6180_s10 + $0x48] sm:$0xff] %v3512_v51  ;;  %v3412_v22 = vmul.f32 %v4638_v14, %v6163_v5  ;;  %v4640_v41 = vadd.f32 %v3283_v57, %v6159_v35  ;;  %5364 = vmaxabs.f32.vacc0 %v3514_v50, %v3512_v51  ;;  %v3493_v51 = vld [vmem:[%s5717_s1 + $0xb0] sm:$0xff] }
 0x2e2   : > { %v3453_v9 = vadd.f32 %v6165_v6, %v3414_v25  ;;  %v3415_v18 = vmul.f32 %v4639_v31, %v6163_v5  ;;  %v3491_v31 = vld [vmem:[%s5717_s1 + $0xa0] sm:$0xff] }
 0x2e3   : > { %v3451_v60 = vadd.f32 %v6165_v6, %v3412_v22  ;;  %v3413_v63 = vmul.f32 %v4640_v41, %v6163_v5  ;;  %v4403_v61 = vpop.f32.mrb[16].mxu1  ;;  %v3494_v22 = vld [vmem:[%s5717_s1 + $0xb8] sm:$0xff] }
 0x2e4   : > { %v3517_v62 = vadd.f32 %v3485_v33, %v3453_v9  ;;  %v3454_v37 = vadd.f32 %v6165_v6, %v3415_v18  ;;  %v2075_v35 = vpop.f32.mrb[17].mxu1 }
 0x2e5   : > { %v3515_v45 = vadd.f32 %v3483_v4, %v3451_v60  ;;  %v3452_v40 = vadd.f32 %v6165_v6, %v3413_v63  ;;  %v4595_v32 = vpop.f32.mrb[16].mxu0  ;;  %v4404_v3 = vpop.f32.mrb[18].mxu1  ;;  %v3492_v60 = vld [vmem:[%s5717_s1 + $0xa8] sm:$0xff] }
 0x2e6   : > { %3631 = vst [vmem:[%s6180_s10 + $0x70] sm:$0xff] %v3517_v62  ;;  %v3518_v15 = vadd.f32 %v3486_v59, %v3454_v37  ;;  %v4641_v7 = vadd.f32 %v4595_v32, %v4403_v61  ;;  %v3296_v13 = vpop.f32.mrb[17].mxu0  ;;  %v2078_v26 = vpop.f32.mrb[19].mxu1 }
 0x2e7   : > { %3629 = vst [vmem:[%s6180_s10 + $0x60] sm:$0xff] %v3515_v45  ;;  %v3516_v43 = vadd.f32 %v3484_v0, %v3452_v40  ;;  %v4642_v10 = vadd.f32 %v3296_v13, %v2075_v35  ;;  %v4596_v11 = vpop.f32.mrb[18].mxu0  ;;  %5365 = vmaxabs.f32.vacc0 %v3517_v62, %v3515_v45 }
 0x2e8   : > { %3632 = vst [vmem:[%s6180_s10 + $0x78] sm:$0xff] %v3518_v15  ;;  %v3418_v56 = vmul.f32 %v4641_v7, %v6163_v5  ;;  %v4643_v42 = vadd.f32 %v4596_v11, %v4404_v3  ;;  %v3299_v52 = vpop.f32.mrb[19].mxu0 }
 0x2e9   : > { %3630 = vst [vmem:[%s6180_s10 + $0x68] sm:$0xff] %v3516_v43  ;;  %v3416_v46 = vmul.f32 %v4642_v10, %v6163_v5  ;;  %v4644_v21 = vadd.f32 %v3299_v52, %v2078_v26  ;;  %5366 = vmaxabs.f32.vacc0 %v3518_v15, %v3516_v43  ;;  %v3497_v43 = vld [vmem:[%s5717_s1 + $0xd0] sm:$0xff] }
 0x2ea   : > { %v3457_v34 = vadd.f32 %v6165_v6, %v3418_v56  ;;  %v3419_v47 = vmul.f32 %v4643_v42, %v6163_v5  ;;  %v3495_v42 = vld [vmem:[%s5717_s1 + $0xc0] sm:$0xff] }
 0x2eb   : > { %v3455_v36 = vadd.f32 %v6165_v6, %v3416_v46  ;;  %v3417_v16 = vmul.f32 %v4644_v21, %v6163_v5  ;;  %v4407_v8 = vpop.f32.mrb[20].mxu1  ;;  %v3498_v46 = vld [vmem:[%s5717_s1 + $0xd8] sm:$0xff] }
 0x2ec   : > { %v3521_v12 = vadd.f32 %v3489_v53, %v3457_v34  ;;  %v3458_v54 = vadd.f32 %v6165_v6, %v3419_v47  ;;  %v2091_v20 = vpop.f32.mrb[21].mxu1 }
 0x2ed   : > { %v3519_v27 = vadd.f32 %v3487_v2, %v3455_v36  ;;  %v3456_v19 = vadd.f32 %v6165_v6, %v3417_v16  ;;  %v4599_v29 = vpop.f32.mrb[20].mxu0  ;;  %v4408_v55 = vpop.f32.mrb[22].mxu1  ;;  %v3496_v36 = vld [vmem:[%s5717_s1 + $0xc8] sm:$0xff] }
 0x2ee   : > { %3635 = vst [vmem:[%s6180_s10 + $0x90] sm:$0xff] %v3521_v12  ;;  %v3522_v24 = vadd.f32 %v3490_v38, %v3458_v54  ;;  %v4645_v39 = vadd.f32 %v4599_v29, %v4407_v8  ;;  %v3312_v1 = vpop.f32.mrb[21].mxu0  ;;  %v2094_v30 = vpop.f32.mrb[23].mxu1 }
 0x2ef   : > { %3633 = vst [vmem:[%s6180_s10 + $0x80] sm:$0xff] %v3519_v27  ;;  %v3520_v49 = vadd.f32 %v3488_v17, %v3456_v19  ;;  %v4646_v58 = vadd.f32 %v3312_v1, %v2091_v20  ;;  %v4600_v23 = vpop.f32.mrb[22].mxu0  ;;  %5367 = vmaxabs.f32.vacc0 %v3521_v12, %v3519_v27 }
 0x2f0   : > { %3636 = vst [vmem:[%s6180_s10 + $0x98] sm:$0xff] %v3522_v24  ;;  %v3422_v50 = vmul.f32 %v4645_v39, %v6163_v5  ;;  %v4647_v28 = vadd.f32 %v4600_v23, %v4408_v55  ;;  %v3315_v44 = vpop.f32.mrb[23].mxu0 }
 0x2f1   : > { %3634 = vst [vmem:[%s6180_s10 + $0x88] sm:$0xff] %v3520_v49  ;;  %v3420_v14 = vmul.f32 %v4646_v58, %v6163_v5  ;;  %v4648_v48 = vadd.f32 %v3315_v44, %v2094_v30  ;;  %5368 = vmaxabs.f32.vacc0 %v3522_v24, %v3520_v49  ;;  %v3501_v49 = vld [vmem:[%s5717_s1 + $0xf0] sm:$0xff] }
 0x2f2   : > { %v3461_v25 = vadd.f32 %v6165_v6, %v3422_v50  ;;  %v3423_v57 = vmul.f32 %v4647_v28, %v6163_v5  ;;  %v3499_v28 = vld [vmem:[%s5717_s1 + $0xe0] sm:$0xff] }
 0x2f3   : > { %v3459_v33 = vadd.f32 %v6165_v6, %v3420_v14  ;;  %v3421_v41 = vmul.f32 %v4648_v48, %v6163_v5  ;;  %v4411_v9 = vpop.f32.mrb[24].mxu1  ;;  %v3502_v14 = vld [vmem:[%s5717_s1 + $0xf8] sm:$0xff] }
 0x2f4   : > { %v3525_v4 = vadd.f32 %v3493_v51, %v3461_v25  ;;  %v3462_v18 = vadd.f32 %v6165_v6, %v3423_v57  ;;  %v2107_v59 = vpop.f32.mrb[25].mxu1  ;;  %v3500_v57 = vld [vmem:[%s5717_s1 + $0xe8] sm:$0xff] }
 0x2f5   : > { %v3523_v63 = vadd.f32 %v3491_v31, %v3459_v33  ;;  %v3460_v61 = vadd.f32 %v6165_v6, %v3421_v41  ;;  %v4603_v62 = vpop.f32.mrb[24].mxu0  ;;  %v4412_v37 = vpop.f32.mrb[26].mxu1 }
 0x2f6   : > { %3639 = vst [vmem:[%s6180_s10 + $0xb0] sm:$0xff] %v3525_v4  ;;  %v3526_v0 = vadd.f32 %v3494_v22, %v3462_v18  ;;  %v4649_v35 = vadd.f32 %v4603_v62, %v4411_v9  ;;  %v3328_v45 = vpop.f32.mrb[25].mxu0  ;;  %v2110_v40 = vpop.f32.mrb[27].mxu1 }
 0x2f7   : > { %3637 = vst [vmem:[%s6180_s10 + $0xa0] sm:$0xff] %v3523_v63  ;;  %v3524_v32 = vadd.f32 %v3492_v60, %v3460_v61  ;;  %v4650_v3 = vadd.f32 %v3328_v45, %v2107_v59  ;;  %v4604_v15 = vpop.f32.mrb[26].mxu0  ;;  %5369 = vmaxabs.f32.vacc0 %v3525_v4, %v3523_v63  ;;  %v5110_v4 = vld [vmem:[#allocation2] sm:$0xff] }
 0x2f8   : > { %3640 = vst [vmem:[%s6180_s10 + $0xb8] sm:$0xff] %v3526_v0  ;;  %v3426_v7 = vmul.f32 %v4649_v35, %v6163_v5  ;;  %v4651_v13 = vadd.f32 %v4604_v15, %v4412_v37  ;;  %v3331_v26 = vpop.f32.mrb[27].mxu0  ;;  %3539 = vst.msk [vmem:[%s6307_s13] sm:$0x1] %vm3538_vm0, %v5110_v4 }
 0x2f9   : > { %3638 = vst [vmem:[%s6180_s10 + $0xa8] sm:$0xff] %v3524_v32  ;;  %v3424_v10 = vmul.f32 %v4650_v3, %v6163_v5  ;;  %v4652_v11 = vadd.f32 %v3331_v26, %v2110_v40  ;;  %5370 = vmaxabs.f32.vacc0 %v3526_v0, %v3524_v32 }
 0x2fa   : > { %v3465_v56 = vadd.f32 %v6165_v6, %v3426_v7  ;;  %v3427_v52 = vmul.f32 %v4651_v13, %v6163_v5 }
 0x2fb   : > { %v3463_v53 = vadd.f32 %v6165_v6, %v3424_v10  ;;  %v3425_v21 = vmul.f32 %v4652_v11, %v6163_v5  ;;  %v4415_v34 = vpop.f32.mrb[28].mxu1 }
 0x2fc   : > { %v3529_v2 = vadd.f32 %v3497_v43, %v3465_v56  ;;  %v3466_v47 = vadd.f32 %v6165_v6, %v3427_v52  ;;  %v2123_v38 = vpop.f32.mrb[29].mxu1 }
 0x2fd   : > { %v3527_v16 = vadd.f32 %v3495_v42, %v3463_v53  ;;  %v3464_v8 = vadd.f32 %v6165_v6, %v3425_v21  ;;  %v4607_v12 = vpop.f32.mrb[28].mxu0  ;;  %v4416_v54 = vpop.f32.mrb[30].mxu1 }
 0x2fe   : > { %3643 = vst [vmem:[%s6180_s10 + $0xd0] sm:$0xff] %v3529_v2  ;;  %v3530_v17 = vadd.f32 %v3498_v46, %v3466_v47  ;;  %v4653_v20 = vadd.f32 %v4607_v12, %v4415_v34  ;;  %v3344_v27 = vpop.f32.mrb[29].mxu0  ;;  %v2126_v19 = vpop.f32.mrb[31].mxu1 }
 0x2ff   : > { %3641 = vst [vmem:[%s6180_s10 + $0xc0] sm:$0xff] %v3527_v16  ;;  %v3528_v29 = vadd.f32 %v3496_v36, %v3464_v8  ;;  %v4654_v55 = vadd.f32 %v3344_v27, %v2123_v38  ;;  %v4608_v24 = vpop.f32.mrb[30].mxu0  ;;  %5371 = vmaxabs.f32.vacc0 %v3529_v2, %v3527_v16 }
 0x300   : > { %3644 = vst [vmem:[%s6180_s10 + $0xd8] sm:$0xff] %v3530_v17  ;;  %v3430_v39 = vmul.f32 %v4653_v20, %v6163_v5  ;;  %v4655_v1 = vadd.f32 %v4608_v24, %v4416_v54  ;;  %v3347_v30 = vpop.f32.mrb[31].mxu0 }
 0x301   : > { %3642 = vst [vmem:[%s6180_s10 + $0xc8] sm:$0xff] %v3528_v29  ;;  %v3428_v58 = vmul.f32 %v4654_v55, %v6163_v5  ;;  %v4656_v23 = vadd.f32 %v3347_v30, %v2126_v19  ;;  %5372 = vmaxabs.f32.vacc0 %v3530_v17, %v3528_v29 }
 0x302   : > { %v3469_v50 = vadd.f32 %v6165_v6, %v3430_v39  ;;  %v3431_v44 = vmul.f32 %v4655_v1, %v6163_v5 }
 0x303   : > { %v3467_v51 = vadd.f32 %v6165_v6, %v3428_v58  ;;  %v3429_v48 = vmul.f32 %v4656_v23, %v6163_v5 }
 0x304   : > { %v3533_v25 = vadd.f32 %v3501_v49, %v3469_v50  ;;  %v3470_v31 = vadd.f32 %v6165_v6, %v3431_v44 }
 0x305   : > { %v3531_v33 = vadd.f32 %v3499_v28, %v3467_v51  ;;  %v3468_v22 = vadd.f32 %v6165_v6, %v3429_v48 }
 0x306   : > { %3647 = vst [vmem:[%s6180_s10 + $0xf0] sm:$0xff] %v3533_v25  ;;  %v3534_v41 = vadd.f32 %v3502_v14, %v3470_v31 }
 0x307   : > { %3645 = vst [vmem:[%s6180_s10 + $0xe0] sm:$0xff] %v3531_v33  ;;  %v3532_v9 = vadd.f32 %v3500_v57, %v3468_v22  ;;  %5373 = vmaxabs.f32.vacc0 %v3533_v25, %v3531_v33 }
 0x308   : > { %3648 = vst [vmem:[%s6180_s10 + $0xf8] sm:$0xff] %v3534_v41 }
 0x309   : > { %3646 = vst [vmem:[%s6180_s10 + $0xe8] sm:$0xff] %v3532_v9  ;;  %5374 = vmaxabs.f32.vacc0 %v3534_v41, %v3532_v9 }
 0x30b   : > { %v5375_v5 = vmovacc.low.even.vacc0 }
 0x30d   : > { %3604 = vmax.xlane.f32.xlu0 %v5375_v5 }
 0x30e   : > { %5268 = shalt.err (!%p5265_p12)
}
 0x30f   : > { %s5269_s16 = scalar_lea.hbm %s6315_s22, 4096  ;;  %s5273_s2 = scalar_lea.hbm %s6463_s6, 8192 }
 0x310   : > { %p5270_p8 = scmp.ne.s32.totalorder %s6315_s22, %s5269_s16  ;;  %p5274_p5 = scmp.lt.u32.totalorder %s6315_s22, %s6463_s6 }
 0x311   : > { %p5275_p9 = scmp.lt.u32.totalorder %s5273_s2, %s5269_s16  ;;  %p5277_p11 = scmp.lt.u32.totalorder %s5269_s16, %s6315_s22 }
 0x312   : > { %p5271_p0 = pnand %p5270_p8, %p6464_p4 }
 0x313   : > { %p5276_p2 = por %p5275_p9, %p5274_p5 }
 0x314   : > { %p5272_p7 = pneg %p5271_p0 }
 0x315   : > { %p5278_p6 = por %p5277_p11, %p5276_p2 }
 0x317   : > { %p5279_p13 = pnand %p5278_p6, %p5272_p7 }
 0x319   : > { %5282 = shalt.err (!%p5279_p13)
}
 0x31a   : > { %s5411_s9 = smov 128   ;;  %s5412_s1 = smov 8   ;;  %v3540_v37 = vld [vmem:[%s6307_s13] sm:$0x1] }
 0x31b   : > { %4933 = dma.vmem_to_hbm [thread:$0]  (%p6464_p4), %s6318_s28, 4096, %s6315_s22, %s3650_s7, %s5411_s9, %s5411_s9, %s5412_s1  }
 0x31c   : > { %s3955_s12 = sshll.u32 %s5390_s29, 4  ;;  %s3686_s0 = sshll.u32 %s6307_s13, 4  ;;  %s6352_s0 = int_to_ptr.vmem [resolvable:$true] %s3686_s0 }
 0x31d   : > { %s6465_s26 = sld [smem:[#allocation32_spill]]  ;;  %s3655_s7 = scalar_lea.sflag [#allocation15], %s5696_s23 }
 0x31e   : > { %s5283_s21 = scalar_lea.vmem %s6352_s0, 16  ;;  %s5413_s29 = smov [#allocation14]  }
 0x31f   : > { %p5284_p10 = scmp.ne.s32.totalorder %s6352_s0, %s5283_s21  ;;  %s5287_s15 = sshll.u32 %s5413_s29, 4  ;;  %s5288_s15 = int_to_ptr.vmem [resolvable:$false] %s5287_s15 }
 0x320   : > { %s5289_s18 = scalar_lea.vmem %s5288_s15, 32  ;;  %p5290_p12 = scmp.lt.s32.totalorder %s6352_s0, %s5288_s15 }
 0x321   : > { %p5285_p1 = pnand %p5284_p10, %p6464_p4  ;;  %p5291_p8 = scmp.lt.s32.totalorder %s5289_s18, %s5283_s21 }
 0x323   : > { %s6466_s22 = smov %s6465_s26  ;;  %s6350_s28 = scalar_lea.hbm %s6465_s26, %s3955_s12 }
 0x324   : > { %p5286_p3 = pneg %p5285_p1  ;;  %p5292_p0 = por %p5291_p8, %p5290_p12 }
 0x326   : > { %p5293_p7 = pnand %p5292_p0, %p5286_p3 }
 0x39a   : > { %v3605_v6 = vpop.xlane.xlu0 %3604 }
 0x39b   : > { %v3606_v18 = vrot.slane %v3605_v6, 4 }
 0x39d   : > { %v3607_v60 = vmax.f32 %v3605_v6, %v3606_v18 }
 0x39f   : > { %v3608_v59 = vrot.slane %v3607_v60, 2 }
 0x3a1   : > { %v3609_v63 = vmax.f32 %v3607_v60, %v3608_v59 }
 0x3a3   : > { %v3610_v61 = vrot.slane %v3609_v63, 1 }
 0x3a5   : > { %v3611_v62 = vmax.f32 %v3609_v63, %v3610_v61 }
 0x3a7   : > { %4915 = vpush %v3611_v62 }
 0x3d8   : > { %s4916_s10 = spop %4915 }
 0x3d9   : > { %v3613_v0 = vstv %s4916_s10 }
 0x3da   : > { %v3614_v35 = vmax.f32 %v3540_v37, %v3613_v0 }
 0x3dc   : > { %3616 = vst.msk [vmem:[%s6307_s13] sm:$0x1] %vm3538_vm0, %v3614_v35 }
 0x3dd   : > { %5296 = shalt.err (!%p5293_p7)
}
 0x3de   : > { %s5297_s23 = scalar_lea.hbm %s6350_s28, 16  ;;  %s5301_s16 = scalar_lea.hbm %s6466_s22, 32 }
 0x3df   : > { %p5298_p5 = scmp.ne.s32.totalorder %s6350_s28, %s5297_s23  ;;  %p5302_p11 = scmp.lt.u32.totalorder %s6350_s28, %s6466_s22 }
 0x3e0   : > { %p5303_p6 = scmp.lt.u32.totalorder %s5301_s16, %s5297_s23  ;;  %p5305_p10 = scmp.lt.u32.totalorder %s5297_s23, %s6350_s28 }
 0x3e1   : > { %p5299_p9 = pnand %p5298_p5, %p6464_p4 }
 0x3e2   : > { %p5304_p13 = por %p5303_p6, %p5302_p11 }
 0x3e3   : > { %p5300_p2 = pneg %p5299_p9 }
 0x3e4   : > { %p5306_p1 = por %p5305_p10, %p5304_p13 }
 0x3e6   : > { %p5307_p3 = pnand %p5306_p1, %p5300_p2 }
 0x3e8   : > { %5310 = shalt.err (!%p5307_p3)
}
 0x3e9   : > { %4934 = dma.vmem_to_hbm [thread:$0]  (%p6464_p4), %s6352_s0, 16, %s6350_s28, %s3655_s7  }
 0x3ea PF: > { %s6467_s2 = sld [smem:[#allocation22_spill]]  ;;  %s6468_s8 = sld [smem:[#allocation25_spill]] }
 0x3eb   : > { %s6469_s19 = sld [smem:[#allocation24_spill]] }
 0x3f0   : > { %s3698_s9 = sand.u32 1, %s6467_s2   ;;  %p6470_p12 = scmp.ne.s32.totalorder %s6468_s8, 0 }
 0x3f1   : > { %p6471_p8 = scmp.ge.s32.totalorder %s6469_s19, 2  ;;  %s3699_s1 = scalar_lea.sflag [#allocation6], %s3698_s9 }
 0x3f3   : > { %p4955_p0 = pnand %p6471_p8, %p6470_p12 }
 0x3f5   : > { %5352 = dma.done.wait (!%p4955_p0), %s3699_s1, 4096  }
 0x3f6   : > { %5354 = vsyncadd (!%p4955_p0), %s3699_s1, 4294963200  ;;  %s3708_s12 = scalar_lea.sflag [#allocation15], %s3698_s9 }
 0x3f7   : > { %5356 = dma.done.wait (!%p4955_p0), %s3708_s12, 16  }
 0x3f8   : > { %5358 = vsyncadd (!%p4955_p0), %s3708_s12, 4294967280  ;;  %s30_s8 = sadd.s32 1, %s6469_s19   ;;  %s6472_s24 = sld [smem:[#allocation23_spill]] }
 0x3f9   : > { %p27_p7 = scmp.ge.s32.totalorder %s30_s8, 4   ;;  %s6473_s28 = sld [smem:[#allocation28_spill]] }
 0x3fa   : > { %s6474_s0 = sld [smem:[#allocation26_spill]]  ;;  %s6475_s26 = smov %s5382_s27 }
 0x3fb   : > { %s6477_s29 = smov %s5394_s30  ;;  %29 = sbr.rel (!%p27_p7) target bundleno = 16 (0x10), region = 152 }
 0x3fe   : > { %s6476_s27 = smov %s6472_s24 }
 0x400   : > { %s6478_s30 = smov %s6474_s0 }
 0x402   :  { %3712 = vsyncpa [#allocation5], 1 }
 0x403   :  { %3714 = vsyncpa [#allocation5 + $0x1], 1 }
 0x404   :  { %3715 = vsyncpa [#allocation8], 1 }
 0x405   :  { %3716 = vsyncpa [#allocation11], 1 }
 0x406   :  { %3717 = vsyncpa [#allocation6], 1 }
 0x407   :  { %3719 = vsyncpa [#allocation6 + $0x1], 1 }
 0x408   :  { %3720 = vsyncpa [#allocation15], 1 }
 0x409   :  { %3722 = vsyncpa [#allocation15 + $0x1], 1 }

</bundles_post_ra>
